<compile_context>
chip_gen: v7x
topology: tpu7x:2x2x1
jax: 0.10.0
libtpu: 0.0.40
codegen_flags: <defaults>
</compile_context>

<pallas_src>
import math

import jax
import jax.numpy as jnp
from jax import lax
from jax.experimental import pallas as pl
from jax.experimental.pallas import tpu as pltpu


# -----------------------------------------------------------------------------
# Model configuration (PyTorch defaults: npy_num=3, k=10 -> in_length=153 branch)
# -----------------------------------------------------------------------------
LENGTH = 51                      # shape_input[0]  (output sequence length)
RXTX = 4                         # shape_input[1]
D_INPUT = 8                      # shape_input[2]  (subcarrier_num)
D_MODEL = 32
K_GAUSS = 10
NPY_NUM = 3
L_IN = LENGTH * NPY_NUM          # 153
C_OUT = D_MODEL // RXTX          # 8   ProjectionBlock out_channels
C_POOL = D_INPUT // 2            # 4   after AvgPool1d(4,2,1) over channels
LN_EPS = 1e-5
GAUSS_CONST = -0.5 * math.log(2.0 * math.pi)


# -----------------------------------------------------------------------------
# Pallas kernels
# -----------------------------------------------------------------------------
def _gauss_emb_kernel(gp_ref, e_ref, emb_ref):
    """Gaussian range embedding table for one branch.

    gp_ref : (1, 2, k)    rows = [mu, std]
    e_ref  : (1, k, D)    embedding table
    emb_ref: (1, R, L, Cout)  output, pre-split per RxTx channel group so the
                              main kernel can add it without any relayout.
    """
    mu = gp_ref[0, 0:1, :]                                     # (1, k)
    std = gp_ref[0, 1:2, :]                                    # (1, k)
    pos = lax.broadcasted_iota(jnp.int32, (LENGTH, K_GAUSS), 0).astype(jnp.float32)
    a = (pos - mu) / std
    ln_p = -jnp.log(std) + GAUSS_CONST - 0.5 * a * a           # (L, k)
    m = jnp.max(ln_p, axis=-1, keepdims=True)
    e = jnp.exp(ln_p - m)
    pdf = e / jnp.sum(e, axis=-1, keepdims=True)               # softmax over k
    for r in range(RXTX):
        e_blk = e_ref[0, :, r * C_OUT:(r + 1) * C_OUT]         # (k, Cout)
        emb_ref[0, r] = jnp.dot(pdf, e_blk, preferred_element_type=jnp.float32)


def _proj_block_kernel(x_ref, wc_ref, aff1_ref, wt_ref, aff2_ref, emb_ref, o_ref):
    """Fused ProjectionBlock (eval mode) + gaussian embedding add for one
    (branch, batch) pair; static loop over the RxTx axis, all VMEM-resident.

    x_ref   : (1, R, L_in, Cin)
    wc_ref  : (1, Cin, Cout)        folded avg-pool @ channel Linear
    aff1_ref: (1, 3, Cout)          rows = [linear bias, ln1 gamma, ln1 beta]
    wt_ref  : (1, L_out, L_in)      folded (smoothing @ temporal Linear)^T
    aff2_ref: (1, L_out, 3)         cols = [temporal bias, ln2 gamma, ln2 beta]
    emb_ref : (1, R, L_out, Cout)   gaussian embedding per-RxTx slice
    o_ref   : (1, R, L_out, Cout)
    """
    wc = wc_ref[0]                      # (Cin, Cout)
    bc = aff1_ref[0, 0:1, :]            # (1, Cout)
    g1 = aff1_ref[0, 1:2, :]
    b1 = aff1_ref[0, 2:3, :]
    wtT = wt_ref[0]                     # (L_out, L_in)
    bt = aff2_ref[0, :, 0:1]            # (L_out, 1)
    g2 = aff2_ref[0, :, 1:2]
    b2 = aff2_ref[0, :, 2:3]

    for r in range(RXTX):
        x = x_ref[0, r]                                             # (L_in, Cin)
        # --- channel projection: AvgPool1d(4,2,1) + Linear folded into wc ---
        h = jnp.dot(x, wc, preferred_element_type=jnp.float32) + bc  # (L_in, Cout)
        mu1 = jnp.mean(h, axis=-1, keepdims=True)
        d1 = h - mu1
        var1 = jnp.mean(d1 * d1, axis=-1, keepdims=True)
        h = d1 * lax.rsqrt(var1 + LN_EPS) * g1 + b1                  # LayerNorm(Cout)
        h = jnp.maximum(h, 0.0)                                      # ReLU
        # --- temporal: (x[1::3]*4 + pool3*2 + pool5)/7 and Linear folded into wtT ---
        z = jnp.dot(wtT, h, preferred_element_type=jnp.float32) + bt  # (L_out, Cout)
        mu2 = jnp.mean(z, axis=0, keepdims=True)
        d2 = z - mu2
        var2 = jnp.mean(d2 * d2, axis=0, keepdims=True)
        z = d2 * lax.rsqrt(var2 + LN_EPS) * g2 + b2                  # LayerNorm(L_out)
        z = jnp.maximum(z, 0.0)                                      # ReLU
        # --- dropout = identity (eval); add gaussian range embedding ---
        o_ref[0, r] = (z + emb_ref[0, r]).astype(o_ref.dtype)


# -----------------------------------------------------------------------------
# Pallas wrappers
# -----------------------------------------------------------------------------
def gaussian_embedding_tables(gp_s, e_s):
    """(2,2,k),(2,k,D) -> (2,R,L,Cout) gaussian positional tables."""
    return pl.pallas_call(
        _gauss_emb_kernel,
        out_shape=jax.ShapeDtypeStruct((2, RXTX, LENGTH, C_OUT), jnp.float32),
        grid=(2,),
        in_specs=[
            pl.BlockSpec((1, 2, K_GAUSS), lambda s: (s, 0, 0)),
            pl.BlockSpec((1, K_GAUSS, D_MODEL), lambda s: (s, 0, 0)),
        ],
        out_specs=pl.BlockSpec((1, RXTX, LENGTH, C_OUT), lambda s: (s, 0, 0, 0)),
        compiler_params=pltpu.CompilerParams(dimension_semantics=("parallel",)),
    )(gp_s, e_s)


def fused_projection(x_s, wc_s, aff1_s, wt_s, aff2_s, emb_s):
    """x_s: (2*B, R, L_in, Cin) -> (2*B, R, L_out, Cout)."""
    nb = x_s.shape[0] // 2          # batch size per branch
    return pl.pallas_call(
        _proj_block_kernel,
        out_shape=jax.ShapeDtypeStruct((2 * nb, RXTX, LENGTH, C_OUT), jnp.float32),
        grid=(2, nb),
        in_specs=[
            pl.BlockSpec((1, RXTX, L_IN, D_INPUT), lambda s, b: (s * nb + b, 0, 0, 0)),
            pl.BlockSpec((1, D_INPUT, C_OUT), lambda s, b: (s, 0, 0)),
            pl.BlockSpec((1, 3, C_OUT), lambda s, b: (s, 0, 0)),
            pl.BlockSpec((1, LENGTH, L_IN), lambda s, b: (s, 0, 0)),
            pl.BlockSpec((1, LENGTH, 3), lambda s, b: (s, 0, 0)),
            pl.BlockSpec((1, RXTX, LENGTH, C_OUT), lambda s, b: (s, 0, 0, 0)),
        ],
        out_specs=pl.BlockSpec((1, RXTX, LENGTH, C_OUT),
                               lambda s, b: (s * nb + b, 0, 0, 0)),
        compiler_params=pltpu.CompilerParams(
            dimension_semantics=("parallel", "parallel")),
    )(x_s, wc_s, aff1_s, wt_s, aff2_s, emb_s)


# -----------------------------------------------------------------------------
# Host-side, parameter-only preprocessing (hoisted out of the hot path)
# -----------------------------------------------------------------------------
def _chan_pool_matrix():
    """AvgPool1d(4,2,1, count_include_pad=True) over channels as (Cin, Cin/2)."""
    i = jnp.arange(D_INPUT)[:, None]
    j = jnp.arange(C_POOL)[None, :]
    return 0.25 * ((i >= 2 * j - 1) & (i <= 2 * j + 2)).astype(jnp.float32)


def _temporal_smoothing_matrix():
    """(x[1::3]*4 + AvgPool(3,3,0)*2 + AvgPool(5,3,1)*1)/7 as (L_in, L_out)."""
    l = jnp.arange(L_IN)[:, None]
    j = jnp.arange(LENGTH)[None, :]
    sel = (l == 3 * j + 1).astype(jnp.float32) * (4.0 / 7.0)
    p3 = ((l >= 3 * j) & (l <= 3 * j + 2)).astype(jnp.float32) * (2.0 / 21.0)
    p5 = ((l >= 3 * j - 1) & (l <= 3 * j + 3)).astype(jnp.float32) * (1.0 / 35.0)
    return sel + p3 + p5


def prepare_folded_params(p_amp, p_pha):
    pool_m = _chan_pool_matrix()            # (Cin, Cin/2)
    smooth_m = _temporal_smoothing_matrix()  # (L_in, L_out)

    def fold(p):
        wc = pool_m @ p["w_chan"]                                   # (Cin, Cout)
        aff1 = jnp.stack([p["b_chan"], p["ln1_g"], p["ln1_b"]], 0)  # (3, Cout)
        wtT = (smooth_m @ p["w_temp"]).T                            # (L_out, L_in)
        aff2 = jnp.stack([p["b_temp"], p["ln2_g"], p["ln2_b"]], 1)  # (L_out, 3)
        gp = jnp.stack([p["mu"], p["std"]], 0)                      # (2, k)
        return wc, aff1, wtT, aff2, gp, p["embedding"]

    fa, fp = fold(p_amp), fold(p_pha)
    return tuple(jnp.stack([fa[i], fp[i]], axis=0) for i in range(6))


# -----------------------------------------------------------------------------
# Forward (Pallas hot path)
# -----------------------------------------------------------------------------
@jax.jit
def gaussian_range_embedding_forward(amp, pha, wc_s, aff1_s, wt_s, aff2_s, gp_s, e_s):
    bsz = amp.shape[0]
    # (branch, B, L_in, R, Cin) -> (branch*B, R, L_in, Cin): layout plumbing only
    x_s = jnp.stack([amp, pha], axis=0).transpose(0, 1, 3, 2, 4)
    x_s = x_s.reshape(2 * bsz, RXTX, L_IN, D_INPUT)

    emb_s = gaussian_embedding_tables(gp_s, e_s)                  # (2, R, L, Cout)
    y = fused_projection(x_s, wc_s, aff1_s, wt_s, aff2_s, emb_s)  # (2B, R, L, Cout)

    y = y.reshape(2, bsz, RXTX, LENGTH, C_OUT).transpose(0, 1, 3, 2, 4)
    y = y.reshape(2, bsz, LENGTH, D_MODEL)
    return y[0], y[1]


# -----------------------------------------------------------------------------
# Parameter init (mirrors the module's parameterization, eval mode)
# -----------------------------------------------------------------------------
def init_branch_params(key):
    ks = jax.random.split(key, 9)
    xav = math.sqrt(6.0 / (K_GAUSS + D_MODEL))
    return {
        "w_chan": jax.random.normal(ks[0], (C_POOL, C_OUT), jnp.float32) / math.sqrt(C_POOL),
        "b_chan": 0.1 * jax.random.normal(ks[1], (C_OUT,), jnp.float32),
        "ln1_g": 1.0 + 0.1 * jax.random.normal(ks[2], (C_OUT,), jnp.float32),
        "ln1_b": 0.1 * jax.random.normal(ks[3], (C_OUT,), jnp.float32),
        "w_temp": jax.random.normal(ks[4], (LENGTH, LENGTH), jnp.float32) / math.sqrt(LENGTH),
        "b_temp": 0.1 * jax.random.normal(ks[5], (LENGTH,), jnp.float32),
        "ln2_g": 1.0 + 0.1 * jax.random.normal(ks[6], (LENGTH,), jnp.float32),
        "ln2_b": 0.1 * jax.random.normal(ks[7], (LENGTH,), jnp.float32),
        "embedding": jax.random.uniform(ks[8], (K_GAUSS, D_MODEL), jnp.float32, -xav, xav),
        "mu": jnp.linspace(0.0, float(LENGTH), K_GAUSS).astype(jnp.float32),
        "std": jnp.ones((K_GAUSS,), jnp.float32) * (LENGTH / 3.0),
    }


# -----------------------------------------------------------------------------
# Pure-JAX reference (mirrors the PyTorch ops directly, no weight folding)
# -----------------------------------------------------------------------------
def _layer_norm(x, g, b):
    mu = jnp.mean(x, axis=-1, keepdims=True)
    var = jnp.mean((x - mu) ** 2, axis=-1, keepdims=True)
    return (x - mu) / jnp.sqrt(var + LN_EPS) * g + b


def projection_block_ref(x, p):
    bsz = x.shape[0]
    hp = lax.Precision.HIGHEST
    x = x.reshape(bsz, L_IN * RXTX, D_INPUT)
    # channel_projection: AvgPool1d(4,2,1) over channels (count_include_pad=True)
    xp = jnp.pad(x, ((0, 0), (0, 0), (1, 1)))
    pooled = jnp.stack([jnp.sum(xp[..., 2 * j:2 * j + 4], axis=-1) / 4.0
                        for j in range(C_POOL)], axis=-1)
    h = jnp.dot(pooled, p["w_chan"], precision=hp) + p["b_chan"]
    h = jnp.maximum(_layer_norm(h, p["ln1_g"], p["ln1_b"]), 0.0)
    # view / permute to (B, Cout*R, L_in)
    h = h.reshape(bsz, L_IN, RXTX, C_OUT).transpose(0, 3, 2, 1)
    h = h.reshape(bsz, C_OUT * RXTX, L_IN)
    # (x[:, :, 1::3]*4 + pool3*2 + pool5*1) / 7
    sel = h[..., 1::3]
    p3 = jnp.mean(h.reshape(bsz, C_OUT * RXTX, LENGTH, 3), axis=-1)
    hpad = jnp.pad(h, ((0, 0), (0, 0), (1, 1)))
    p5 = sum(hpad[..., off:off + 3 * LENGTH - 2:3] for off in range(5)) / 5.0
    s = (sel * 4.0 + p3 * 2.0 + p5) / 7.0
    y = jnp.dot(s, p["w_temp"], precision=hp) + p["b_temp"]
    y = jnp.maximum(_layer_norm(y, p["ln2_g"], p["ln2_b"]), 0.0)
    # view back to (B, LENGTH, D_MODEL); dropout = identity in eval
    y = y.reshape(bsz, C_OUT, RXTX, LENGTH).transpose(0, 3, 2, 1)
    return y.reshape(bsz, LENGTH, D_MODEL)


def gaussian_embedding_ref(p):
    pos = jnp.arange(LENGTH, dtype=jnp.float32)[:, None]
    a = (pos - p["mu"][None, :]) / p["std"][None, :]
    ln_p = -jnp.log(p["std"])[None, :] + GAUSS_CONST - 0.5 * a ** 2
    pdf = jax.nn.softmax(ln_p, axis=1)
    return jnp.dot(pdf, p["embedding"], precision=lax.Precision.HIGHEST)


def gaussian_range_embedding_ref(amp, pha, p_amp, p_pha):
    a = projection_block_ref(amp, p_amp) + gaussian_embedding_ref(p_amp)[None]
    b = projection_block_ref(pha, p_pha) + gaussian_embedding_ref(p_pha)[None]
    return a, b


# -----------------------------------------------------------------------------
if __name__ == "__main__":
    key = jax.random.PRNGKey(0)
    k_amp, k_pha, kp_amp, kp_pha = jax.random.split(key, 4)

    B = 2
    amp = jax.random.normal(k_amp, (B, L_IN, RXTX, D_INPUT), jnp.float32)
    pha = jax.random.normal(k_pha, (B, L_IN, RXTX, D_INPUT), jnp.float32)

    p_amp = init_branch_params(kp_amp)
    p_pha = init_branch_params(kp_pha)

    folded = prepare_folded_params(p_amp, p_pha)     # hoisted, parameter-only
    amp_out, pha_out = gaussian_range_embedding_forward(amp, pha, *folded)
    amp_out = jax.block_until_ready(amp_out)
    pha_out = jax.block_until_ready(pha_out)

    amp_ref, pha_ref = gaussian_range_embedding_ref(amp, pha, p_amp, p_pha)
    amp_ref = jax.block_until_ready(amp_ref)
    pha_ref = jax.block_until_ready(pha_ref)

    assert amp_out.shape == (B, LENGTH, D_MODEL), amp_out.shape
    assert pha_out.shape == (B, LENGTH, D_MODEL), pha_out.shape
    err_a = float(jnp.max(jnp.abs(amp_out - amp_ref)))
    err_p = float(jnp.max(jnp.abs(pha_out - pha_ref)))
    ok = (bool(jnp.allclose(amp_out, amp_ref, atol=1e-2, rtol=1e-2))
          and bool(jnp.allclose(pha_out, pha_ref, atol=1e-2, rtol=1e-2)))
    if not ok:
        raise AssertionError(f"mismatch vs reference: amp={err_a}, pha={err_p}")

    print("KERNEL_OK")
</pallas_src>

<mosaic_0001>
module attributes {stable_mosaic.version = 11 : i64} {
  func.func @_gauss_emb_kernel(%arg0: i32, %arg1: memref<1x2x10xf32, #tpu.memory_space<vmem>>, %arg2: memref<1x10x32xf32, #tpu.memory_space<vmem>>, %arg3: memref<1x4x51x8xf32, #tpu.memory_space<vmem>>) attributes {dimension_semantics = [#tpu.dimension_semantics<parallel>], iteration_bounds = array<i64: 2>, scalar_prefetch = 0 : i64, scratch_operands = 0 : i64, tpu.core_type = #tpu.core_type<tc>, window_params = [{transform_indices = @transform_0, window_bounds = array<i64: 1, 2, 10>}, {transform_indices = @transform_1, window_bounds = array<i64: 1, 10, 32>}, {transform_indices = @transform_2, window_bounds = array<i64: 1, 4, 51, 8>}]} {
    %c0 = arith.constant 0 : index
    %c0_0 = arith.constant 0 : index
    %c0_1 = arith.constant 0 : index
    %0 = vector.load %arg1[%c0, %c0_0, %c0_1] : memref<1x2x10xf32, #tpu.memory_space<vmem>>, vector<1x1x10xf32>
    %1 = vector.shape_cast %0 : vector<1x1x10xf32> to vector<1x10xf32>
    %c0_2 = arith.constant 0 : index
    %c1 = arith.constant 1 : index
    %c0_3 = arith.constant 0 : index
    %2 = vector.load %arg1[%c0_2, %c1, %c0_3] : memref<1x2x10xf32, #tpu.memory_space<vmem>>, vector<1x1x10xf32>
    %3 = vector.shape_cast %2 : vector<1x1x10xf32> to vector<1x10xf32>
    %4 = tpu.iota {dimensions = array<i32: 0>} : vector<51x10xi32>
    %5 = arith.sitofp %4 : vector<51x10xi32> to vector<51x10xf32>
    %6 = vector.broadcast %1 : vector<1x10xf32> to vector<51x10xf32>
    %7 = arith.subf %5, %6 : vector<51x10xf32>
    %8 = vector.broadcast %3 : vector<1x10xf32> to vector<51x10xf32>
    %9 = arith.divf %7, %8 : vector<51x10xf32>
    %10 = math.log %3 : vector<1x10xf32>
    %cst = arith.constant 0.000000e+00 : f32
    %11 = vector.broadcast %cst : f32 to vector<1x10xf32>
    %12 = arith.subf %11, %10 : vector<1x10xf32>
    %cst_4 = arith.constant -0.918938517 : f32
    %13 = vector.broadcast %cst_4 : f32 to vector<1x10xf32>
    %14 = arith.addf %12, %13 : vector<1x10xf32>
    %cst_5 = arith.constant 5.000000e-01 : f32
    %15 = vector.broadcast %cst_5 : f32 to vector<51x10xf32>
    %16 = arith.mulf %15, %9 : vector<51x10xf32>
    %17 = arith.mulf %16, %9 : vector<51x10xf32>
    %18 = vector.broadcast %14 : vector<1x10xf32> to vector<51x10xf32>
    %19 = arith.subf %18, %17 : vector<51x10xf32>
    %cst_6 = arith.constant dense<0xFF800000> : vector<51xf32>
    %20 = vector.multi_reduction <maximumf>, %19, %cst_6 [1] : vector<51x10xf32> to vector<51xf32>
    %21 = vector.shape_cast %20 : vector<51xf32> to vector<51x1xf32>
    %22 = vector.broadcast %21 : vector<51x1xf32> to vector<51x10xf32>
    %23 = arith.subf %19, %22 : vector<51x10xf32>
    %24 = math.exp %23 : vector<51x10xf32>
    %cst_7 = arith.constant dense<0.000000e+00> : vector<51xf32>
    %25 = vector.multi_reduction <add>, %24, %cst_7 [1] : vector<51x10xf32> to vector<51xf32>
    %26 = vector.shape_cast %25 : vector<51xf32> to vector<51x1xf32>
    %27 = vector.broadcast %26 : vector<51x1xf32> to vector<51x10xf32>
    %28 = arith.divf %24, %27 : vector<51x10xf32>
    %c0_8 = arith.constant 0 : index
    %c0_9 = arith.constant 0 : index
    %c0_10 = arith.constant 0 : index
    %29 = vector.load %arg2[%c0_8, %c0_9, %c0_10] : memref<1x10x32xf32, #tpu.memory_space<vmem>>, vector<1x10x8xf32>
    %30 = vector.shape_cast %29 : vector<1x10x8xf32> to vector<10x8xf32>
    %cst_11 = arith.constant dense<0.000000e+00> : vector<51x8xf32>
    %31 = tpu.matmul %28, %30, %cst_11 {dimension_numbers = #tpu.dot_dimension_numbers<[1], [0], [0], [1], [0, 0, 1, 1], [], []>} : vector<51x10xf32>, vector<10x8xf32>, vector<51x8xf32> -> vector<51x8xf32>
    %c0_12 = arith.constant 0 : index
    %c0_13 = arith.constant 0 : index
    %c0_14 = arith.constant 0 : index
    %c0_15 = arith.constant 0 : index
    %32 = vector.load %arg3[%c0_12, %c0_13, %c0_14, %c0_15] : memref<1x4x51x8xf32, #tpu.memory_space<vmem>>, vector<1x1x51x8xf32>
    %33 = vector.shape_cast %32 : vector<1x1x51x8xf32> to vector<51x8xf32>
    %34 = vector.shape_cast %31 : vector<51x8xf32> to vector<1x1x51x8xf32>
    tpu.vector_store %arg3[%c0_12, %c0_13, %c0_14, %c0_15], %34 {strides = array<i32>} : memref<1x4x51x8xf32, #tpu.memory_space<vmem>>, vector<1x1x51x8xf32>,
    %c0_16 = arith.constant 0 : index
    %c0_17 = arith.constant 0 : index
    %c8 = arith.constant 8 : index
    %35 = vector.load %arg2[%c0_16, %c0_17, %c8] : memref<1x10x32xf32, #tpu.memory_space<vmem>>, vector<1x10x8xf32>
    %36 = vector.shape_cast %35 : vector<1x10x8xf32> to vector<10x8xf32>
    %cst_18 = arith.constant dense<0.000000e+00> : vector<51x8xf32>
    %37 = tpu.matmul %28, %36, %cst_18 {dimension_numbers = #tpu.dot_dimension_numbers<[1], [0], [0], [1], [0, 0, 1, 1], [], []>} : vector<51x10xf32>, vector<10x8xf32>, vector<51x8xf32> -> vector<51x8xf32>
    %c0_19 = arith.constant 0 : index
    %c1_20 = arith.constant 1 : index
    %c0_21 = arith.constant 0 : index
    %c0_22 = arith.constant 0 : index
    %38 = vector.load %arg3[%c0_19, %c1_20, %c0_21, %c0_22] : memref<1x4x51x8xf32, #tpu.memory_space<vmem>>, vector<1x1x51x8xf32>
    %39 = vector.shape_cast %38 : vector<1x1x51x8xf32> to vector<51x8xf32>
    %40 = vector.shape_cast %37 : vector<51x8xf32> to vector<1x1x51x8xf32>
    tpu.vector_store %arg3[%c0_19, %c1_20, %c0_21, %c0_22], %40 {strides = array<i32>} : memref<1x4x51x8xf32, #tpu.memory_space<vmem>>, vector<1x1x51x8xf32>,
    %c0_23 = arith.constant 0 : index
    %c0_24 = arith.constant 0 : index
    %c16 = arith.constant 16 : index
    %41 = vector.load %arg2[%c0_23, %c0_24, %c16] : memref<1x10x32xf32, #tpu.memory_space<vmem>>, vector<1x10x8xf32>
    %42 = vector.shape_cast %41 : vector<1x10x8xf32> to vector<10x8xf32>
    %cst_25 = arith.constant dense<0.000000e+00> : vector<51x8xf32>
    %43 = tpu.matmul %28, %42, %cst_25 {dimension_numbers = #tpu.dot_dimension_numbers<[1], [0], [0], [1], [0, 0, 1, 1], [], []>} : vector<51x10xf32>, vector<10x8xf32>, vector<51x8xf32> -> vector<51x8xf32>
    %c0_26 = arith.constant 0 : index
    %c2 = arith.constant 2 : index
    %c0_27 = arith.constant 0 : index
    %c0_28 = arith.constant 0 : index
    %44 = vector.load %arg3[%c0_26, %c2, %c0_27, %c0_28] : memref<1x4x51x8xf32, #tpu.memory_space<vmem>>, vector<1x1x51x8xf32>
    %45 = vector.shape_cast %44 : vector<1x1x51x8xf32> to vector<51x8xf32>
    %46 = vector.shape_cast %43 : vector<51x8xf32> to vector<1x1x51x8xf32>
    tpu.vector_store %arg3[%c0_26, %c2, %c0_27, %c0_28], %46 {strides = array<i32>} : memref<1x4x51x8xf32, #tpu.memory_space<vmem>>, vector<1x1x51x8xf32>,
    %c0_29 = arith.constant 0 : index
    %c0_30 = arith.constant 0 : index
    %c24 = arith.constant 24 : index
    %47 = vector.load %arg2[%c0_29, %c0_30, %c24] : memref<1x10x32xf32, #tpu.memory_space<vmem>>, vector<1x10x8xf32>
    %48 = vector.shape_cast %47 : vector<1x10x8xf32> to vector<10x8xf32>
    %cst_31 = arith.constant dense<0.000000e+00> : vector<51x8xf32>
    %49 = tpu.matmul %28, %48, %cst_31 {dimension_numbers = #tpu.dot_dimension_numbers<[1], [0], [0], [1], [0, 0, 1, 1], [], []>} : vector<51x10xf32>, vector<10x8xf32>, vector<51x8xf32> -> vector<51x8xf32>
    %c0_32 = arith.constant 0 : index
    %c3 = arith.constant 3 : index
    %c0_33 = arith.constant 0 : index
    %c0_34 = arith.constant 0 : index
    %50 = vector.load %arg3[%c0_32, %c3, %c0_33, %c0_34] : memref<1x4x51x8xf32, #tpu.memory_space<vmem>>, vector<1x1x51x8xf32>
    %51 = vector.shape_cast %50 : vector<1x1x51x8xf32> to vector<51x8xf32>
    %52 = vector.shape_cast %49 : vector<51x8xf32> to vector<1x1x51x8xf32>
    tpu.vector_store %arg3[%c0_32, %c3, %c0_33, %c0_34], %52 {strides = array<i32>} : memref<1x4x51x8xf32, #tpu.memory_space<vmem>>, vector<1x1x51x8xf32>,
    return
  }
  func.func @transform_0(%arg0: i32) -> (i32, i32, i32) {
    %c0_i32 = arith.constant 0 : i32
    %c0_i32_0 = arith.constant 0 : i32
    %c0_i32_1 = arith.constant 0 : i32
    return %arg0, %c0_i32, %c0_i32_0 : i32, i32, i32
  }
  func.func @transform_1(%arg0: i32) -> (i32, i32, i32) {
    %c0_i32 = arith.constant 0 : i32
    %c0_i32_0 = arith.constant 0 : i32
    %c0_i32_1 = arith.constant 0 : i32
    return %arg0, %c0_i32, %c0_i32_0 : i32, i32, i32
  }
  func.func @transform_2(%arg0: i32) -> (i32, i32, i32, i32) {
    %c0_i32 = arith.constant 0 : i32
    %c0_i32_0 = arith.constant 0 : i32
    %c0_i32_1 = arith.constant 0 : i32
    %c0_i32_2 = arith.constant 0 : i32
    return %arg0, %c0_i32, %c0_i32_0, %c0_i32_1 : i32, i32, i32, i32
  }
}

module attributes {stable_mosaic.version = 11 : i64} {
  func.func @_proj_block_kernel(%arg0: i32, %arg1: i32, %arg2: memref<1x4x153x8xf32, #tpu.memory_space<vmem>>, %arg3: memref<1x8x8xf32, #tpu.memory_space<vmem>>, %arg4: memref<1x3x8xf32, #tpu.memory_space<vmem>>, %arg5: memref<1x51x153xf32, #tpu.memory_space<vmem>>, %arg6: memref<1x51x3xf32, #tpu.memory_space<vmem>>, %arg7: memref<1x4x51x8xf32, #tpu.memory_space<vmem>>, %arg8: memref<1x4x51x8xf32, #tpu.memory_space<vmem>>) attributes {dimension_semantics = [#tpu.dimension_semantics<parallel>, #tpu.dimension_semantics<parallel>], iteration_bounds = array<i64: 2, 2>, scalar_prefetch = 0 : i64, scratch_operands = 0 : i64, tpu.core_type = #tpu.core_type<tc>, window_params = [{transform_indices = @transform_0, window_bounds = array<i64: 1, 4, 153, 8>}, {transform_indices = @transform_1, window_bounds = array<i64: 1, 8, 8>}, {transform_indices = @transform_2, window_bounds = array<i64: 1, 3, 8>}, {transform_indices = @transform_3, window_bounds = array<i64: 1, 51, 153>}, {transform_indices = @transform_4, window_bounds = array<i64: 1, 51, 3>}, {transform_indices = @transform_5, window_bounds = array<i64: 1, 4, 51, 8>}, {transform_indices = @transform_6, window_bounds = array<i64: 1, 4, 51, 8>}]} {
    %c0 = arith.constant 0 : index
    %c0_0 = arith.constant 0 : index
    %c0_1 = arith.constant 0 : index
    %0 = vector.load %arg3[%c0, %c0_0, %c0_1] : memref<1x8x8xf32, #tpu.memory_space<vmem>>, vector<1x8x8xf32>
    %1 = vector.shape_cast %0 : vector<1x8x8xf32> to vector<8x8xf32>
    %c0_2 = arith.constant 0 : index
    %c0_3 = arith.constant 0 : index
    %c0_4 = arith.constant 0 : index
    %2 = vector.load %arg4[%c0_2, %c0_3, %c0_4] : memref<1x3x8xf32, #tpu.memory_space<vmem>>, vector<1x1x8xf32>
    %3 = vector.shape_cast %2 : vector<1x1x8xf32> to vector<1x8xf32>
    %c0_5 = arith.constant 0 : index
    %c1 = arith.constant 1 : index
    %c0_6 = arith.constant 0 : index
    %4 = vector.load %arg4[%c0_5, %c1, %c0_6] : memref<1x3x8xf32, #tpu.memory_space<vmem>>, vector<1x1x8xf32>
    %5 = vector.shape_cast %4 : vector<1x1x8xf32> to vector<1x8xf32>
    %c0_7 = arith.constant 0 : index
    %c2 = arith.constant 2 : index
    %c0_8 = arith.constant 0 : index
    %6 = vector.load %arg4[%c0_7, %c2, %c0_8] : memref<1x3x8xf32, #tpu.memory_space<vmem>>, vector<1x1x8xf32>
    %7 = vector.shape_cast %6 : vector<1x1x8xf32> to vector<1x8xf32>
    %c0_9 = arith.constant 0 : index
    %c0_10 = arith.constant 0 : index
    %c0_11 = arith.constant 0 : index
    %8 = vector.load %arg5[%c0_9, %c0_10, %c0_11] : memref<1x51x153xf32, #tpu.memory_space<vmem>>, vector<1x51x153xf32>
    %9 = vector.shape_cast %8 : vector<1x51x153xf32> to vector<51x153xf32>
    %c0_12 = arith.constant 0 : index
    %c0_13 = arith.constant 0 : index
    %c0_14 = arith.constant 0 : index
    %10 = vector.load %arg6[%c0_12, %c0_13, %c0_14] : memref<1x51x3xf32, #tpu.memory_space<vmem>>, vector<1x51x1xf32>
    %11 = vector.shape_cast %10 : vector<1x51x1xf32> to vector<51x1xf32>
    %c0_15 = arith.constant 0 : index
    %c0_16 = arith.constant 0 : index
    %c1_17 = arith.constant 1 : index
    %12 = vector.load %arg6[%c0_15, %c0_16, %c1_17] : memref<1x51x3xf32, #tpu.memory_space<vmem>>, vector<1x51x1xf32>
    %13 = vector.shape_cast %12 : vector<1x51x1xf32> to vector<51x1xf32>
    %c0_18 = arith.constant 0 : index
    %c0_19 = arith.constant 0 : index
    %c2_20 = arith.constant 2 : index
    %14 = vector.load %arg6[%c0_18, %c0_19, %c2_20] : memref<1x51x3xf32, #tpu.memory_space<vmem>>, vector<1x51x1xf32>
    %15 = vector.shape_cast %14 : vector<1x51x1xf32> to vector<51x1xf32>
    %c0_21 = arith.constant 0 : index
    %c0_22 = arith.constant 0 : index
    %c0_23 = arith.constant 0 : index
    %c0_24 = arith.constant 0 : index
    %16 = vector.load %arg2[%c0_21, %c0_22, %c0_23, %c0_24] : memref<1x4x153x8xf32, #tpu.memory_space<vmem>>, vector<1x1x153x8xf32>
    %17 = vector.shape_cast %16 : vector<1x1x153x8xf32> to vector<153x8xf32>
    %cst = arith.constant dense<0.000000e+00> : vector<153x8xf32>
    %18 = tpu.matmul %17, %1, %cst {dimension_numbers = #tpu.dot_dimension_numbers<[1], [0], [0], [1], [0, 0, 1, 1], [], []>} : vector<153x8xf32>, vector<8x8xf32>, vector<153x8xf32> -> vector<153x8xf32>
    %19 = vector.broadcast %3 : vector<1x8xf32> to vector<153x8xf32>
    %20 = arith.addf %18, %19 : vector<153x8xf32>
    %cst_25 = arith.constant dense<0.000000e+00> : vector<153xf32>
    %21 = vector.multi_reduction <add>, %20, %cst_25 [1] : vector<153x8xf32> to vector<153xf32>
    %22 = vector.shape_cast %21 : vector<153xf32> to vector<153x1xf32>
    %cst_26 = arith.constant 8.000000e+00 : f32
    %23 = vector.broadcast %cst_26 : f32 to vector<153x1xf32>
    %24 = arith.divf %22, %23 : vector<153x1xf32>
    %25 = vector.broadcast %24 : vector<153x1xf32> to vector<153x8xf32>
    %26 = arith.subf %20, %25 : vector<153x8xf32>
    %27 = arith.mulf %26, %26 : vector<153x8xf32>
    %cst_27 = arith.constant dense<0.000000e+00> : vector<153xf32>
    %28 = vector.multi_reduction <add>, %27, %cst_27 [1] : vector<153x8xf32> to vector<153xf32>
    %29 = vector.shape_cast %28 : vector<153xf32> to vector<153x1xf32>
    %cst_28 = arith.constant 8.000000e+00 : f32
    %30 = vector.broadcast %cst_28 : f32 to vector<153x1xf32>
    %31 = arith.divf %29, %30 : vector<153x1xf32>
    %cst_29 = arith.constant 9.99999974E-6 : f32
    %32 = vector.broadcast %cst_29 : f32 to vector<153x1xf32>
    %33 = arith.addf %31, %32 : vector<153x1xf32>
    %34 = math.rsqrt %33 : vector<153x1xf32>
    %35 = vector.broadcast %34 : vector<153x1xf32> to vector<153x8xf32>
    %36 = arith.mulf %26, %35 : vector<153x8xf32>
    %37 = vector.broadcast %5 : vector<1x8xf32> to vector<153x8xf32>
    %38 = arith.mulf %36, %37 : vector<153x8xf32>
    %39 = vector.broadcast %7 : vector<1x8xf32> to vector<153x8xf32>
    %40 = arith.addf %38, %39 : vector<153x8xf32>
    %cst_30 = arith.constant 0.000000e+00 : f32
    %41 = vector.broadcast %cst_30 : f32 to vector<153x8xf32>
    %42 = arith.maximumf %40, %41 : vector<153x8xf32>
    %cst_31 = arith.constant dense<0.000000e+00> : vector<51x8xf32>
    %43 = tpu.matmul %9, %42, %cst_31 {dimension_numbers = #tpu.dot_dimension_numbers<[1], [0], [0], [1], [0, 0, 1, 1], [], []>} : vector<51x153xf32>, vector<153x8xf32>, vector<51x8xf32> -> vector<51x8xf32>
    %44 = vector.broadcast %11 : vector<51x1xf32> to vector<51x8xf32>
    %45 = arith.addf %43, %44 : vector<51x8xf32>
    %cst_32 = arith.constant dense<0.000000e+00> : vector<8xf32>
    %46 = vector.multi_reduction <add>, %45, %cst_32 [0] : vector<51x8xf32> to vector<8xf32>
    %47 = vector.shape_cast %46 : vector<8xf32> to vector<1x8xf32>
    %cst_33 = arith.constant 5.100000e+01 : f32
    %48 = vector.broadcast %cst_33 : f32 to vector<1x8xf32>
    %49 = arith.divf %47, %48 : vector<1x8xf32>
    %50 = vector.broadcast %49 : vector<1x8xf32> to vector<51x8xf32>
    %51 = arith.subf %45, %50 : vector<51x8xf32>
    %52 = arith.mulf %51, %51 : vector<51x8xf32>
    %cst_34 = arith.constant dense<0.000000e+00> : vector<8xf32>
    %53 = vector.multi_reduction <add>, %52, %cst_34 [0] : vector<51x8xf32> to vector<8xf32>
    %54 = vector.shape_cast %53 : vector<8xf32> to vector<1x8xf32>
    %cst_35 = arith.constant 5.100000e+01 : f32
    %55 = vector.broadcast %cst_35 : f32 to vector<1x8xf32>
    %56 = arith.divf %54, %55 : vector<1x8xf32>
    %cst_36 = arith.constant 9.99999974E-6 : f32
    %57 = vector.broadcast %cst_36 : f32 to vector<1x8xf32>
    %58 = arith.addf %56, %57 : vector<1x8xf32>
    %59 = math.rsqrt %58 : vector<1x8xf32>
    %60 = vector.broadcast %59 : vector<1x8xf32> to vector<51x8xf32>
    %61 = arith.mulf %51, %60 : vector<51x8xf32>
    %62 = vector.broadcast %13 : vector<51x1xf32> to vector<51x8xf32>
    %63 = arith.mulf %61, %62 : vector<51x8xf32>
    %64 = vector.broadcast %15 : vector<51x1xf32> to vector<51x8xf32>
    %65 = arith.addf %63, %64 : vector<51x8xf32>
    %cst_37 = arith.constant 0.000000e+00 : f32
    %66 = vector.broadcast %cst_37 : f32 to vector<51x8xf32>
    %67 = arith.maximumf %65, %66 : vector<51x8xf32>
    %c0_38 = arith.constant 0 : index
    %c0_39 = arith.constant 0 : index
    %c0_40 = arith.constant 0 : index
    %c0_41 = arith.constant 0 : index
    %68 = vector.load %arg7[%c0_38, %c0_39, %c0_40, %c0_41] : memref<1x4x51x8xf32, #tpu.memory_space<vmem>>, vector<1x1x51x8xf32>
    %69 = vector.shape_cast %68 : vector<1x1x51x8xf32> to vector<51x8xf32>
    %70 = arith.addf %67, %69 : vector<51x8xf32>
    %c0_42 = arith.constant 0 : index
    %c0_43 = arith.constant 0 : index
    %c0_44 = arith.constant 0 : index
    %c0_45 = arith.constant 0 : index
    %71 = vector.load %arg8[%c0_42, %c0_43, %c0_44, %c0_45] : memref<1x4x51x8xf32, #tpu.memory_space<vmem>>, vector<1x1x51x8xf32>
    %72 = vector.shape_cast %71 : vector<1x1x51x8xf32> to vector<51x8xf32>
    %73 = vector.shape_cast %70 : vector<51x8xf32> to vector<1x1x51x8xf32>
    tpu.vector_store %arg8[%c0_42, %c0_43, %c0_44, %c0_45], %73 {strides = array<i32>} : memref<1x4x51x8xf32, #tpu.memory_space<vmem>>, vector<1x1x51x8xf32>,
    %c0_46 = arith.constant 0 : index
    %c1_47 = arith.constant 1 : index
    %c0_48 = arith.constant 0 : index
    %c0_49 = arith.constant 0 : index
    %74 = vector.load %arg2[%c0_46, %c1_47, %c0_48, %c0_49] : memref<1x4x153x8xf32, #tpu.memory_space<vmem>>, vector<1x1x153x8xf32>
    %75 = vector.shape_cast %74 : vector<1x1x153x8xf32> to vector<153x8xf32>
    %cst_50 = arith.constant dense<0.000000e+00> : vector<153x8xf32>
    %76 = tpu.matmul %75, %1, %cst_50 {dimension_numbers = #tpu.dot_dimension_numbers<[1], [0], [0], [1], [0, 0, 1, 1], [], []>} : vector<153x8xf32>, vector<8x8xf32>, vector<153x8xf32> -> vector<153x8xf32>
    %77 = vector.broadcast %3 : vector<1x8xf32> to vector<153x8xf32>
    %78 = arith.addf %76, %77 : vector<153x8xf32>
    %cst_51 = arith.constant dense<0.000000e+00> : vector<153xf32>
    %79 = vector.multi_reduction <add>, %78, %cst_51 [1] : vector<153x8xf32> to vector<153xf32>
    %80 = vector.shape_cast %79 : vector<153xf32> to vector<153x1xf32>
    %cst_52 = arith.constant 8.000000e+00 : f32
    %81 = vector.broadcast %cst_52 : f32 to vector<153x1xf32>
    %82 = arith.divf %80, %81 : vector<153x1xf32>
    %83 = vector.broadcast %82 : vector<153x1xf32> to vector<153x8xf32>
    %84 = arith.subf %78, %83 : vector<153x8xf32>
    %85 = arith.mulf %84, %84 : vector<153x8xf32>
    %cst_53 = arith.constant dense<0.000000e+00> : vector<153xf32>
    %86 = vector.multi_reduction <add>, %85, %cst_53 [1] : vector<153x8xf32> to vector<153xf32>
    %87 = vector.shape_cast %86 : vector<153xf32> to vector<153x1xf32>
    %cst_54 = arith.constant 8.000000e+00 : f32
    %88 = vector.broadcast %cst_54 : f32 to vector<153x1xf32>
    %89 = arith.divf %87, %88 : vector<153x1xf32>
    %cst_55 = arith.constant 9.99999974E-6 : f32
    %90 = vector.broadcast %cst_55 : f32 to vector<153x1xf32>
    %91 = arith.addf %89, %90 : vector<153x1xf32>
    %92 = math.rsqrt %91 : vector<153x1xf32>
    %93 = vector.broadcast %92 : vector<153x1xf32> to vector<153x8xf32>
    %94 = arith.mulf %84, %93 : vector<153x8xf32>
    %95 = vector.broadcast %5 : vector<1x8xf32> to vector<153x8xf32>
    %96 = arith.mulf %94, %95 : vector<153x8xf32>
    %97 = vector.broadcast %7 : vector<1x8xf32> to vector<153x8xf32>
    %98 = arith.addf %96, %97 : vector<153x8xf32>
    %cst_56 = arith.constant 0.000000e+00 : f32
    %99 = vector.broadcast %cst_56 : f32 to vector<153x8xf32>
    %100 = arith.maximumf %98, %99 : vector<153x8xf32>
    %cst_57 = arith.constant dense<0.000000e+00> : vector<51x8xf32>
    %101 = tpu.matmul %9, %100, %cst_57 {dimension_numbers = #tpu.dot_dimension_numbers<[1], [0], [0], [1], [0, 0, 1, 1], [], []>} : vector<51x153xf32>, vector<153x8xf32>, vector<51x8xf32> -> vector<51x8xf32>
    %102 = vector.broadcast %11 : vector<51x1xf32> to vector<51x8xf32>
    %103 = arith.addf %101, %102 : vector<51x8xf32>
    %cst_58 = arith.constant dense<0.000000e+00> : vector<8xf32>
    %104 = vector.multi_reduction <add>, %103, %cst_58 [0] : vector<51x8xf32> to vector<8xf32>
    %105 = vector.shape_cast %104 : vector<8xf32> to vector<1x8xf32>
    %cst_59 = arith.constant 5.100000e+01 : f32
    %106 = vector.broadcast %cst_59 : f32 to vector<1x8xf32>
    %107 = arith.divf %105, %106 : vector<1x8xf32>
    %108 = vector.broadcast %107 : vector<1x8xf32> to vector<51x8xf32>
    %109 = arith.subf %103, %108 : vector<51x8xf32>
    %110 = arith.mulf %109, %109 : vector<51x8xf32>
    %cst_60 = arith.constant dense<0.000000e+00> : vector<8xf32>
    %111 = vector.multi_reduction <add>, %110, %cst_60 [0] : vector<51x8xf32> to vector<8xf32>
    %112 = vector.shape_cast %111 : vector<8xf32> to vector<1x8xf32>
    %cst_61 = arith.constant 5.100000e+01 : f32
    %113 = vector.broadcast %cst_61 : f32 to vector<1x8xf32>
    %114 = arith.divf %112, %113 : vector<1x8xf32>
    %cst_62 = arith.constant 9.99999974E-6 : f32
    %115 = vector.broadcast %cst_62 : f32 to vector<1x8xf32>
    %116 = arith.addf %114, %115 : vector<1x8xf32>
    %117 = math.rsqrt %116 : vector<1x8xf32>
    %118 = vector.broadcast %117 : vector<1x8xf32> to vector<51x8xf32>
    %119 = arith.mulf %109, %118 : vector<51x8xf32>
    %120 = vector.broadcast %13 : vector<51x1xf32> to vector<51x8xf32>
    %121 = arith.mulf %119, %120 : vector<51x8xf32>
    %122 = vector.broadcast %15 : vector<51x1xf32> to vector<51x8xf32>
    %123 = arith.addf %121, %122 : vector<51x8xf32>
    %cst_63 = arith.constant 0.000000e+00 : f32
    %124 = vector.broadcast %cst_63 : f32 to vector<51x8xf32>
    %125 = arith.maximumf %123, %124 : vector<51x8xf32>
    %c0_64 = arith.constant 0 : index
    %c1_65 = arith.constant 1 : index
    %c0_66 = arith.constant 0 : index
    %c0_67 = arith.constant 0 : index
    %126 = vector.load %arg7[%c0_64, %c1_65, %c0_66, %c0_67] : memref<1x4x51x8xf32, #tpu.memory_space<vmem>>, vector<1x1x51x8xf32>
    %127 = vector.shape_cast %126 : vector<1x1x51x8xf32> to vector<51x8xf32>
    %128 = arith.addf %125, %127 : vector<51x8xf32>
    %c0_68 = arith.constant 0 : index
    %c1_69 = arith.constant 1 : index
    %c0_70 = arith.constant 0 : index
    %c0_71 = arith.constant 0 : index
    %129 = vector.load %arg8[%c0_68, %c1_69, %c0_70, %c0_71] : memref<1x4x51x8xf32, #tpu.memory_space<vmem>>, vector<1x1x51x8xf32>
    %130 = vector.shape_cast %129 : vector<1x1x51x8xf32> to vector<51x8xf32>
    %131 = vector.shape_cast %128 : vector<51x8xf32> to vector<1x1x51x8xf32>
    tpu.vector_store %arg8[%c0_68, %c1_69, %c0_70, %c0_71], %131 {strides = array<i32>} : memref<1x4x51x8xf32, #tpu.memory_space<vmem>>, vector<1x1x51x8xf32>,
    %c0_72 = arith.constant 0 : index
    %c2_73 = arith.constant 2 : index
    %c0_74 = arith.constant 0 : index
    %c0_75 = arith.constant 0 : index
    %132 = vector.load %arg2[%c0_72, %c2_73, %c0_74, %c0_75] : memref<1x4x153x8xf32, #tpu.memory_space<vmem>>, vector<1x1x153x8xf32>
    %133 = vector.shape_cast %132 : vector<1x1x153x8xf32> to vector<153x8xf32>
    %cst_76 = arith.constant dense<0.000000e+00> : vector<153x8xf32>
    %134 = tpu.matmul %133, %1, %cst_76 {dimension_numbers = #tpu.dot_dimension_numbers<[1], [0], [0], [1], [0, 0, 1, 1], [], []>} : vector<153x8xf32>, vector<8x8xf32>, vector<153x8xf32> -> vector<153x8xf32>
    %135 = vector.broadcast %3 : vector<1x8xf32> to vector<153x8xf32>
    %136 = arith.addf %134, %135 : vector<153x8xf32>
    %cst_77 = arith.constant dense<0.000000e+00> : vector<153xf32>
    %137 = vector.multi_reduction <add>, %136, %cst_77 [1] : vector<153x8xf32> to vector<153xf32>
    %138 = vector.shape_cast %137 : vector<153xf32> to vector<153x1xf32>
    %cst_78 = arith.constant 8.000000e+00 : f32
    %139 = vector.broadcast %cst_78 : f32 to vector<153x1xf32>
    %140 = arith.divf %138, %139 : vector<153x1xf32>
    %141 = vector.broadcast %140 : vector<153x1xf32> to vector<153x8xf32>
    %142 = arith.subf %136, %141 : vector<153x8xf32>
    %143 = arith.mulf %142, %142 : vector<153x8xf32>
    %cst_79 = arith.constant dense<0.000000e+00> : vector<153xf32>
    %144 = vector.multi_reduction <add>, %143, %cst_79 [1] : vector<153x8xf32> to vector<153xf32>
    %145 = vector.shape_cast %144 : vector<153xf32> to vector<153x1xf32>
    %cst_80 = arith.constant 8.000000e+00 : f32
    %146 = vector.broadcast %cst_80 : f32 to vector<153x1xf32>
    %147 = arith.divf %145, %146 : vector<153x1xf32>
    %cst_81 = arith.constant 9.99999974E-6 : f32
    %148 = vector.broadcast %cst_81 : f32 to vector<153x1xf32>
    %149 = arith.addf %147, %148 : vector<153x1xf32>
    %150 = math.rsqrt %149 : vector<153x1xf32>
    %151 = vector.broadcast %150 : vector<153x1xf32> to vector<153x8xf32>
    %152 = arith.mulf %142, %151 : vector<153x8xf32>
    %153 = vector.broadcast %5 : vector<1x8xf32> to vector<153x8xf32>
    %154 = arith.mulf %152, %153 : vector<153x8xf32>
    %155 = vector.broadcast %7 : vector<1x8xf32> to vector<153x8xf32>
    %156 = arith.addf %154, %155 : vector<153x8xf32>
    %cst_82 = arith.constant 0.000000e+00 : f32
    %157 = vector.broadcast %cst_82 : f32 to vector<153x8xf32>
    %158 = arith.maximumf %156, %157 : vector<153x8xf32>
    %cst_83 = arith.constant dense<0.000000e+00> : vector<51x8xf32>
    %159 = tpu.matmul %9, %158, %cst_83 {dimension_numbers = #tpu.dot_dimension_numbers<[1], [0], [0], [1], [0, 0, 1, 1], [], []>} : vector<51x153xf32>, vector<153x8xf32>, vector<51x8xf32> -> vector<51x8xf32>
    %160 = vector.broadcast %11 : vector<51x1xf32> to vector<51x8xf32>
    %161 = arith.addf %159, %160 : vector<51x8xf32>
    %cst_84 = arith.constant dense<0.000000e+00> : vector<8xf32>
    %162 = vector.multi_reduction <add>, %161, %cst_84 [0] : vector<51x8xf32> to vector<8xf32>
    %163 = vector.shape_cast %162 : vector<8xf32> to vector<1x8xf32>
    %cst_85 = arith.constant 5.100000e+01 : f32
    %164 = vector.broadcast %cst_85 : f32 to vector<1x8xf32>
    %165 = arith.divf %163, %164 : vector<1x8xf32>
    %166 = vector.broadcast %165 : vector<1x8xf32> to vector<51x8xf32>
    %167 = arith.subf %161, %166 : vector<51x8xf32>
    %168 = arith.mulf %167, %167 : vector<51x8xf32>
    %cst_86 = arith.constant dense<0.000000e+00> : vector<8xf32>
    %169 = vector.multi_reduction <add>, %168, %cst_86 [0] : vector<51x8xf32> to vector<8xf32>
    %170 = vector.shape_cast %169 : vector<8xf32> to vector<1x8xf32>
    %cst_87 = arith.constant 5.100000e+01 : f32
    %171 = vector.broadcast %cst_87 : f32 to vector<1x8xf32>
    %172 = arith.divf %170, %171 : vector<1x8xf32>
    %cst_88 = arith.constant 9.99999974E-6 : f32
    %173 = vector.broadcast %cst_88 : f32 to vector<1x8xf32>
    %174 = arith.addf %172, %173 : vector<1x8xf32>
    %175 = math.rsqrt %174 : vector<1x8xf32>
    %176 = vector.broadcast %175 : vector<1x8xf32> to vector<51x8xf32>
    %177 = arith.mulf %167, %176 : vector<51x8xf32>
    %178 = vector.broadcast %13 : vector<51x1xf32> to vector<51x8xf32>
    %179 = arith.mulf %177, %178 : vector<51x8xf32>
    %180 = vector.broadcast %15 : vector<51x1xf32> to vector<51x8xf32>
    %181 = arith.addf %179, %180 : vector<51x8xf32>
    %cst_89 = arith.constant 0.000000e+00 : f32
    %182 = vector.broadcast %cst_89 : f32 to vector<51x8xf32>
    %183 = arith.maximumf %181, %182 : vector<51x8xf32>
    %c0_90 = arith.constant 0 : index
    %c2_91 = arith.constant 2 : index
    %c0_92 = arith.constant 0 : index
    %c0_93 = arith.constant 0 : index
    %184 = vector.load %arg7[%c0_90, %c2_91, %c0_92, %c0_93] : memref<1x4x51x8xf32, #tpu.memory_space<vmem>>, vector<1x1x51x8xf32>
    %185 = vector.shape_cast %184 : vector<1x1x51x8xf32> to vector<51x8xf32>
    %186 = arith.addf %183, %185 : vector<51x8xf32>
    %c0_94 = arith.constant 0 : index
    %c2_95 = arith.constant 2 : index
    %c0_96 = arith.constant 0 : index
    %c0_97 = arith.constant 0 : index
    %187 = vector.load %arg8[%c0_94, %c2_95, %c0_96, %c0_97] : memref<1x4x51x8xf32, #tpu.memory_space<vmem>>, vector<1x1x51x8xf32>
    %188 = vector.shape_cast %187 : vector<1x1x51x8xf32> to vector<51x8xf32>
    %189 = vector.shape_cast %186 : vector<51x8xf32> to vector<1x1x51x8xf32>
    tpu.vector_store %arg8[%c0_94, %c2_95, %c0_96, %c0_97], %189 {strides = array<i32>} : memref<1x4x51x8xf32, #tpu.memory_space<vmem>>, vector<1x1x51x8xf32>,
    %c0_98 = arith.constant 0 : index
    %c3 = arith.constant 3 : index
    %c0_99 = arith.constant 0 : index
    %c0_100 = arith.constant 0 : index
    %190 = vector.load %arg2[%c0_98, %c3, %c0_99, %c0_100] : memref<1x4x153x8xf32, #tpu.memory_space<vmem>>, vector<1x1x153x8xf32>
    %191 = vector.shape_cast %190 : vector<1x1x153x8xf32> to vector<153x8xf32>
    %cst_101 = arith.constant dense<0.000000e+00> : vector<153x8xf32>
    %192 = tpu.matmul %191, %1, %cst_101 {dimension_numbers = #tpu.dot_dimension_numbers<[1], [0], [0], [1], [0, 0, 1, 1], [], []>} : vector<153x8xf32>, vector<8x8xf32>, vector<153x8xf32> -> vector<153x8xf32>
    %193 = vector.broadcast %3 : vector<1x8xf32> to vector<153x8xf32>
    %194 = arith.addf %192, %193 : vector<153x8xf32>
    %cst_102 = arith.constant dense<0.000000e+00> : vector<153xf32>
    %195 = vector.multi_reduction <add>, %194, %cst_102 [1] : vector<153x8xf32> to vector<153xf32>
    %196 = vector.shape_cast %195 : vector<153xf32> to vector<153x1xf32>
    %cst_103 = arith.constant 8.000000e+00 : f32
    %197 = vector.broadcast %cst_103 : f32 to vector<153x1xf32>
    %198 = arith.divf %196, %197 : vector<153x1xf32>
    %199 = vector.broadcast %198 : vector<153x1xf32> to vector<153x8xf32>
    %200 = arith.subf %194, %199 : vector<153x8xf32>
    %201 = arith.mulf %200, %200 : vector<153x8xf32>
    %cst_104 = arith.constant dense<0.000000e+00> : vector<153xf32>
    %202 = vector.multi_reduction <add>, %201, %cst_104 [1] : vector<153x8xf32> to vector<153xf32>
    %203 = vector.shape_cast %202 : vector<153xf32> to vector<153x1xf32>
    %cst_105 = arith.constant 8.000000e+00 : f32
    %204 = vector.broadcast %cst_105 : f32 to vector<153x1xf32>
    %205 = arith.divf %203, %204 : vector<153x1xf32>
    %cst_106 = arith.constant 9.99999974E-6 : f32
    %206 = vector.broadcast %cst_106 : f32 to vector<153x1xf32>
    %207 = arith.addf %205, %206 : vector<153x1xf32>
    %208 = math.rsqrt %207 : vector<153x1xf32>
    %209 = vector.broadcast %208 : vector<153x1xf32> to vector<153x8xf32>
    %210 = arith.mulf %200, %209 : vector<153x8xf32>
    %211 = vector.broadcast %5 : vector<1x8xf32> to vector<153x8xf32>
    %212 = arith.mulf %210, %211 : vector<153x8xf32>
    %213 = vector.broadcast %7 : vector<1x8xf32> to vector<153x8xf32>
    %214 = arith.addf %212, %213 : vector<153x8xf32>
    %cst_107 = arith.constant 0.000000e+00 : f32
    %215 = vector.broadcast %cst_107 : f32 to vector<153x8xf32>
    %216 = arith.maximumf %214, %215 : vector<153x8xf32>
    %cst_108 = arith.constant dense<0.000000e+00> : vector<51x8xf32>
    %217 = tpu.matmul %9, %216, %cst_108 {dimension_numbers = #tpu.dot_dimension_numbers<[1], [0], [0], [1], [0, 0, 1, 1], [], []>} : vector<51x153xf32>, vector<153x8xf32>, vector<51x8xf32> -> vector<51x8xf32>
    %218 = vector.broadcast %11 : vector<51x1xf32> to vector<51x8xf32>
    %219 = arith.addf %217, %218 : vector<51x8xf32>
    %cst_109 = arith.constant dense<0.000000e+00> : vector<8xf32>
    %220 = vector.multi_reduction <add>, %219, %cst_109 [0] : vector<51x8xf32> to vector<8xf32>
    %221 = vector.shape_cast %220 : vector<8xf32> to vector<1x8xf32>
    %cst_110 = arith.constant 5.100000e+01 : f32
    %222 = vector.broadcast %cst_110 : f32 to vector<1x8xf32>
    %223 = arith.divf %221, %222 : vector<1x8xf32>
    %224 = vector.broadcast %223 : vector<1x8xf32> to vector<51x8xf32>
    %225 = arith.subf %219, %224 : vector<51x8xf32>
    %226 = arith.mulf %225, %225 : vector<51x8xf32>
    %cst_111 = arith.constant dense<0.000000e+00> : vector<8xf32>
    %227 = vector.multi_reduction <add>, %226, %cst_111 [0] : vector<51x8xf32> to vector<8xf32>
    %228 = vector.shape_cast %227 : vector<8xf32> to vector<1x8xf32>
    %cst_112 = arith.constant 5.100000e+01 : f32
    %229 = vector.broadcast %cst_112 : f32 to vector<1x8xf32>
    %230 = arith.divf %228, %229 : vector<1x8xf32>
    %cst_113 = arith.constant 9.99999974E-6 : f32
    %231 = vector.broadcast %cst_113 : f32 to vector<1x8xf32>
    %232 = arith.addf %230, %231 : vector<1x8xf32>
    %233 = math.rsqrt %232 : vector<1x8xf32>
    %234 = vector.broadcast %233 : vector<1x8xf32> to vector<51x8xf32>
    %235 = arith.mulf %225, %234 : vector<51x8xf32>
    %236 = vector.broadcast %13 : vector<51x1xf32> to vector<51x8xf32>
    %237 = arith.mulf %235, %236 : vector<51x8xf32>
    %238 = vector.broadcast %15 : vector<51x1xf32> to vector<51x8xf32>
    %239 = arith.addf %237, %238 : vector<51x8xf32>
    %cst_114 = arith.constant 0.000000e+00 : f32
    %240 = vector.broadcast %cst_114 : f32 to vector<51x8xf32>
    %241 = arith.maximumf %239, %240 : vector<51x8xf32>
    %c0_115 = arith.constant 0 : index
    %c3_116 = arith.constant 3 : index
    %c0_117 = arith.constant 0 : index
    %c0_118 = arith.constant 0 : index
    %242 = vector.load %arg7[%c0_115, %c3_116, %c0_117, %c0_118] : memref<1x4x51x8xf32, #tpu.memory_space<vmem>>, vector<1x1x51x8xf32>
    %243 = vector.shape_cast %242 : vector<1x1x51x8xf32> to vector<51x8xf32>
    %244 = arith.addf %241, %243 : vector<51x8xf32>
    %c0_119 = arith.constant 0 : index
    %c3_120 = arith.constant 3 : index
    %c0_121 = arith.constant 0 : index
    %c0_122 = arith.constant 0 : index
    %245 = vector.load %arg8[%c0_119, %c3_120, %c0_121, %c0_122] : memref<1x4x51x8xf32, #tpu.memory_space<vmem>>, vector<1x1x51x8xf32>
    %246 = vector.shape_cast %245 : vector<1x1x51x8xf32> to vector<51x8xf32>
    %247 = vector.shape_cast %244 : vector<51x8xf32> to vector<1x1x51x8xf32>
    tpu.vector_store %arg8[%c0_119, %c3_120, %c0_121, %c0_122], %247 {strides = array<i32>} : memref<1x4x51x8xf32, #tpu.memory_space<vmem>>, vector<1x1x51x8xf32>,
    return
  }
  func.func @transform_0(%arg0: i32, %arg1: i32) -> (i32, i32, i32, i32) {
    %c2_i32 = arith.constant 2 : i32
    %0 = arith.muli %arg0, %c2_i32 : i32
    %1 = arith.addi %0, %arg1 : i32
    %c0_i32 = arith.constant 0 : i32
    %c0_i32_0 = arith.constant 0 : i32
    %c0_i32_1 = arith.constant 0 : i32
    %c0_i32_2 = arith.constant 0 : i32
    return %1, %c0_i32, %c0_i32_0, %c0_i32_1 : i32, i32, i32, i32
  }
  func.func @transform_1(%arg0: i32, %arg1: i32) -> (i32, i32, i32) {
    %c0_i32 = arith.constant 0 : i32
    %c0_i32_0 = arith.constant 0 : i32
    %c0_i32_1 = arith.constant 0 : i32
    return %arg0, %c0_i32, %c0_i32_0 : i32, i32, i32
  }
  func.func @transform_2(%arg0: i32, %arg1: i32) -> (i32, i32, i32) {
    %c0_i32 = arith.constant 0 : i32
    %c0_i32_0 = arith.constant 0 : i32
    %c0_i32_1 = arith.constant 0 : i32
    return %arg0, %c0_i32, %c0_i32_0 : i32, i32, i32
  }
  func.func @transform_3(%arg0: i32, %arg1: i32) -> (i32, i32, i32) {
    %c0_i32 = arith.constant 0 : i32
    %c0_i32_0 = arith.constant 0 : i32
    %c0_i32_1 = arith.constant 0 : i32
    return %arg0, %c0_i32, %c0_i32_0 : i32, i32, i32
  }
  func.func @transform_4(%arg0: i32, %arg1: i32) -> (i32, i32, i32) {
    %c0_i32 = arith.constant 0 : i32
    %c0_i32_0 = arith.constant 0 : i32
    %c0_i32_1 = arith.constant 0 : i32
    return %arg0, %c0_i32, %c0_i32_0 : i32, i32, i32
  }
  func.func @transform_5(%arg0: i32, %arg1: i32) -> (i32, i32, i32, i32) {
    %c0_i32 = arith.constant 0 : i32
    %c0_i32_0 = arith.constant 0 : i32
    %c0_i32_1 = arith.constant 0 : i32
    %c0_i32_2 = arith.constant 0 : i32
    return %arg0, %c0_i32, %c0_i32_0, %c0_i32_1 : i32, i32, i32, i32
  }
  func.func @transform_6(%arg0: i32, %arg1: i32) -> (i32, i32, i32, i32) {
    %c2_i32 = arith.constant 2 : i32
    %0 = arith.muli %arg0, %c2_i32 : i32
    %1 = arith.addi %0, %arg1 : i32
    %c0_i32 = arith.constant 0 : i32
    %c0_i32_0 = arith.constant 0 : i32
    %c0_i32_1 = arith.constant 0 : i32
    %c0_i32_2 = arith.constant 0 : i32
    return %1, %c0_i32, %c0_i32_0, %c0_i32_1 : i32, i32, i32, i32
  }
}

</mosaic_0001>

<bundles_post_ra>
// kernel: gaussian_range_embedding_forward.2
= control target key start
LH: loop header
LB: loop body
LE: loop exit
PB: predicated region body
PF: predicated region fallthrough
CT: control target
= control target key end

     0   :  { %7 = vsyncpa [#allocation3], 0  ;;  %s1620_s0 = inlined_call_operand.hbm [shape: f32[2,2,10], index: 0, kind: input, shape index: {}]   ;;  %s1621_s1 = inlined_call_operand.vmem [shape: f32[2,10,32], index: 1, kind: input, shape index: {}]   ;;  %s1622_s2 = inlined_call_operand.vmem [shape: f32[2,4,51,8], index: 2, kind: output, shape index: {}]  }
   0x1   :  { %9 = vsyncpa [#allocation3 + $0x1], 0  ;;  %s1303_s9 = smov 0   ;;  %s1305_s10 = smov 0  }
   0x2   :  { %s1307_s11 = smov 0   ;;  %s1309_s12 = smov 0  }
   0x3 LB: > { %s1322_s13 = sadd.s32 4294967295, %s1278_s12   ;;  %s1325_s14 = sadd.s32 1, %s1278_s12   ;;  %s1278_s12 = sphi %s1309_s12, %s1632_s12   ;;  %s1274_s11 = sphi %s1307_s11, %s1631_s11   ;;  %s1270_s10 = sphi %s1305_s10, %s1630_s10   ;;  %s1266_s9 = sphi %s1303_s9, %s1629_s9  }
   0x4   : > { %s19_s15 = ssub.s32 %s1278_s12, %s1325_s14  ;;  %s22_s16 = sadd.s32 1, %s1274_s11 }
   0x5   : > { %p20_p0 = scmp.eq.s32.totalorder %s19_s15, 0  ;;  %p29_p1 = scmp.ne.s32.totalorder %s1274_s11, %s1270_s10 }
   0x6   : > { %p30_p2 = scmp.eq.s32.totalorder %s1278_s12, 0  ;;  %p35_p3 = scmp.ne.s32.totalorder %s1270_s10, %s1266_s9 }
   0x7   : > { %s1335_s17 = scalar_select %p20_p0, %s1274_s11, %s22_s16  }
   0x8   : > { %p31_p4 = por %p30_p2, %p29_p1  ;;  %p36_p5 = scmp.eq.s32.totalorder %s1322_s13, 0 }
   0x9   : > { %p1127_p6 = scmp.lt.s32.totalorder %s1278_s12, 2  ;;  %s111_s19 = sand.u32 1, %s1274_s11  }
   0xa   : > { %p1339_p7 = por %p36_p5, %p35_p3  ;;  %s904_s20 = sshll.u32 %s111_s19, 1 }
   0xb   : > { %s905_s21 = sshll.u32 %s1278_s12, 5  ;;  %s115_s25 = scalar_lea.vmem [#allocation2], %s904_s20 }
   0xc   : > { %s1348_s24 = scalar_lea.hbm %s1620_s0, %s905_s21  ;;  %s122_s26 = sshll.u32 %s115_s25, 4  ;;  %s1350_s26 = int_to_ptr.vmem [resolvable:$true] %s122_s26 }
   0xd   : > { %p1352_p8 = pnand %p1127_p6, %p31_p4  ;;  %s112_s28 = scalar_lea.sflag [#allocation3], %s111_s19 }
   0xe   : > { %s1214_s29 = scalar_lea.hbm %s1348_s24, 32  ;;  %s1219_s4 = scalar_lea.hbm %s1620_s0, 64 }
   0xf   : > { %p1215_p11 = scmp.ne.s32.totalorder %s1348_s24, %s1214_s29  ;;  %p1216_p12 = pneg %p1352_p8 }
  0x10   : > { %p1220_p1 = scmp.lt.u32.totalorder %s1348_s24, %s1620_s0  ;;  %p1221_p2 = scmp.lt.u32.totalorder %s1219_s4, %s1214_s29 }
  0x11   : > { %p1217_p13 = pnand %p1216_p12, %p1215_p11  ;;  %p1223_p4 = scmp.lt.u32.totalorder %s1214_s29, %s1348_s24 }
  0x12   : > { %p1222_p3 = por %p1221_p2, %p1220_p1 }
  0x13   : > { %p1218_p0 = pneg %p1217_p13 }
  0x14   : > { %p1224_p5 = por %p1223_p4, %p1222_p3 }
  0x16   : > { %p1225_p6 = pnand %p1224_p5, %p1218_p0 }
  0x18   : > { %1228 = shalt.err (!%p1225_p6)
}
  0x19   : > { %s1229_s7 = scalar_lea.vmem %s1350_s26, 32  ;;  %s1280_s8 = smov [#allocation2]  }
  0x1a   : > { %p1230_p11 = scmp.ne.s32.totalorder %s1350_s26, %s1229_s7  ;;  %s1234_s9 = sshll.u32 %s1280_s8, 4  ;;  %s1235_s9 = int_to_ptr.vmem [resolvable:$false] %s1234_s9 }
  0x1b   : > { %s1236_s15 = scalar_lea.vmem %s1235_s9, 64  ;;  %p1237_p10 = scmp.lt.s32.totalorder %s1350_s26, %s1235_s9 }
  0x1c   : > { %p1232_p13 = pnand %p1230_p11, %p1216_p12  ;;  %p1238_p1 = scmp.lt.s32.totalorder %s1236_s15, %s1229_s7 }
  0x1e   : > { %p1233_p9 = pneg %p1232_p13  ;;  %p1239_p2 = por %p1238_p1, %p1237_p10 }
  0x20   : > { %p1240_p3 = pnand %p1239_p2, %p1233_p9 }
  0x22   : > { %1243 = shalt.err (!%p1240_p3)
}
  0x23   : > { %1126 = dma.hbm_to_vmem [thread:$0]  (!%p1352_p8), %s1348_s24, 32, %s1350_s26, %s112_s28  }
  0x24   : > { %p1625_p0 = scmp.lt.s32.totalorder %s1278_s12, 3  ;;  %p1626_p4 = scmp.ge.s32.totalorder %s1278_s12, 1 }
  0x26   : > { %p136_p12 = pnand %p1626_p4, %p1625_p0 }
  0x27   : > { %s141_s16 = sand.u32 (!%p136_p12), 1, %s1270_s10  }
  0x28   : > { %139 = sbr.rel (%p136_p12) target bundleno = 695 (0x2b7), region = 28  ;;  %s907_s19 = sshll.u32 (!%p136_p12), %s141_s16, 1 }
  0x29   : > { %s142_s20 = scalar_lea.sflag (!%p136_p12), [#allocation3], %s141_s16  ;;  %s145_s21 = scalar_lea.vmem (!%p136_p12), [#allocation2], %s907_s19 }
  0x2f   : > { %1261 = dma.done.wait (%p1339_p7), %s142_s20, 32  }
  0x30   : > { %1263 = vsyncadd (%p1339_p7), %s142_s20, 4294967264  ;;  %v183_v0 = vlaneseq  ;;  %v182_v3 = vld [vmem:[%s145_s21 + $0x1] sm:$0x1]  ;;  %v911_v14 = vld [vmem:[%s145_s21] ss:$0 sm:$0xff]  ;;  %vm250_vm0 = vcmask 80896  }
  0x31   : > { %1182 = vlog2.f32 %v182_v3  ;;  %vm269_vm1 = vcmask 75776   ;;  %p171_p7 = scmp.lt.s32.totalorder %s1322_s13, 1  ;;  %s1281_s24 = smov 120   ;;  %vm352_vm2 = vcmask 1041408   ;;  %vm1283_vm3 = vmmov 1  }
  0x32   : > { %v184_v1 = vshrl.u32 %v183_v0, 7  ;;  %vm1439_vm4 = vmpackc.low %vm352_vm2, %vm1283_vm3  ;;  %vm1284_vm5 = vmmov 0   ;;  %s1286_s25 = smov 112   ;;  %s1287_s26 = smov 104   ;;  %vm456_vm6 = vcmask 64512   ;;  %vm463_vm7 = vcmask 59392  }
  0x33   : > { %s1634_s13 = smov (!%p171_p7, %s1322_s13), 1 }
  0x34   : > { %v211_v2 = vsub.s32 0, %v184_v1  ;;  %v186_v5 = vadd.s32 16, %v184_v1  ;;  %v185_v6 = vadd.s32 8, %v184_v1  ;;  %v187_v7 = vadd.s32 24, %v184_v1  ;;  %s967_s12 = sshll.u32 %s1634_s13, 4  ;;  %s1120_s27 = smul.u32 224, %s1634_s13 }
  0x35   : > { %v189_v8 = vadd.s32 40, %v184_v1  ;;  %v188_v9 = vadd.s32 32, %v184_v1  ;;  %v190_v10 = vadd.s32 48, %v184_v1  ;;  %v191_v11 = vcvt.s32.f32 %v184_v1  ;;  %s1432_s23 = scalar_lea.vmem %s1621_s1, %s967_s12 }
  0x36   : > { %v212_v4 = vrot.slane %v182_v3, %v211_v2  ;;  %v193_v12 = vcvt.s32.f32 %v186_v5  ;;  %v192_v13 = vcvt.s32.f32 %v185_v6  ;;  %v194_v15 = vcvt.s32.f32 %v187_v7  ;;  %s1549_s30 = scalar_lea.vmem %s1622_s2, %s1120_s27 }
  0x37   : > { %v196_v16 = vcvt.s32.f32 %v189_v8  ;;  %v195_v17 = vcvt.s32.f32 %v188_v9  ;;  %v197_v18 = vcvt.s32.f32 %v190_v10  ;;  %v202_v19 = vsub.f32 %v191_v11, %v911_v14 }
  0x38   : > { %1184 = vrcp.f32 %v212_v4  ;;  %v204_v20 = vsub.f32 %v193_v12, %v911_v14  ;;  %v203_v21 = vsub.f32 %v192_v13, %v911_v14  ;;  %v205_v23 = vsub.f32 %v194_v15, %v911_v14 }
  0x39   : > { %v207_v24 = vsub.f32 %v196_v16, %v911_v14  ;;  %v206_v25 = vsub.f32 %v195_v17, %v911_v14  ;;  %v208_v26 = vsub.f32 %v197_v18, %v911_v14 }
  0x3b   : > { %v1183_v22 = vpop.eup %1182 }
  0x3c   : > { %v222_v27 = vmul.f32 0.6931472, %v1183_v22 }
  0x3e   : > { %v223_v30 = vsub.f32 0.0, %v222_v27 }
  0x40   : > { %v224_v37 = vadd.f32 -0.9189385, %v223_v30 }
  0x42   : > { %v1185_v28 = vpop.eup %1184  ;;  %v242_v45 = vrot.slane %v224_v37, %v211_v2  ;;  %v330_v37 = vld [vmem:[%s1432_s23 + $0x8] sm:$0x3] }
  0x43   : > { %v214_v29 = vmul.f32 %v1185_v28, %v202_v19  ;;  %v216_v31 = vmul.f32 %v1185_v28, %v204_v20  ;;  %v215_v32 = vmul.f32 %v1185_v28, %v203_v21  ;;  %v217_v33 = vmul.f32 %v1185_v28, %v205_v23 }
  0x44   : > { %v219_v34 = vmul.f32 %v1185_v28, %v207_v24  ;;  %v218_v35 = vmul.f32 %v1185_v28, %v206_v25  ;;  %v220_v36 = vmul.f32 %v1185_v28, %v208_v26 }
  0x45   : > { %v225_v38 = vmul.f32 0.5, %v214_v29  ;;  %v227_v39 = vmul.f32 0.5, %v216_v31  ;;  %v226_v40 = vmul.f32 0.5, %v215_v32  ;;  %v228_v41 = vmul.f32 0.5, %v217_v33 }
  0x46   : > { %v230_v42 = vmul.f32 0.5, %v219_v34  ;;  %v229_v43 = vmul.f32 0.5, %v218_v35  ;;  %v231_v50 = vmul.f32 0.5, %v220_v36 }
  0x47   : > { %v232_v44 = vmul.f32 %v225_v38, %v214_v29  ;;  %v234_v46 = vmul.f32 %v227_v39, %v216_v31  ;;  %v233_v47 = vmul.f32 %v226_v40, %v215_v32  ;;  %v235_v48 = vmul.f32 %v228_v41, %v217_v33 }
  0x48   : > { %v237_v49 = vmul.f32 %v230_v42, %v219_v34  ;;  %v236_v54 = vmul.f32 %v229_v43, %v218_v35  ;;  %v238_v58 = vmul.f32 %v231_v50, %v220_v36  ;;  %v465_v34 = vld [vmem:[%s1432_s23] sm:$0xff]  ;;  %v466_v35 = vld [vmem:[%s1432_s23 + $0x8] sm:$0x3]  ;;  %v1282_v39 = vmov 0.0|0.0  }
  0x49   : > { %v243_v51 = vsub.f32 %v242_v45, %v232_v44  ;;  %v245_v52 = vsub.f32 %v242_v45, %v234_v46  ;;  %v244_v53 = vsub.f32 %v242_v45, %v233_v47  ;;  %v246_v55 = vsub.f32 %v242_v45, %v235_v48  ;;  %1104 = vmatprep.subr.bf16.mxu0 %v1282_v39  ;;  %v585_v42 = vld [vmem:[%s1432_s23 + $0x8] sm:$0x3] }
  0x4a   : > { %v248_v61 = vsub.f32 %v242_v45, %v237_v49  ;;  %v1396_v62 = vsub.f32 %v242_v45, %v236_v54  ;;  %v249_v1 = vsub.f32 %v242_v45, %v238_v58  ;;  %v1167_v36 = vpack.i.bf16 %v466_v35, %v465_v34  ;;  %1108 = vmatprep.subr.bf16.mxu1 %v1282_v39  ;;  %v704_v48 = vld [vmem:[%s1432_s23 + $0x8] sm:$0x3] }
  0x4b   : > { %v251_v56 = vsel %vm250_vm0, %v243_v51, -inf  ;;  %v257_v57 = vsel %vm250_vm0, %v245_v52, -inf  ;;  %v254_v59 = vsel %vm250_vm0, %v244_v53, -inf  ;;  %v260_v60 = vsel %vm250_vm0, %v246_v55, -inf }
  0x4c   : > { %252 = vmax.xlane.f32.xlu0 %v251_v56  ;;  %258 = vmax.xlane.f32.xlu1 %v257_v57  ;;  %v266_v63 = vsel %vm250_vm0, %v248_v61, -inf  ;;  %v263_v0 = vsel %vm250_vm0, %v1396_v62, -inf  ;;  %v270_v2 = vsel %vm269_vm1, %v249_v1, -inf  ;;  %v1105_v38 = vpack.c.bf16 %v330_v37, %v465_v34 }
  0x4d   : > { %v1285_v41 = vmov 0.0   ;;  %v1172_v44 = vpack.i.bf16 %v585_v42, %v465_v34  ;;  %v1177_v49 = vpack.i.bf16 %v704_v48, %v465_v34 }
  0x4e   : > { %1107 = vmatpush3.bf16.msk.msra.mxu0 %vm1439_vm4, %v1105_v38  ;;  %1008 = vmatprep.mubr.msk.f32.mxu0 %vm1284_vm5, %v1285_v41 }
  0x4f   : > { %1112 = vmatprep.subr.bf16.mxu0 %v1282_v39  ;;  %1033 = vmatprep.mubr.msk.f32.mxu1 %vm1284_vm5, %v1285_v41 }
  0x50   : > { %255 = vmax.xlane.f32.xlu0 %v254_v59  ;;  %261 = vmax.xlane.f32.xlu1 %v260_v60 }
  0x54   : > { %267 = vmax.xlane.f32.xlu1 %v266_v63  ;;  %264 = vmax.xlane.f32.xlu0 %v263_v0 }
  0x58   : > { %271 = vmax.xlane.f32.xlu0 %v270_v2 }
  0xd9   : > { %v253_v3 = vpop.xlane.xlu0 %252  ;;  %v259_v4 = vpop.xlane.xlu1 %258 }
  0xda   : > { %v273_v5 = vsub.f32 %v243_v51, %v253_v3  ;;  %v275_v6 = vsub.f32 %v245_v52, %v259_v4 }
  0xdc   : > { %v280_v7 = vmul.f32 1.442695, %v273_v5  ;;  %v284_v8 = vmul.f32 1.442695, %v275_v6 }
  0xdd   : > { %v256_v9 = vpop.xlane.xlu0 %255  ;;  %v262_v10 = vpop.xlane.xlu1 %261 }
  0xde   : > { %1186 = vpow2.f32 %v280_v7  ;;  %v274_v11 = vsub.f32 %v244_v53, %v256_v9  ;;  %v276_v12 = vsub.f32 %v246_v55, %v262_v10 }
  0xdf   : > { %1188 = vpow2.f32 %v284_v8 }
  0xe0   : > { %v282_v13 = vmul.f32 1.442695, %v274_v11  ;;  %v286_v14 = vmul.f32 1.442695, %v276_v12 }
  0xe1   : > { %v268_v15 = vpop.xlane.xlu1 %267  ;;  %v265_v16 = vpop.xlane.xlu0 %264 }
  0xe2   : > { %1190 = vpow2.f32 %v282_v13  ;;  %v278_v17 = vsub.f32 %v248_v61, %v268_v15  ;;  %v277_v43 = vsub.f32 %v1396_v62, %v265_v16 }
  0xe3   : > { %1192 = vpow2.f32 %v286_v14 }
  0xe4   : > { %v290_v18 = vmul.f32 1.442695, %v278_v17  ;;  %v288_v45 = vmul.f32 1.442695, %v277_v43 }
  0xe5   : > { %v272_v19 = vpop.xlane.xlu0 %271 }
  0xe6   : > { %1194 = vpow2.f32 %v290_v18  ;;  %v279_v20 = vsub.f32 %v249_v1, %v272_v19 }
  0xe8   : > { %v1402_v21 = vpop.eup %1186  ;;  %v292_v22 = vmul.f32 1.442695, %v279_v20 }
  0xe9   : > { %v1404_v23 = vpop.eup %1188  ;;  %v294_v24 = vsel %vm250_vm0, %v1402_v21, 0.0 }
  0xea   : > { %1196 = vpow2.f32 %v292_v22  ;;  %295 = vadd.xlane.f32.xlu1 %v294_v24  ;;  %v300_v25 = vsel %vm250_vm0, %v1404_v23, 0.0 }
  0xeb   : > { %1198 = vpow2.f32 %v288_v45 }
  0xec   : > { %v1411_v26 = vpop.eup %1190 }
  0xed   : > { %v1413_v27 = vpop.eup %1192  ;;  %v297_v28 = vsel %vm250_vm0, %v1411_v26, 0.0 }
  0xee   : > { %301 = vadd.xlane.f32.xlu1 %v300_v25  ;;  %298 = vadd.xlane.f32.xlu0 %v297_v28  ;;  %v303_v29 = vsel %vm250_vm0, %v1413_v27, 0.0 }
  0xf0   : > { %v1422_v30 = vpop.eup %1194 }
  0xf1   : > { %v309_v31 = vsel %vm250_vm0, %v1422_v30, 0.0 }
  0xf2   : > { %304 = vadd.xlane.f32.xlu0 %v303_v29 }
  0xf4   : > { %v1427_v32 = vpop.eup %1196 }
  0xf5   : > { %v312_v33 = vsel %vm269_vm1, %v1427_v32, 0.0  ;;  %v1199_v46 = vpop.eup %1198 }
  0xf6   : > { %310 = vadd.xlane.f32.xlu0 %v309_v31  ;;  %v306_v47 = vsel %vm250_vm0, %v1199_v46, 0.0 }
  0xfa   : > { %313 = vadd.xlane.f32.xlu0 %v312_v33 }
  0xff   : > { %1168 = vrot.lane.b32.xlu1 %v1167_v36, %s1281_s24 }
 0x110   : > { %1173 = vrot.lane.b32.xlu0 %v1172_v44, %s1286_s25 }
 0x123   : > { %307 = vadd.xlane.f32.xlu1 %v306_v47 }
 0x134   : > { %1178 = vrot.lane.b32.xlu1 %v1177_v49, %s1287_s26 }
 0x177   : > { %v296_v50 = vpop.xlane.xlu1 %295 }
 0x178   : > { %1200 = vrcp.f32 %v296_v50 }
 0x17b   : > { %v302_v51 = vpop.xlane.xlu1 %301  ;;  %v299_v52 = vpop.xlane.xlu0 %298 }
 0x17c   : > { %1202 = vrcp.f32 %v299_v52 }
 0x17d   : > { %1204 = vrcp.f32 %v302_v51 }
 0x17f   : > { %v1169_v53 = vpop.permute.xlu1 %1168  ;;  %v305_v54 = vpop.xlane.xlu0 %304 }
 0x180   : > { %v1171_v55 = vunpack.i.h.bf16 %v1169_v53  ;;  %v1170_v56 = vunpack.i.l.bf16 %v1169_v53  ;;  %1206 = vrcp.f32 %v305_v54 }
 0x182   : > { %v1201_v57 = vpop.eup %1200  ;;  %v1109_v58 = vpack.c.bf16 %v1171_v55, %v1170_v56 }
 0x183   : > { %v311_v59 = vpop.xlane.xlu0 %310  ;;  %v316_v60 = vmul.f32 %v1201_v57, %v1402_v21 }
 0x184   : > { %1111 = vmatpush3.bf16.msk.msra.mxu1 %vm1439_vm4, %v1109_v58 }
 0x185   : > { %1009 = vmatmul.mubr.msk.f32.vlgmr.msra.gmra.mrb[0].mxu0 %vm250_vm0, %v316_v60  ;;  %1116 = vmatprep.subr.bf16.mxu1 %v1282_v39 }
 0x186   : > { %1011 = vmatprep.mubr.msk.f32.mxu0 %vm1284_vm5, %v1285_v41  ;;  %v1203_v61 = vpop.eup %1202 }
 0x187   : > { %1034 = vmatmul.mubr.msk.f32.vlgmr.msra.gmra.mrb[0].mxu1 %vm250_vm0, %v316_v60  ;;  %v314_v62 = vpop.xlane.xlu0 %313  ;;  %v318_v63 = vmul.f32 %v1203_v61, %v1411_v26  ;;  %v1205_v0 = vpop.eup %1204 }
 0x188   : > { %1036 = vmatprep.mubr.msk.f32.mxu1 %vm1284_vm5, %v1285_v41  ;;  %v320_v2 = vmul.f32 %v1205_v0, %v1404_v23 }
 0x189   : > { %1012 = vmatmul.mubr.msk.f32.gmra.mrb[2].mxu0 %vm250_vm0, %v318_v63 }
 0x18a   : > { %1014 = vmatprep.mubr.msk.f32.mxu0 %vm1284_vm5, %v1285_v41  ;;  %v1207_v5 = vpop.eup %1206 }
 0x18b   : > { %1037 = vmatmul.mubr.msk.f32.gmra.mrb[2].mxu1 %vm250_vm0, %v318_v63  ;;  %v1174_v1 = vpop.permute.xlu0 %1173  ;;  %v322_v7 = vmul.f32 %v1207_v5, %v1413_v27 }
 0x18c   : > { %1039 = vmatprep.mubr.msk.f32.mxu1 %vm1284_vm5, %v1285_v41  ;;  %v1176_v3 = vunpack.i.h.bf16 %v1174_v1  ;;  %v1175_v4 = vunpack.i.l.bf16 %v1174_v1 }
 0x18d   : > { %1015 = vmatmul.mubr.msk.f32.gmra.mrb[4].mxu0 %vm250_vm0, %v320_v2 }
 0x18e   : > { %v1113_v6 = vpack.c.bf16 %v1176_v3, %v1175_v4  ;;  %1017 = vmatprep.mubr.msk.f32.mxu0 %vm1284_vm5, %v1285_v41 }
 0x18f   : > { %1040 = vmatmul.mubr.msk.f32.gmra.mrb[4].mxu1 %vm250_vm0, %v320_v2 }
 0x190   : > { %1042 = vmatprep.mubr.msk.f32.mxu1 %vm1284_vm5, %v1285_v41  ;;  %1115 = vmatpush3.bf16.msk.msra.mxu0 %vm1439_vm4, %v1113_v6 }
 0x191   : > { %1018 = vmatmul.mubr.msk.f32.gmra.mrb[6].mxu0 %vm250_vm0, %v322_v7 }
 0x192   : > { %1020 = vmatprep.mubr.msk.f32.mxu0 %vm1284_vm5, %v1285_v41 }
 0x193   : > { %1043 = vmatmul.mubr.msk.f32.gmra.mrb[6].mxu1 %vm250_vm0, %v322_v7 }
 0x194   : > { %1045 = vmatprep.mubr.msk.f32.mxu1 %vm1284_vm5, %v1285_v41 }
 0x1b0   : > { %v308_v8 = vpop.xlane.xlu1 %307 }
 0x1b1   : > { %1208 = vrcp.f32 %v308_v8 }
 0x1b2   : > { %1210 = vrcp.f32 %v311_v59 }
 0x1b3   : > { %1212 = vrcp.f32 %v314_v62 }
 0x1b4   : > { %v1179_v9 = vpop.permute.xlu1 %1178 }
 0x1b5   : > { %v1181_v10 = vunpack.i.h.bf16 %v1179_v9  ;;  %v1180_v11 = vunpack.i.l.bf16 %v1179_v9 }
 0x1b7   : > { %v1117_v12 = vpack.c.bf16 %v1181_v10, %v1180_v11 }
 0x1b9   : > { %1119 = vmatpush3.bf16.msk.msra.mxu1 %vm1439_vm4, %v1117_v12 }
 0x1bb   : > { %v1209_v13 = vpop.eup %1208 }
 0x1bc   : > { %v324_v14 = vmul.f32 %v1209_v13, %v1199_v46  ;;  %v1211_v15 = vpop.eup %1210 }
 0x1bd   : > { %v326_v16 = vmul.f32 %v1211_v15, %v1422_v30  ;;  %v1213_v17 = vpop.eup %1212 }
 0x1be   : > { %1021 = vmatmul.mubr.msk.f32.gmra.mrb[8].mxu0 %vm250_vm0, %v324_v14  ;;  %1046 = vmatmul.mubr.msk.f32.gmra.mrb[8].mxu1 %vm250_vm0, %v324_v14  ;;  %v328_v18 = vmul.f32 %v1213_v17, %v1427_v32 }
 0x1bf   : > { %1023 = vmatprep.mubr.msk.f32.mxu0 %vm1284_vm5, %v1285_v41  ;;  %1048 = vmatprep.mubr.msk.f32.mxu1 %vm1284_vm5, %v1285_v41 }
 0x1c2   : > { %1024 = vmatmul.mubr.msk.f32.gmra.mrb[10].mxu0 %vm250_vm0, %v326_v16  ;;  %1049 = vmatmul.mubr.msk.f32.gmra.mrb[10].mxu1 %vm250_vm0, %v326_v16 }
 0x1c3   : > { %1026 = vmatprep.mubr.msk.f32.mxu0 %vm1284_vm5, %v1285_v41  ;;  %1051 = vmatprep.mubr.msk.f32.mxu1 %vm1284_vm5, %v1285_v41 }
 0x1c6   : > { %1027 = vmatmul.mubr.msk.f32.gmra.mrb[12].mxu0 %vm250_vm0, %v328_v18  ;;  %1052 = vmatmul.mubr.msk.f32.gmra.mrb[12].mxu1 %vm250_vm0, %v328_v18 }
 0x1c7   : > { %1058 = vmatprep.mubr.msk.f32.mxu0 %vm1284_vm5, %v1285_v41  ;;  %1083 = vmatprep.mubr.msk.f32.mxu1 %vm1284_vm5, %v1285_v41 }
 0x1ca   : > { %1059 = vmatmul.mubr.msk.f32.vlgmr.msra.gmra.mrb[14].mxu0 %vm250_vm0, %v316_v60  ;;  %1084 = vmatmul.mubr.msk.f32.vlgmr.msra.gmra.mrb[14].mxu1 %vm250_vm0, %v316_v60 }
 0x1cb   : > { %1061 = vmatprep.mubr.msk.f32.mxu0 %vm1284_vm5, %v1285_v41  ;;  %1086 = vmatprep.mubr.msk.f32.mxu1 %vm1284_vm5, %v1285_v41 }
 0x1ce   : > { %1062 = vmatmul.mubr.msk.f32.gmra.mrb[16].mxu0 %vm250_vm0, %v318_v63  ;;  %1087 = vmatmul.mubr.msk.f32.gmra.mrb[16].mxu1 %vm250_vm0, %v318_v63 }
 0x1cf   : > { %1064 = vmatprep.mubr.msk.f32.mxu0 %vm1284_vm5, %v1285_v41  ;;  %1089 = vmatprep.mubr.msk.f32.mxu1 %vm1284_vm5, %v1285_v41 }
 0x1d2   : > { %1065 = vmatmul.mubr.msk.f32.gmra.mrb[18].mxu0 %vm250_vm0, %v320_v2  ;;  %1090 = vmatmul.mubr.msk.f32.gmra.mrb[18].mxu1 %vm250_vm0, %v320_v2 }
 0x1d3   : > { %1067 = vmatprep.mubr.msk.f32.mxu0 %vm1284_vm5, %v1285_v41  ;;  %1092 = vmatprep.mubr.msk.f32.mxu1 %vm1284_vm5, %v1285_v41 }
 0x1d6   : > { %1068 = vmatmul.mubr.msk.f32.gmra.mrb[20].mxu0 %vm250_vm0, %v322_v7  ;;  %1093 = vmatmul.mubr.msk.f32.gmra.mrb[20].mxu1 %vm250_vm0, %v322_v7 }
 0x1d7   : > { %1070 = vmatprep.mubr.msk.f32.mxu0 %vm1284_vm5, %v1285_v41  ;;  %1095 = vmatprep.mubr.msk.f32.mxu1 %vm1284_vm5, %v1285_v41 }
 0x1da   : > { %1071 = vmatmul.mubr.msk.f32.gmra.mrb[22].mxu0 %vm250_vm0, %v324_v14  ;;  %1096 = vmatmul.mubr.msk.f32.gmra.mrb[22].mxu1 %vm250_vm0, %v324_v14 }
 0x1db   : > { %1073 = vmatprep.mubr.msk.f32.mxu0 %vm1284_vm5, %v1285_v41  ;;  %1098 = vmatprep.mubr.msk.f32.mxu1 %vm1284_vm5, %v1285_v41 }
 0x1de   : > { %1074 = vmatmul.mubr.msk.f32.gmra.mrb[24].mxu0 %vm250_vm0, %v326_v16  ;;  %1099 = vmatmul.mubr.msk.f32.gmra.mrb[24].mxu1 %vm250_vm0, %v326_v16 }
 0x1df   : > { %1076 = vmatprep.mubr.msk.f32.mxu0 %vm1284_vm5, %v1285_v41  ;;  %1101 = vmatprep.mubr.msk.f32.mxu1 %vm1284_vm5, %v1285_v41 }
 0x1e2   : > { %1077 = vmatmul.mubr.msk.f32.gmra.mrb[26].mxu0 %vm250_vm0, %v328_v18  ;;  %1102 = vmatmul.mubr.msk.f32.gmra.mrb[26].mxu1 %vm250_vm0, %v328_v18 }
 0x258   : > { %v422_v19 = vpop.f32.mrb[0].mxu0 }
 0x259   : > { %457 = vst.msk [vmem:[%s1549_s30] sm:$0xff] %vm456_vm6, %v422_v19  ;;  %v1010_v20 = vpop.f32.mrb[1].mxu0 }
 0x25a   : > { %v542_v21 = vpop.f32.mrb[0].mxu1 }
 0x25b   : > { %928 = vst.msk [vmem:[%s1549_s30 + $0x38] sm:$0xff] %vm456_vm6, %v542_v21  ;;  %v1035_v22 = vpop.f32.mrb[1].mxu1 }
 0x25c   : > { %v427_v23 = vpop.f32.mrb[2].mxu0 }
 0x25d   : > { %458 = vst.msk [vmem:[%s1549_s30 + $0x8] sm:$0xff] %vm456_vm6, %v427_v23  ;;  %v1013_v24 = vpop.f32.mrb[3].mxu0 }
 0x25e   : > { %v547_v25 = vpop.f32.mrb[2].mxu1 }
 0x25f   : > { %929 = vst.msk [vmem:[%s1549_s30 + $0x40] sm:$0xff] %vm456_vm6, %v547_v25  ;;  %v1038_v26 = vpop.f32.mrb[3].mxu1 }
 0x260   : > { %v432_v27 = vpop.f32.mrb[4].mxu0 }
 0x261   : > { %459 = vst.msk [vmem:[%s1549_s30 + $0x10] sm:$0xff] %vm456_vm6, %v432_v27  ;;  %v1016_v28 = vpop.f32.mrb[5].mxu0 }
 0x262   : > { %v552_v29 = vpop.f32.mrb[4].mxu1 }
 0x263   : > { %930 = vst.msk [vmem:[%s1549_s30 + $0x48] sm:$0xff] %vm456_vm6, %v552_v29  ;;  %v1041_v30 = vpop.f32.mrb[5].mxu1 }
 0x264   : > { %v437_v31 = vpop.f32.mrb[6].mxu0 }
 0x265   : > { %460 = vst.msk [vmem:[%s1549_s30 + $0x18] sm:$0xff] %vm456_vm6, %v437_v31  ;;  %v1019_v32 = vpop.f32.mrb[7].mxu0 }
 0x266   : > { %v557_v33 = vpop.f32.mrb[6].mxu1 }
 0x267   : > { %931 = vst.msk [vmem:[%s1549_s30 + $0x50] sm:$0xff] %vm456_vm6, %v557_v33  ;;  %v1044_v34 = vpop.f32.mrb[7].mxu1 }
 0x291   : > { %v442_v35 = vpop.f32.mrb[8].mxu0  ;;  %v562_v36 = vpop.f32.mrb[8].mxu1 }
 0x292   : > { %461 = vst.msk [vmem:[%s1549_s30 + $0x20] sm:$0xff] %vm456_vm6, %v442_v35  ;;  %932 = vst.msk [vmem:[%s1549_s30 + $0x58] sm:$0xff] %vm456_vm6, %v562_v36  ;;  %v1022_v37 = vpop.f32.mrb[9].mxu0  ;;  %v1047_v38 = vpop.f32.mrb[9].mxu1 }
 0x295   : > { %v447_v39 = vpop.f32.mrb[10].mxu0  ;;  %v567_v40 = vpop.f32.mrb[10].mxu1 }
 0x296   : > { %462 = vst.msk [vmem:[%s1549_s30 + $0x28] sm:$0xff] %vm456_vm6, %v447_v39  ;;  %933 = vst.msk [vmem:[%s1549_s30 + $0x60] sm:$0xff] %vm456_vm6, %v567_v40  ;;  %v1025_v41 = vpop.f32.mrb[11].mxu0  ;;  %v1050_v42 = vpop.f32.mrb[11].mxu1 }
 0x299   : > { %v452_v43 = vpop.f32.mrb[12].mxu0  ;;  %v572_v44 = vpop.f32.mrb[12].mxu1 }
 0x29a   : > { %464 = vst.msk [vmem:[%s1549_s30 + $0x30] sm:$0x7] %vm463_vm7, %v452_v43  ;;  %934 = vst.msk [vmem:[%s1549_s30 + $0x68] sm:$0x7] %vm463_vm7, %v572_v44  ;;  %v1028_v45 = vpop.f32.mrb[13].mxu0  ;;  %v1053_v46 = vpop.f32.mrb[13].mxu1 }
 0x29d   : > { %v661_v47 = vpop.f32.mrb[14].mxu0  ;;  %v780_v48 = vpop.f32.mrb[14].mxu1 }
 0x29e   : > { %943 = vst.msk [vmem:[%s1549_s30 + $0x70] sm:$0xff] %vm456_vm6, %v661_v47  ;;  %958 = vst.msk [vmem:[%s1549_s30 + $0xa8] sm:$0xff] %vm456_vm6, %v780_v48  ;;  %v1060_v49 = vpop.f32.mrb[15].mxu0  ;;  %v1085_v50 = vpop.f32.mrb[15].mxu1 }
 0x2a1   : > { %v666_v51 = vpop.f32.mrb[16].mxu0  ;;  %v785_v52 = vpop.f32.mrb[16].mxu1 }
 0x2a2   : > { %944 = vst.msk [vmem:[%s1549_s30 + $0x78] sm:$0xff] %vm456_vm6, %v666_v51  ;;  %959 = vst.msk [vmem:[%s1549_s30 + $0xb0] sm:$0xff] %vm456_vm6, %v785_v52  ;;  %v1063_v53 = vpop.f32.mrb[17].mxu0  ;;  %v1088_v54 = vpop.f32.mrb[17].mxu1 }
 0x2a5   : > { %v671_v55 = vpop.f32.mrb[18].mxu0  ;;  %v790_v56 = vpop.f32.mrb[18].mxu1 }
 0x2a6   : > { %945 = vst.msk [vmem:[%s1549_s30 + $0x80] sm:$0xff] %vm456_vm6, %v671_v55  ;;  %960 = vst.msk [vmem:[%s1549_s30 + $0xb8] sm:$0xff] %vm456_vm6, %v790_v56  ;;  %v1066_v57 = vpop.f32.mrb[19].mxu0  ;;  %v1091_v58 = vpop.f32.mrb[19].mxu1 }
 0x2a9   : > { %v676_v59 = vpop.f32.mrb[20].mxu0  ;;  %v795_v60 = vpop.f32.mrb[20].mxu1 }
 0x2aa   : > { %946 = vst.msk [vmem:[%s1549_s30 + $0x88] sm:$0xff] %vm456_vm6, %v676_v59  ;;  %961 = vst.msk [vmem:[%s1549_s30 + $0xc0] sm:$0xff] %vm456_vm6, %v795_v60  ;;  %v1069_v61 = vpop.f32.mrb[21].mxu0  ;;  %v1094_v62 = vpop.f32.mrb[21].mxu1 }
 0x2ad   : > { %v681_v63 = vpop.f32.mrb[22].mxu0  ;;  %v800_v0 = vpop.f32.mrb[22].mxu1 }
 0x2ae   : > { %947 = vst.msk [vmem:[%s1549_s30 + $0x90] sm:$0xff] %vm456_vm6, %v681_v63  ;;  %962 = vst.msk [vmem:[%s1549_s30 + $0xc8] sm:$0xff] %vm456_vm6, %v800_v0  ;;  %v1072_v1 = vpop.f32.mrb[23].mxu0  ;;  %v1097_v2 = vpop.f32.mrb[23].mxu1 }
 0x2b1   : > { %v686_v3 = vpop.f32.mrb[24].mxu0  ;;  %v805_v4 = vpop.f32.mrb[24].mxu1 }
 0x2b2   : > { %948 = vst.msk [vmem:[%s1549_s30 + $0x98] sm:$0xff] %vm456_vm6, %v686_v3  ;;  %963 = vst.msk [vmem:[%s1549_s30 + $0xd0] sm:$0xff] %vm456_vm6, %v805_v4  ;;  %v1075_v5 = vpop.f32.mrb[25].mxu0  ;;  %v1100_v6 = vpop.f32.mrb[25].mxu1 }
 0x2b5   : > { %v691_v7 = vpop.f32.mrb[26].mxu0  ;;  %v810_v8 = vpop.f32.mrb[26].mxu1 }
 0x2b6   : > { %949 = vst.msk [vmem:[%s1549_s30 + $0xa0] sm:$0x7] %vm463_vm7, %v691_v7  ;;  %964 = vst.msk [vmem:[%s1549_s30 + $0xd8] sm:$0x7] %vm463_vm7, %v810_v8  ;;  %v1078_v9 = vpop.f32.mrb[27].mxu0  ;;  %v1103_v10 = vpop.f32.mrb[27].mxu1 }
 0x2b7 PF: > { %p12_p8 = scmp.ge.s32.totalorder %s1325_s14, 4   ;;  %s1629_s9 = smov %s1270_s10 }
 0x2b8   : > { %s1630_s10 = smov %s1274_s11  ;;  %s1631_s11 = smov %s1335_s17 }
 0x2b9   : > { %s1632_s12 = smov %s1325_s14  ;;  %14 = sbr.rel (!%p12_p8) target bundleno = 3 (0x3), region = 74 }
 0x2c0   :  { %843 = vsyncpa [#allocation3], 1 }
 0x2c1   :  { %845 = vsyncpa [#allocation3 + $0x1], 1 }

// kernel: gaussian_range_embedding_forward.3
= control target key start
LH: loop header
LB: loop body
LE: loop exit
PB: predicated region body
PF: predicated region fallthrough
CT: control target
= control target key end

     0   :  { %s4684_s21 = smov 0   ;;  %s4686_s22 = smov 0   ;;  %s6783_s0 = inlined_call_operand.vmem [shape: f32[4,4,153,8], index: 0, kind: input, shape index: {}]   ;;  %s6784_s1 = inlined_call_operand.vmem [shape: f32[2,8,8], index: 1, kind: input, shape index: {}]   ;;  %s6785_s2 = inlined_call_operand.vmem [shape: f32[2,3,8], index: 2, kind: input, shape index: {}]   ;;  %s6786_s3 = inlined_call_operand.vmem [shape: f32[2,51,153], index: 3, kind: input, shape index: {}]   ;;  %s6787_s4 = inlined_call_operand.vmem [shape: f32[2,51,3], index: 4, kind: input, shape index: {}]   ;;  %s6788_s5 = inlined_call_operand.vmem [shape: f32[2,4,51,8], index: 5, kind: input, shape index: {}]   ;;  %s6789_s6 = inlined_call_operand.vmem [shape: f32[4,4,51,8], index: 6, kind: output, shape index: {}]  }
   0x1   :  { %s4688_s23 = smov 0   ;;  %s4690_s24 = smov 0  }
   0x2   :  { %s4692_s25 = smov 0  }
   0x3 LB: > { %s25_s26 = sadd.s32 1, %s4634_s23  ;;  %s28_s27 = sadd.s32 1, %s4638_s24  ;;  %s4642_s25 = sphi %s4692_s25, %s16_s25   ;;  %s4638_s24 = sphi %s4690_s24, %s7019_s24   ;;  %s4634_s23 = sphi %s4688_s23, %s7018_s23   ;;  %s4630_s22 = sphi %s4686_s22, %s7017_s22   ;;  %s4626_s21 = sphi %s4684_s21, %s7016_s21  }
   0x4   : > { %p26_p0 = scmp.ge.s32.totalorder %s25_s26, 2  ;;  %p3780_p1 = scmp.ge.s32.totalorder %s4642_s25, 1 }
   0x5   : > { %p284_p2 = scmp.lt.s32.totalorder %s4642_s25, 5 }
   0x6   : > { %s7021_s26 = smov (%p26_p0, %s25_s26), 0  ;;  %s7023_s27 = smov (!%p26_p0, %s28_s27), %s4638_s24 }
   0x7   : > { %p285_p3 = pnand %p3780_p1, %p284_p2  ;;  %p30_p4 = scmp.ge.s32.totalorder %s7023_s27, 2 }
   0x9   : > { %s7025_s27 = smov (%p30_p4, %s7023_s27), 0  ;;  %288 = sbr.rel (%p285_p3) target bundleno = 1053 (0x41d), region = 44 }
  0x10   : > { %p350_p5 = scmp.lt.s32.totalorder %s4630_s22, 1  ;;  %s3781_s28 = sshll.u32 %s4630_s22, 1  ;;  %vm431_vm0 = vcmask 64512   ;;  %vm714_vm1 = vcmask 57344   ;;  %vm1022_vm2 = vcmask 203776   ;;  %vm1044_vm3 = vcmask 1040384  }
  0x11   : > { %s342_s29 = sadd.s32 %s4626_s21, %s3781_s28  ;;  %vm4646_vm4 = vmmov 1   ;;  %vm1159_vm6 = vcmask 59392  }
  0x12   : > { %s7027_s22 = smov (!%p350_p5, %s4630_s22), 1  ;;  %p343_p6 = scmp.lt.s32.totalorder %s342_s29, 3  ;;  %vm5913_vm5 = vmpackc.low %vm1044_vm3, %vm4646_vm4 }
  0x13   : > { %s3783_s30 = sshll.u32 %s7027_s22, 3  ;;  %s3784_s14 = sshll.u32 %s7027_s22, 2 }
  0x14   : > { %s353_s9 = scalar_lea.vmem %s6784_s1, %s3783_s30  ;;  %s7029_s29 = smov (!%p343_p6, %s342_s29), 3 }
  0x15   : > { %v4720_v0 = vld [vmem:[%s353_s9] sm:$0xff]  ;;  %s4365_s10 = smul.u32 640, %s7029_s29  ;;  %s4902_s17 = scalar_lea.vmem %s6785_s2, %s3784_s14 }
  0x16   : > { %4093 = vmatprep.subr.mxu0 %v4720_v0  ;;  %s4366_s18 = smul.u32 112, %s7027_s22 }
  0x17   : > { %4094 = vmatpush3.msra.mxu0 %v4720_v0  ;;  %s4731_s13 = scalar_lea.vmem %s6783_s0, %s4365_s10  ;;  %s4367_s28 = smul.u32 56, %s7027_s22 }
  0x18   : > { %4125 = vmatprep.subr.mxu0 %v4720_v0  ;;  %v407_v1 = vld [vmem:[%s4731_s13] sm:$0xff]  ;;  %v408_v2 = vld [vmem:[%s4731_s13 + $0x8] sm:$0xff]  ;;  %v409_v3 = vld [vmem:[%s4731_s13 + $0x10] sm:$0xff]  ;;  %s5563_s21 = scalar_lea.vmem %s6786_s3, %s4366_s18  ;;  %s4368_s9 = smul.u32 224, %s7027_s22 }
  0x19   : > { %4095 = vmatprep.mubr.msk.f32.mxu0 %vm431_vm0, %v407_v1  ;;  %v410_v4 = vld [vmem:[%s4731_s13 + $0x18] sm:$0xff]  ;;  %v411_v5 = vld [vmem:[%s4731_s13 + $0x20] sm:$0xff]  ;;  %v412_v6 = vld [vmem:[%s4731_s13 + $0x28] sm:$0xff]  ;;  %s5827_s8 = scalar_lea.vmem %s6787_s4, %s4367_s28  ;;  %s4369_s12 = smul.u32 224, %s7029_s29 }
  0x1a   : > { %4096 = vmatmul.mubr.msk.f32.vlgmr.msra.gmra.mrb[0].mxu0 %vm431_vm0, %v408_v2  ;;  %v413_v7 = vld [vmem:[%s4731_s13 + $0x30] sm:$0xff]  ;;  %v414_v8 = vld [vmem:[%s4731_s13 + $0x38] sm:$0xff]  ;;  %v415_v9 = vld [vmem:[%s4731_s13 + $0x40] sm:$0xff]  ;;  %s6451_s11 = scalar_lea.vmem %s6788_s5, %s4368_s9 }
  0x1b   : > { %4098 = vmatprep.mubr.msk.f32.mxu0 %vm431_vm0, %v409_v3  ;;  %4126 = vmatpush3.msra.mxu0 %v4720_v0  ;;  %v416_v10 = vld [vmem:[%s4731_s13 + $0x48] sm:$0xff]  ;;  %v417_v11 = vld [vmem:[%s4731_s13 + $0x50] sm:$0xff]  ;;  %v418_v12 = vld [vmem:[%s4731_s13 + $0x58] sm:$0xff]  ;;  %s6482_s14 = scalar_lea.vmem %s6789_s6, %s4369_s12 }
  0x1c   : > { %4157 = vmatprep.subr.mxu0 %v4720_v0  ;;  %v419_v13 = vld [vmem:[%s4731_s13 + $0x60] sm:$0xff]  ;;  %v420_v14 = vld [vmem:[%s4731_s13 + $0x68] sm:$0xff]  ;;  %v421_v15 = vld [vmem:[%s4731_s13 + $0x70] sm:$0xff] }
  0x1d   : > { %v422_v16 = vld [vmem:[%s4731_s13 + $0x78] sm:$0xff]  ;;  %v423_v17 = vld [vmem:[%s4731_s13 + $0x80] sm:$0xff]  ;;  %v424_v18 = vld [vmem:[%s4731_s13 + $0x88] sm:$0xff] }
  0x1e   : > { %4099 = vmatmul.mubr.msk.f32.gmra.mrb[2].mxu0 %vm431_vm0, %v410_v4  ;;  %v425_v19 = vld [vmem:[%s4731_s13 + $0x90] sm:$0xff]  ;;  %v426_v20 = vld [vmem:[%s4731_s13 + $0x98] sm:$0x1]  ;;  %v3821_v21 = vld [vmem:[%s4731_s13 + $0xa0] sm:$0xff] }
  0x1f   : > { %4101 = vmatprep.mubr.msk.f32.mxu0 %vm431_vm0, %v411_v5  ;;  %v3822_v22 = vld [vmem:[%s4731_s13 + $0xa8] sm:$0xff]  ;;  %v3823_v23 = vld [vmem:[%s4731_s13 + $0xb0] sm:$0xff]  ;;  %v3824_v24 = vld [vmem:[%s4731_s13 + $0xb8] sm:$0xff] }
  0x20   : > { %v3825_v25 = vld [vmem:[%s4731_s13 + $0xc0] sm:$0xff]  ;;  %v3826_v26 = vld [vmem:[%s4731_s13 + $0xc8] sm:$0xff]  ;;  %v3827_v27 = vld [vmem:[%s4731_s13 + $0xd0] sm:$0xff] }
  0x21   : > { %v3828_v28 = vld [vmem:[%s4731_s13 + $0xd8] sm:$0xff]  ;;  %v3829_v29 = vld [vmem:[%s4731_s13 + $0xe0] sm:$0xff]  ;;  %v3830_v30 = vld [vmem:[%s4731_s13 + $0xe8] sm:$0xff] }
  0x22   : > { %4102 = vmatmul.mubr.msk.f32.gmra.mrb[4].mxu0 %vm431_vm0, %v412_v6  ;;  %v3831_v31 = vld [vmem:[%s4731_s13 + $0xf0] sm:$0xff]  ;;  %v3832_v32 = vld [vmem:[%s4731_s13 + $0xf8] sm:$0xff]  ;;  %v3833_v33 = vld [vmem:[%s4731_s13 + $0x100] sm:$0xff] }
  0x23   : > { %4104 = vmatprep.mubr.msk.f32.mxu0 %vm431_vm0, %v413_v7  ;;  %v3834_v34 = vld [vmem:[%s4731_s13 + $0x108] sm:$0xff]  ;;  %v3835_v35 = vld [vmem:[%s4731_s13 + $0x110] sm:$0xff]  ;;  %v3836_v36 = vld [vmem:[%s4731_s13 + $0x118] sm:$0xff] }
  0x24   : > { %v3837_v37 = vld [vmem:[%s4731_s13 + $0x120] sm:$0xff]  ;;  %v3838_v38 = vld [vmem:[%s4731_s13 + $0x128] sm:$0xff]  ;;  %v3839_v39 = vld [vmem:[%s4731_s13 + $0x130] sm:$0xff] }
  0x25   : > { %v3840_v40 = vld [vmem:[%s4731_s13 + $0x138] sm:$0x1]  ;;  %v3883_v41 = vld [vmem:[%s4731_s13 + $0x140] sm:$0xff]  ;;  %v3884_v42 = vld [vmem:[%s4731_s13 + $0x148] sm:$0xff] }
  0x26   : > { %4105 = vmatmul.mubr.msk.f32.gmra.mrb[6].mxu0 %vm431_vm0, %v414_v8  ;;  %v3885_v43 = vld [vmem:[%s4731_s13 + $0x150] sm:$0xff]  ;;  %v3886_v44 = vld [vmem:[%s4731_s13 + $0x158] sm:$0xff]  ;;  %v3887_v45 = vld [vmem:[%s4731_s13 + $0x160] sm:$0xff] }
  0x27   : > { %4107 = vmatprep.mubr.msk.f32.mxu0 %vm431_vm0, %v415_v9  ;;  %v3888_v46 = vld [vmem:[%s4731_s13 + $0x168] sm:$0xff]  ;;  %v3889_v47 = vld [vmem:[%s4731_s13 + $0x170] sm:$0xff]  ;;  %v3890_v48 = vld [vmem:[%s4731_s13 + $0x178] sm:$0xff] }
  0x28   : > { %v3891_v49 = vld [vmem:[%s4731_s13 + $0x180] sm:$0xff]  ;;  %v3892_v50 = vld [vmem:[%s4731_s13 + $0x188] sm:$0xff]  ;;  %v3893_v51 = vld [vmem:[%s4731_s13 + $0x190] sm:$0xff] }
  0x29   : > { %v3894_v52 = vld [vmem:[%s4731_s13 + $0x198] sm:$0xff]  ;;  %v3895_v53 = vld [vmem:[%s4731_s13 + $0x1a0] sm:$0xff]  ;;  %v3896_v54 = vld [vmem:[%s4731_s13 + $0x1a8] sm:$0xff] }
  0x2a   : > { %4108 = vmatmul.mubr.msk.f32.gmra.mrb[8].mxu0 %vm431_vm0, %v416_v10  ;;  %v3897_v55 = vld [vmem:[%s4731_s13 + $0x1b0] sm:$0xff]  ;;  %v3898_v56 = vld [vmem:[%s4731_s13 + $0x1b8] sm:$0xff]  ;;  %v3899_v57 = vld [vmem:[%s4731_s13 + $0x1c0] sm:$0xff] }
  0x2b   : > { %4110 = vmatprep.mubr.msk.f32.mxu0 %vm431_vm0, %v417_v11  ;;  %v3900_v58 = vld [vmem:[%s4731_s13 + $0x1c8] sm:$0xff]  ;;  %v3901_v59 = vld [vmem:[%s4731_s13 + $0x1d0] sm:$0xff]  ;;  %v3902_v60 = vld [vmem:[%s4731_s13 + $0x1d8] sm:$0x1] }
  0x2c   : > { %v3945_v61 = vld [vmem:[%s4731_s13 + $0x1e0] sm:$0xff]  ;;  %v3946_v62 = vld [vmem:[%s4731_s13 + $0x1e8] sm:$0xff]  ;;  %v3947_v63 = vld [vmem:[%s4731_s13 + $0x1f0] sm:$0xff] }
  0x2d   : > { %v3949_v1 = vld [vmem:[%s4731_s13 + $0x200] sm:$0xff]  ;;  %v3950_v2 = vld [vmem:[%s4731_s13 + $0x208] sm:$0xff]  ;;  %v3951_v3 = vld [vmem:[%s4731_s13 + $0x210] sm:$0xff] }
  0x2e   : > { %4111 = vmatmul.mubr.msk.f32.gmra.mrb[10].mxu0 %vm431_vm0, %v418_v12  ;;  %v3952_v4 = vld [vmem:[%s4731_s13 + $0x218] sm:$0xff]  ;;  %v3953_v5 = vld [vmem:[%s4731_s13 + $0x220] sm:$0xff]  ;;  %v3954_v6 = vld [vmem:[%s4731_s13 + $0x228] sm:$0xff] }
  0x2f   : > { %4113 = vmatprep.mubr.msk.f32.mxu0 %vm431_vm0, %v419_v13  ;;  %v3955_v7 = vld [vmem:[%s4731_s13 + $0x230] sm:$0xff]  ;;  %v3956_v8 = vld [vmem:[%s4731_s13 + $0x238] sm:$0xff]  ;;  %v3957_v9 = vld [vmem:[%s4731_s13 + $0x240] sm:$0xff] }
  0x30   : > { %v3958_v10 = vld [vmem:[%s4731_s13 + $0x248] sm:$0xff]  ;;  %v3959_v11 = vld [vmem:[%s4731_s13 + $0x250] sm:$0xff]  ;;  %v3960_v12 = vld [vmem:[%s4731_s13 + $0x258] sm:$0xff] }
  0x31   : > { %v3961_v13 = vld [vmem:[%s4731_s13 + $0x260] sm:$0xff] }
  0x32   : > { %4114 = vmatmul.mubr.msk.f32.gmra.mrb[12].mxu0 %vm431_vm0, %v420_v14  ;;  %v3962_v14 = vld [vmem:[%s4731_s13 + $0x268] sm:$0xff] }
  0x33   : > { %4116 = vmatprep.mubr.msk.f32.mxu0 %vm431_vm0, %v421_v15  ;;  %v3963_v15 = vld [vmem:[%s4731_s13 + $0x270] sm:$0xff] }
  0x36   : > { %4117 = vmatmul.mubr.msk.f32.gmra.mrb[14].mxu0 %vm431_vm0, %v422_v16  ;;  %v3964_v16 = vld [vmem:[%s4731_s13 + $0x278] sm:$0x1] }
  0x37   : > { %4119 = vmatprep.mubr.msk.f32.mxu0 %vm431_vm0, %v423_v17  ;;  %v4905_v17 = vld [vmem:[%s4902_s17] ss:$0 sm:$0xff] }
  0x3a   : > { %4120 = vmatmul.mubr.msk.f32.gmra.mrb[16].mxu0 %vm431_vm0, %v424_v18 }
  0x3b   : > { %4122 = vmatprep.mubr.msk.f32.mxu0 %vm431_vm0, %v425_v19 }
  0x3e   : > { %4123 = vmatmul.mubr.msk.f32.gmra.mrb[18].mxu0 %vm431_vm0, %v426_v20 }
  0x3f   : > { %4127 = vmatprep.mubr.msk.f32.mxu0 %vm431_vm0, %v3821_v21 }
  0x42   : > { %4128 = vmatmul.mubr.msk.f32.vlgmr.msra.gmra.mrb[20].mxu0 %vm431_vm0, %v3822_v22 }
  0x43   : > { %4130 = vmatprep.mubr.msk.f32.mxu0 %vm431_vm0, %v3823_v23  ;;  %4158 = vmatpush3.msra.mxu0 %v4720_v0 }
  0x44   : > { %4189 = vmatprep.subr.mxu0 %v4720_v0 }
  0x46   : > { %4131 = vmatmul.mubr.msk.f32.gmra.mrb[22].mxu0 %vm431_vm0, %v3824_v24 }
  0x47   : > { %4133 = vmatprep.mubr.msk.f32.mxu0 %vm431_vm0, %v3825_v25 }
  0x4a   : > { %4134 = vmatmul.mubr.msk.f32.gmra.mrb[24].mxu0 %vm431_vm0, %v3826_v26 }
  0x4b   : > { %4136 = vmatprep.mubr.msk.f32.mxu0 %vm431_vm0, %v3827_v27 }
  0x4e   : > { %4137 = vmatmul.mubr.msk.f32.gmra.mrb[26].mxu0 %vm431_vm0, %v3828_v28 }
  0x4f   : > { %4139 = vmatprep.mubr.msk.f32.mxu0 %vm431_vm0, %v3829_v29 }
  0x52   : > { %4140 = vmatmul.mubr.msk.f32.gmra.mrb[28].mxu0 %vm431_vm0, %v3830_v30 }
  0x53   : > { %4142 = vmatprep.mubr.msk.f32.mxu0 %vm431_vm0, %v3831_v31 }
  0x56   : > { %4143 = vmatmul.mubr.msk.f32.gmra.mrb[30].mxu0 %vm431_vm0, %v3832_v32 }
  0x57   : > { %4145 = vmatprep.mubr.msk.f32.mxu0 %vm431_vm0, %v3833_v33 }
  0x5a   : > { %4146 = vmatmul.mubr.msk.f32.gmra.mrb[32].mxu0 %vm431_vm0, %v3834_v34 }
  0x5b   : > { %4148 = vmatprep.mubr.msk.f32.mxu0 %vm431_vm0, %v3835_v35 }
  0x5e   : > { %4149 = vmatmul.mubr.msk.f32.gmra.mrb[34].mxu0 %vm431_vm0, %v3836_v36 }
  0x5f   : > { %4151 = vmatprep.mubr.msk.f32.mxu0 %vm431_vm0, %v3837_v37 }
  0x62   : > { %4152 = vmatmul.mubr.msk.f32.gmra.mrb[36].mxu0 %vm431_vm0, %v3838_v38 }
  0x63   : > { %4154 = vmatprep.mubr.msk.f32.mxu0 %vm431_vm0, %v3839_v39 }
  0x66   : > { %4155 = vmatmul.mubr.msk.f32.gmra.mrb[38].mxu0 %vm431_vm0, %v3840_v40 }
  0x67   : > { %4159 = vmatprep.mubr.msk.f32.mxu0 %vm431_vm0, %v3883_v41 }
  0x6a   : > { %4160 = vmatmul.mubr.msk.f32.vlgmr.msra.gmra.mrb[40].mxu0 %vm431_vm0, %v3884_v42 }
  0x6b   : > { %4162 = vmatprep.mubr.msk.f32.mxu0 %vm431_vm0, %v3885_v43  ;;  %4190 = vmatpush3.msra.mxu0 %v4720_v0  ;;  %v3948_v0 = vld [vmem:[%s4731_s13 + $0x1f8] sm:$0xff] }
  0x6e   : > { %4163 = vmatmul.mubr.msk.f32.gmra.mrb[42].mxu0 %vm431_vm0, %v3886_v44 }
  0x6f   : > { %4165 = vmatprep.mubr.msk.f32.mxu0 %vm431_vm0, %v3887_v45 }
  0x72   : > { %4166 = vmatmul.mubr.msk.f32.gmra.mrb[44].mxu0 %vm431_vm0, %v3888_v46 }
  0x73   : > { %4168 = vmatprep.mubr.msk.f32.mxu0 %vm431_vm0, %v3889_v47 }
  0x76   : > { %4169 = vmatmul.mubr.msk.f32.gmra.mrb[46].mxu0 %vm431_vm0, %v3890_v48 }
  0x77   : > { %4171 = vmatprep.mubr.msk.f32.mxu0 %vm431_vm0, %v3891_v49 }
  0x7a   : > { %4172 = vmatmul.mubr.msk.f32.gmra.mrb[48].mxu0 %vm431_vm0, %v3892_v50 }
  0x7b   : > { %4174 = vmatprep.mubr.msk.f32.mxu0 %vm431_vm0, %v3893_v51 }
  0x7e   : > { %4175 = vmatmul.mubr.msk.f32.gmra.mrb[50].mxu0 %vm431_vm0, %v3894_v52 }
  0x7f   : > { %4177 = vmatprep.mubr.msk.f32.mxu0 %vm431_vm0, %v3895_v53 }
  0x82   : > { %4178 = vmatmul.mubr.msk.f32.gmra.mrb[52].mxu0 %vm431_vm0, %v3896_v54 }
  0x83   : > { %4180 = vmatprep.mubr.msk.f32.mxu0 %vm431_vm0, %v3897_v55 }
  0x86   : > { %4181 = vmatmul.mubr.msk.f32.gmra.mrb[54].mxu0 %vm431_vm0, %v3898_v56 }
  0x87   : > { %4183 = vmatprep.mubr.msk.f32.mxu0 %vm431_vm0, %v3899_v57 }
  0x8a   : > { %4184 = vmatmul.mubr.msk.f32.gmra.mrb[56].mxu0 %vm431_vm0, %v3900_v58 }
  0x8b   : > { %4186 = vmatprep.mubr.msk.f32.mxu0 %vm431_vm0, %v3901_v59 }
  0x8e   : > { %4187 = vmatmul.mubr.msk.f32.gmra.mrb[58].mxu0 %vm431_vm0, %v3902_v60 }
  0x8f   : > { %4191 = vmatprep.mubr.msk.f32.mxu0 %vm431_vm0, %v3945_v61 }
  0x92   : > { %4192 = vmatmul.mubr.msk.f32.vlgmr.msra.gmra.mrb[60].mxu0 %vm431_vm0, %v3946_v62 }
  0x93   : > { %4194 = vmatprep.mubr.msk.f32.mxu0 %vm431_vm0, %v3947_v63 }
  0x96   : > { %4195 = vmatmul.mubr.msk.f32.gmra.mrb[62].mxu0 %vm431_vm0, %v3948_v0 }
  0x97   : > { %4197 = vmatprep.mubr.msk.f32.mxu0 %vm431_vm0, %v3949_v1 }
  0x9a   : > { %4198 = vmatmul.mubr.msk.f32.gmra.mrb[64].mxu0 %vm431_vm0, %v3950_v2 }
  0x9b   : > { %4200 = vmatprep.mubr.msk.f32.mxu0 %vm431_vm0, %v3951_v3 }
  0x9e   : > { %4201 = vmatmul.mubr.msk.f32.gmra.mrb[66].mxu0 %vm431_vm0, %v3952_v4 }
  0x9f   : > { %4203 = vmatprep.mubr.msk.f32.mxu0 %vm431_vm0, %v3953_v5 }
  0xa2   : > { %4204 = vmatmul.mubr.msk.f32.gmra.mrb[68].mxu0 %vm431_vm0, %v3954_v6 }
  0xa3   : > { %4206 = vmatprep.mubr.msk.f32.mxu0 %vm431_vm0, %v3955_v7 }
  0xa6   : > { %4207 = vmatmul.mubr.msk.f32.gmra.mrb[70].mxu0 %vm431_vm0, %v3956_v8 }
  0xa7   : > { %4209 = vmatprep.mubr.msk.f32.mxu0 %vm431_vm0, %v3957_v9 }
  0xaa   : > { %4210 = vmatmul.mubr.msk.f32.gmra.mrb[72].mxu0 %vm431_vm0, %v3958_v10 }
  0xab   : > { %4212 = vmatprep.mubr.msk.f32.mxu0 %vm431_vm0, %v3959_v11 }
  0xae   : > { %4213 = vmatmul.mubr.msk.f32.gmra.mrb[74].mxu0 %vm431_vm0, %v3960_v12 }
  0xaf   : > { %4215 = vmatprep.mubr.msk.f32.mxu0 %vm431_vm0, %v3961_v13 }
  0xb2   : > { %4216 = vmatmul.mubr.msk.f32.gmra.mrb[76].mxu0 %vm431_vm0, %v3962_v14 }
  0xb3   : > { %4218 = vmatprep.mubr.msk.f32.mxu0 %vm431_vm0, %v3963_v15 }
  0xb6   : > { %4219 = vmatmul.mubr.msk.f32.gmra.mrb[78].mxu0 %vm431_vm0, %v3964_v16 }
  0xed   : > { %v4097_v18 = vpop.f32.mrb[0].mxu0 }
  0xee   : > { %v4908_v19 = vadd.f32 %v4097_v18, %v4905_v17  ;;  %v558_v20 = vpop.f32.mrb[1].mxu0 }
  0xef   : > { %v4911_v21 = vadd.f32 %v4905_v17, %v558_v20 }
  0xf0   : > { %v660_v22 = vsel %vm431_vm0, %v4908_v19, 0.0 }
  0xf1   : > { %661 = vadd.xlane.f32.xlu0 %v660_v22  ;;  %v4100_v23 = vpop.f32.mrb[2].mxu0  ;;  %v657_v28 = vsel %vm431_vm0, %v4911_v21, 0.0 }
  0xf2   : > { %v4916_v24 = vadd.f32 %v4100_v23, %v4905_v17  ;;  %v568_v25 = vpop.f32.mrb[3].mxu0 }
  0xf3   : > { %v4919_v26 = vadd.f32 %v4905_v17, %v568_v25 }
  0xf4   : > { %v666_v27 = vsel %vm431_vm0, %v4916_v24, 0.0 }
  0xf5   : > { %667 = vadd.xlane.f32.xlu1 %v666_v27  ;;  %v4103_v29 = vpop.f32.mrb[4].mxu0  ;;  %658 = vadd.xlane.f32.xlu0 %v657_v28  ;;  %v663_v33 = vsel %vm431_vm0, %v4919_v26, 0.0 }
  0xf6   : > { %v4926_v30 = vadd.f32 %v4103_v29, %v4905_v17  ;;  %v578_v31 = vpop.f32.mrb[5].mxu0 }
  0xf7   : > { %v4929_v32 = vadd.f32 %v4905_v17, %v578_v31 }
  0xf8   : > { %v672_v38 = vsel %vm431_vm0, %v4926_v30, 0.0 }
  0xf9   : > { %v4106_v34 = vpop.f32.mrb[6].mxu0  ;;  %664 = vadd.xlane.f32.xlu1 %v663_v33  ;;  %v669_v35 = vsel %vm431_vm0, %v4929_v32, 0.0 }
  0xfa   : > { %v4936_v36 = vadd.f32 %v4106_v34, %v4905_v17  ;;  %v588_v37 = vpop.f32.mrb[7].mxu0  ;;  %670 = vadd.xlane.f32.xlu0 %v669_v35 }
  0xfb   : > { %v4941_v39 = vadd.f32 %v4905_v17, %v588_v37 }
  0xfc   : > { %v678_v44 = vsel %vm431_vm0, %v4936_v36, 0.0 }
  0xfd   : > { %v4109_v40 = vpop.f32.mrb[8].mxu0  ;;  %673 = vadd.xlane.f32.xlu1 %v672_v38  ;;  %v675_v41 = vsel %vm431_vm0, %v4941_v39, 0.0 }
  0xfe   : > { %v4946_v42 = vadd.f32 %v4109_v40, %v4905_v17  ;;  %v598_v43 = vpop.f32.mrb[9].mxu0  ;;  %676 = vadd.xlane.f32.xlu0 %v675_v41 }
  0xff   : > { %v4951_v45 = vadd.f32 %v4905_v17, %v598_v43 }
 0x100   : > { %v684_v50 = vsel %vm431_vm0, %v4946_v42, 0.0 }
 0x101   : > { %v4112_v46 = vpop.f32.mrb[10].mxu0  ;;  %679 = vadd.xlane.f32.xlu1 %v678_v44  ;;  %v681_v47 = vsel %vm431_vm0, %v4951_v45, 0.0 }
 0x102   : > { %v4956_v48 = vadd.f32 %v4112_v46, %v4905_v17  ;;  %v608_v49 = vpop.f32.mrb[11].mxu0  ;;  %682 = vadd.xlane.f32.xlu0 %v681_v47 }
 0x103   : > { %v4961_v51 = vadd.f32 %v4905_v17, %v608_v49 }
 0x104   : > { %v690_v56 = vsel %vm431_vm0, %v4956_v48, 0.0 }
 0x105   : > { %v4115_v52 = vpop.f32.mrb[12].mxu0  ;;  %685 = vadd.xlane.f32.xlu1 %v684_v50  ;;  %v687_v53 = vsel %vm431_vm0, %v4961_v51, 0.0 }
 0x106   : > { %v4966_v54 = vadd.f32 %v4115_v52, %v4905_v17  ;;  %v618_v55 = vpop.f32.mrb[13].mxu0  ;;  %688 = vadd.xlane.f32.xlu0 %v687_v53 }
 0x107   : > { %v4971_v57 = vadd.f32 %v4905_v17, %v618_v55 }
 0x108   : > { %v696_v62 = vsel %vm431_vm0, %v4966_v54, 0.0 }
 0x109   : > { %v4118_v58 = vpop.f32.mrb[14].mxu0  ;;  %691 = vadd.xlane.f32.xlu1 %v690_v56  ;;  %v693_v59 = vsel %vm431_vm0, %v4971_v57, 0.0 }
 0x10a   : > { %v4976_v60 = vadd.f32 %v4118_v58, %v4905_v17  ;;  %v628_v61 = vpop.f32.mrb[15].mxu0  ;;  %694 = vadd.xlane.f32.xlu0 %v693_v59 }
 0x10b   : > { %v4981_v63 = vadd.f32 %v4905_v17, %v628_v61 }
 0x10c   : > { %v702_v4 = vsel %vm431_vm0, %v4976_v60, 0.0 }
 0x10d   : > { %v4121_v0 = vpop.f32.mrb[16].mxu0  ;;  %697 = vadd.xlane.f32.xlu1 %v696_v62  ;;  %v699_v1 = vsel %vm431_vm0, %v4981_v63, 0.0 }
 0x10e   : > { %v4986_v2 = vadd.f32 %v4121_v0, %v4905_v17  ;;  %v638_v3 = vpop.f32.mrb[17].mxu0  ;;  %700 = vadd.xlane.f32.xlu0 %v699_v1 }
 0x10f   : > { %v4991_v5 = vadd.f32 %v4905_v17, %v638_v3 }
 0x110   : > { %v708_v10 = vsel %vm431_vm0, %v4986_v2, 0.0 }
 0x111   : > { %v4124_v6 = vpop.f32.mrb[18].mxu0  ;;  %703 = vadd.xlane.f32.xlu1 %v702_v4  ;;  %v705_v7 = vsel %vm431_vm0, %v4991_v5, 0.0 }
 0x112   : > { %v4996_v8 = vadd.f32 %v4124_v6, %v4905_v17  ;;  %v648_v9 = vpop.f32.mrb[19].mxu0  ;;  %706 = vadd.xlane.f32.xlu0 %v705_v7 }
 0x113   : > { %v5001_v11 = vadd.f32 %v4905_v17, %v648_v9 }
 0x114   : > { %v715_v16 = vsel %vm714_vm1, %v4996_v8, 0.0 }
 0x115   : > { %v4129_v12 = vpop.f32.mrb[20].mxu0  ;;  %709 = vadd.xlane.f32.xlu1 %v708_v10  ;;  %v711_v13 = vsel %vm431_vm0, %v5001_v11, 0.0 }
 0x116   : > { %v5006_v14 = vadd.f32 %v4129_v12, %v4905_v17  ;;  %v1458_v15 = vpop.f32.mrb[21].mxu0  ;;  %712 = vadd.xlane.f32.xlu0 %v711_v13 }
 0x117   : > { %v5011_v18 = vadd.f32 %v4905_v17, %v1458_v15 }
 0x118   : > { %v1560_v27 = vsel %vm431_vm0, %v5006_v14, 0.0 }
 0x119   : > { %v4132_v20 = vpop.f32.mrb[22].mxu0  ;;  %716 = vadd.xlane.f32.xlu1 %v715_v16  ;;  %v1557_v22 = vsel %vm431_vm0, %v5011_v18, 0.0 }
 0x11a   : > { %v5016_v23 = vadd.f32 %v4132_v20, %v4905_v17  ;;  %v1468_v25 = vpop.f32.mrb[23].mxu0  ;;  %1558 = vadd.xlane.f32.xlu0 %v1557_v22 }
 0x11b   : > { %v5021_v28 = vadd.f32 %v4905_v17, %v1468_v25 }
 0x11c   : > { %v1566_v35 = vsel %vm431_vm0, %v5016_v23, 0.0 }
 0x11d   : > { %v4135_v29 = vpop.f32.mrb[24].mxu0  ;;  %1561 = vadd.xlane.f32.xlu1 %v1560_v27  ;;  %v1563_v31 = vsel %vm431_vm0, %v5021_v28, 0.0 }
 0x11e   : > { %v5026_v33 = vadd.f32 %v4135_v29, %v4905_v17  ;;  %v1478_v34 = vpop.f32.mrb[25].mxu0  ;;  %1564 = vadd.xlane.f32.xlu0 %v1563_v31 }
 0x11f   : > { %v5031_v37 = vadd.f32 %v4905_v17, %v1478_v34 }
 0x120   : > { %v1572_v44 = vsel %vm431_vm0, %v5026_v33, 0.0 }
 0x121   : > { %v4138_v38 = vpop.f32.mrb[26].mxu0  ;;  %1567 = vadd.xlane.f32.xlu1 %v1566_v35  ;;  %v1569_v40 = vsel %vm431_vm0, %v5031_v37, 0.0 }
 0x122   : > { %v5036_v41 = vadd.f32 %v4138_v38, %v4905_v17  ;;  %v1488_v43 = vpop.f32.mrb[27].mxu0  ;;  %1570 = vadd.xlane.f32.xlu0 %v1569_v40 }
 0x123   : > { %v5041_v46 = vadd.f32 %v4905_v17, %v1488_v43 }
 0x124   : > { %v1578_v53 = vsel %vm431_vm0, %v5036_v41, 0.0 }
 0x125   : > { %v4141_v47 = vpop.f32.mrb[28].mxu0  ;;  %1573 = vadd.xlane.f32.xlu1 %v1572_v44  ;;  %v1575_v49 = vsel %vm431_vm0, %v5041_v46, 0.0 }
 0x126   : > { %v5046_v50 = vadd.f32 %v4141_v47, %v4905_v17  ;;  %v1498_v52 = vpop.f32.mrb[29].mxu0  ;;  %1576 = vadd.xlane.f32.xlu0 %v1575_v49 }
 0x127   : > { %v5051_v55 = vadd.f32 %v4905_v17, %v1498_v52 }
 0x128   : > { %v1584_v62 = vsel %vm431_vm0, %v5046_v50, 0.0 }
 0x129   : > { %v4144_v56 = vpop.f32.mrb[30].mxu0  ;;  %1579 = vadd.xlane.f32.xlu1 %v1578_v53  ;;  %v1581_v58 = vsel %vm431_vm0, %v5051_v55, 0.0 }
 0x12a   : > { %v5056_v59 = vadd.f32 %v4144_v56, %v4905_v17  ;;  %v1508_v61 = vpop.f32.mrb[31].mxu0  ;;  %1582 = vadd.xlane.f32.xlu0 %v1581_v58 }
 0x12b   : > { %v5061_v0 = vadd.f32 %v4905_v17, %v1508_v61 }
 0x12c   : > { %v1590_v7 = vsel %vm431_vm0, %v5056_v59, 0.0 }
 0x12d   : > { %v4147_v1 = vpop.f32.mrb[32].mxu0  ;;  %1585 = vadd.xlane.f32.xlu1 %v1584_v62  ;;  %v1587_v3 = vsel %vm431_vm0, %v5061_v0, 0.0 }
 0x12e   : > { %v5066_v4 = vadd.f32 %v4147_v1, %v4905_v17  ;;  %v1518_v6 = vpop.f32.mrb[33].mxu0  ;;  %1588 = vadd.xlane.f32.xlu0 %v1587_v3 }
 0x12f   : > { %v5071_v9 = vadd.f32 %v4905_v17, %v1518_v6 }
 0x130   : > { %v1596_v16 = vsel %vm431_vm0, %v5066_v4, 0.0 }
 0x131   : > { %v4150_v10 = vpop.f32.mrb[34].mxu0  ;;  %1591 = vadd.xlane.f32.xlu1 %v1590_v7  ;;  %v1593_v12 = vsel %vm431_vm0, %v5071_v9, 0.0 }
 0x132   : > { %v5076_v13 = vadd.f32 %v4150_v10, %v4905_v17  ;;  %v1528_v15 = vpop.f32.mrb[35].mxu0  ;;  %1594 = vadd.xlane.f32.xlu0 %v1593_v12 }
 0x133   : > { %v5081_v20 = vadd.f32 %v4905_v17, %v1528_v15 }
 0x134   : > { %v1602_v31 = vsel %vm431_vm0, %v5076_v13, 0.0 }
 0x135   : > { %v4153_v22 = vpop.f32.mrb[36].mxu0  ;;  %1597 = vadd.xlane.f32.xlu1 %v1596_v16  ;;  %v1599_v25 = vsel %vm431_vm0, %v5081_v20, 0.0 }
 0x136   : > { %v5086_v27 = vadd.f32 %v4153_v22, %v4905_v17  ;;  %v1538_v29 = vpop.f32.mrb[37].mxu0  ;;  %1600 = vadd.xlane.f32.xlu0 %v1599_v25 }
 0x137   : > { %v5091_v34 = vadd.f32 %v4905_v17, %v1538_v29 }
 0x138   : > { %v1608_v44 = vsel %vm431_vm0, %v5086_v27, 0.0 }
 0x139   : > { %v4156_v35 = vpop.f32.mrb[38].mxu0  ;;  %1603 = vadd.xlane.f32.xlu1 %v1602_v31  ;;  %v1605_v38 = vsel %vm431_vm0, %v5091_v34, 0.0 }
 0x13a   : > { %v5096_v40 = vadd.f32 %v4156_v35, %v4905_v17  ;;  %v1548_v43 = vpop.f32.mrb[39].mxu0  ;;  %1606 = vadd.xlane.f32.xlu0 %v1605_v38 }
 0x13b   : > { %v5101_v47 = vadd.f32 %v4905_v17, %v1548_v43 }
 0x13c   : > { %v1614_v58 = vsel %vm714_vm1, %v5096_v40, 0.0 }
 0x13d   : > { %v4161_v49 = vpop.f32.mrb[40].mxu0  ;;  %1609 = vadd.xlane.f32.xlu1 %v1608_v44  ;;  %v1611_v52 = vsel %vm431_vm0, %v5101_v47, 0.0 }
 0x13e   : > { %v5106_v53 = vadd.f32 %v4161_v49, %v4905_v17  ;;  %v2234_v56 = vpop.f32.mrb[41].mxu0  ;;  %1612 = vadd.xlane.f32.xlu0 %v1611_v52 }
 0x13f   : > { %v5111_v61 = vadd.f32 %v4905_v17, %v2234_v56 }
 0x140   : > { %v2336_v7 = vsel %vm431_vm0, %v5106_v53, 0.0 }
 0x141   : > { %v4164_v62 = vpop.f32.mrb[42].mxu0  ;;  %1615 = vadd.xlane.f32.xlu1 %v1614_v58  ;;  %v2333_v1 = vsel %vm431_vm0, %v5111_v61, 0.0 }
 0x142   : > { %v5116_v3 = vadd.f32 %v4164_v62, %v4905_v17  ;;  %v2244_v6 = vpop.f32.mrb[43].mxu0  ;;  %2334 = vadd.xlane.f32.xlu0 %v2333_v1 }
 0x143   : > { %v5121_v10 = vadd.f32 %v4905_v17, %v2244_v6 }
 0x144   : > { %v2342_v25 = vsel %vm431_vm0, %v5116_v3, 0.0 }
 0x145   : > { %v4167_v12 = vpop.f32.mrb[44].mxu0  ;;  %2337 = vadd.xlane.f32.xlu1 %v2336_v7  ;;  %v2339_v15 = vsel %vm431_vm0, %v5121_v10, 0.0 }
 0x146   : > { %v5126_v16 = vadd.f32 %v4167_v12, %v4905_v17  ;;  %v2254_v22 = vpop.f32.mrb[45].mxu0  ;;  %2340 = vadd.xlane.f32.xlu0 %v2339_v15 }
 0x147   : > { %v5131_v29 = vadd.f32 %v4905_v17, %v2254_v22 }
 0x148   : > { %v2348_v44 = vsel %vm431_vm0, %v5126_v16, 0.0 }
 0x149   : > { %v4170_v31 = vpop.f32.mrb[46].mxu0  ;;  %2343 = vadd.xlane.f32.xlu1 %v2342_v25  ;;  %v2345_v35 = vsel %vm431_vm0, %v5131_v29, 0.0 }
 0x14a   : > { %v5136_v38 = vadd.f32 %v4170_v31, %v4905_v17  ;;  %v2264_v43 = vpop.f32.mrb[47].mxu0  ;;  %2346 = vadd.xlane.f32.xlu0 %v2345_v35 }
 0x14b   : > { %v5141_v49 = vadd.f32 %v4905_v17, %v2264_v43 }
 0x14c   : > { %6867 = vst [vmem:[#allocation2_spill] sm:$0xff] %v5136_v38  ;;  %v2354_v1 = vsel %vm431_vm0, %v5136_v38, 0.0 }
 0x14d   : > { %6868 = vst [vmem:[#allocation3_spill] sm:$0xff] %v5141_v49  ;;  %v4173_v52 = vpop.f32.mrb[48].mxu0  ;;  %2349 = vadd.xlane.f32.xlu1 %v2348_v44  ;;  %v2351_v56 = vsel %vm431_vm0, %v5141_v49, 0.0 }
 0x14e   : > { %v5146_v58 = vadd.f32 %v4173_v52, %v4905_v17  ;;  %v2274_v62 = vpop.f32.mrb[49].mxu0  ;;  %2352 = vadd.xlane.f32.xlu0 %v2351_v56 }
 0x14f   : > { %v5151_v6 = vadd.f32 %v4905_v17, %v2274_v62 }
 0x150   : > { %6869 = vst [vmem:[#allocation4_spill] sm:$0xff] %v5146_v58  ;;  %v2360_v25 = vsel %vm431_vm0, %v5146_v58, 0.0 }
 0x151   : > { %6870 = vst [vmem:[#allocation5_spill] sm:$0xff] %v5151_v6  ;;  %v4176_v7 = vpop.f32.mrb[50].mxu0  ;;  %2355 = vadd.xlane.f32.xlu1 %v2354_v1  ;;  %v2357_v12 = vsel %vm431_vm0, %v5151_v6, 0.0 }
 0x152   : > { %v5156_v15 = vadd.f32 %v4176_v7, %v4905_v17  ;;  %v2284_v22 = vpop.f32.mrb[51].mxu0  ;;  %2358 = vadd.xlane.f32.xlu0 %v2357_v12 }
 0x153   : > { %v5161_v31 = vadd.f32 %v4905_v17, %v2284_v22 }
 0x154   : > { %6871 = vst [vmem:[#allocation6_spill] sm:$0xff] %v5156_v15  ;;  %v2366_v56 = vsel %vm431_vm0, %v5156_v15, 0.0 }
 0x155   : > { %6872 = vst [vmem:[#allocation7_spill] sm:$0xff] %v5161_v31  ;;  %v4179_v35 = vpop.f32.mrb[52].mxu0  ;;  %2361 = vadd.xlane.f32.xlu1 %v2360_v25  ;;  %v2363_v43 = vsel %vm431_vm0, %v5161_v31, 0.0 }
 0x156   : > { %v5166_v44 = vadd.f32 %v4179_v35, %v4905_v17  ;;  %v2294_v52 = vpop.f32.mrb[53].mxu0  ;;  %2364 = vadd.xlane.f32.xlu0 %v2363_v43 }
 0x157   : > { %v5171_v62 = vadd.f32 %v4905_v17, %v2294_v52 }
 0x158   : > { %6873 = vst [vmem:[#allocation8_spill] sm:$0xff] %v5166_v44  ;;  %v2372_v25 = vsel %vm431_vm0, %v5166_v44, 0.0 }
 0x159   : > { %6874 = vst [vmem:[#allocation9_spill] sm:$0xff] %v5171_v62  ;;  %v4182_v1 = vpop.f32.mrb[54].mxu0  ;;  %2367 = vadd.xlane.f32.xlu1 %v2366_v56  ;;  %v2369_v7 = vsel %vm431_vm0, %v5171_v62, 0.0 }
 0x15a   : > { %v5176_v12 = vadd.f32 %v4182_v1, %v4905_v17  ;;  %v2304_v22 = vpop.f32.mrb[55].mxu0  ;;  %2370 = vadd.xlane.f32.xlu0 %v2369_v7 }
 0x15b   : > { %v5181_v35 = vadd.f32 %v4905_v17, %v2304_v22 }
 0x15c   : > { %6875 = vst [vmem:[#allocation10_spill] sm:$0xff] %v5176_v12  ;;  %v2378_v1 = vsel %vm431_vm0, %v5176_v12, 0.0 }
 0x15d   : > { %6876 = vst [vmem:[#allocation11_spill] sm:$0xff] %v5181_v35  ;;  %v4185_v43 = vpop.f32.mrb[56].mxu0  ;;  %2373 = vadd.xlane.f32.xlu1 %v2372_v25  ;;  %v2375_v52 = vsel %vm431_vm0, %v5181_v35, 0.0 }
 0x15e   : > { %v5186_v56 = vadd.f32 %v4185_v43, %v4905_v17  ;;  %v2314_v62 = vpop.f32.mrb[57].mxu0  ;;  %2376 = vadd.xlane.f32.xlu0 %v2375_v52 }
 0x15f   : > { %v5191_v7 = vadd.f32 %v4905_v17, %v2314_v62 }
 0x160   : > { %6877 = vst [vmem:[#allocation12_spill] sm:$0xff] %v5186_v56  ;;  %v2384_v43 = vsel %vm431_vm0, %v5186_v56, 0.0 }
 0x161   : > { %6878 = vst [vmem:[#allocation13_spill] sm:$0xff] %v5191_v7  ;;  %v4188_v44 = vpop.f32.mrb[58].mxu0  ;;  %2379 = vadd.xlane.f32.xlu1 %v2378_v1  ;;  %v2381_v22 = vsel %vm431_vm0, %v5191_v7, 0.0 }
 0x162   : > { %v5196_v25 = vadd.f32 %v4188_v44, %v4905_v17  ;;  %v2324_v35 = vpop.f32.mrb[59].mxu0  ;;  %2382 = vadd.xlane.f32.xlu0 %v2381_v22 }
 0x163   : > { %v5201_v52 = vadd.f32 %v4905_v17, %v2324_v35 }
 0x164   : > { %6879 = vst [vmem:[#allocation14_spill] sm:$0xff] %v5196_v25  ;;  %v2390_v44 = vsel %vm714_vm1, %v5196_v25, 0.0 }
 0x165   : > { %6880 = vst [vmem:[#allocation15_spill] sm:$0xff] %v5201_v52  ;;  %v4193_v12 = vpop.f32.mrb[60].mxu0  ;;  %2385 = vadd.xlane.f32.xlu1 %v2384_v43  ;;  %v2387_v62 = vsel %vm431_vm0, %v5201_v52, 0.0 }
 0x166   : > { %v5206_v1 = vadd.f32 %v4193_v12, %v4905_v17  ;;  %v3010_v7 = vpop.f32.mrb[61].mxu0  ;;  %2388 = vadd.xlane.f32.xlu0 %v2387_v62 }
 0x167   : > { %v5211_v22 = vadd.f32 %v4905_v17, %v3010_v7 }
 0x168   : > { %6881 = vst [vmem:[#allocation16_spill] sm:$0xff] %v5206_v1  ;;  %v3112_v12 = vsel %vm431_vm0, %v5206_v1, 0.0 }
 0x169   : > { %6882 = vst [vmem:[#allocation17_spill] sm:$0xff] %v5211_v22  ;;  %v4196_v56 = vpop.f32.mrb[62].mxu0  ;;  %2391 = vadd.xlane.f32.xlu1 %v2390_v44  ;;  %v3109_v35 = vsel %vm431_vm0, %v5211_v22, 0.0 }
 0x16a   : > { %v5216_v43 = vadd.f32 %v4196_v56, %v4905_v17  ;;  %v3020_v52 = vpop.f32.mrb[63].mxu0  ;;  %3110 = vadd.xlane.f32.xlu0 %v3109_v35 }
 0x16b   : > { %v5221_v62 = vadd.f32 %v4905_v17, %v3020_v52 }
 0x16c   : > { %6883 = vst [vmem:[#allocation18_spill] sm:$0xff] %v5216_v43  ;;  %v3118_v56 = vsel %vm431_vm0, %v5216_v43, 0.0 }
 0x16d   : > { %6884 = vst [vmem:[#allocation19_spill] sm:$0xff] %v5221_v62  ;;  %v4199_v25 = vpop.f32.mrb[64].mxu0  ;;  %3113 = vadd.xlane.f32.xlu1 %v3112_v12  ;;  %v3115_v7 = vsel %vm431_vm0, %v5221_v62, 0.0 }
 0x16e   : > { %v5226_v44 = vadd.f32 %v4199_v25, %v4905_v17  ;;  %v3030_v22 = vpop.f32.mrb[65].mxu0  ;;  %3116 = vadd.xlane.f32.xlu0 %v3115_v7 }
 0x16f   : > { %v5231_v35 = vadd.f32 %v4905_v17, %v3030_v22 }
 0x170   : > { %6885 = vst [vmem:[#allocation20_spill] sm:$0xff] %v5226_v44  ;;  %v3124_v25 = vsel %vm431_vm0, %v5226_v44, 0.0 }
 0x171   : > { %6886 = vst [vmem:[#allocation21_spill] sm:$0xff] %v5231_v35  ;;  %v4202_v1 = vpop.f32.mrb[66].mxu0  ;;  %3119 = vadd.xlane.f32.xlu1 %v3118_v56  ;;  %v3121_v52 = vsel %vm431_vm0, %v5231_v35, 0.0 }
 0x172   : > { %v5236_v12 = vadd.f32 %v4202_v1, %v4905_v17  ;;  %v3040_v62 = vpop.f32.mrb[67].mxu0  ;;  %3122 = vadd.xlane.f32.xlu0 %v3121_v52 }
 0x173   : > { %v5241_v7 = vadd.f32 %v4905_v17, %v3040_v62 }
 0x174   : > { %6887 = vst [vmem:[#allocation22_spill] sm:$0xff] %v5236_v12  ;;  %v3130_v1 = vsel %vm431_vm0, %v5236_v12, 0.0 }
 0x175   : > { %6888 = vst [vmem:[#allocation23_spill] sm:$0xff] %v5241_v7  ;;  %v4205_v43 = vpop.f32.mrb[68].mxu0  ;;  %3125 = vadd.xlane.f32.xlu1 %v3124_v25  ;;  %v3127_v22 = vsel %vm431_vm0, %v5241_v7, 0.0 }
 0x176   : > { %v5246_v56 = vadd.f32 %v4205_v43, %v4905_v17  ;;  %v3050_v35 = vpop.f32.mrb[69].mxu0  ;;  %3128 = vadd.xlane.f32.xlu0 %v3127_v22 }
 0x177   : > { %v5251_v52 = vadd.f32 %v4905_v17, %v3050_v35 }
 0x178   : > { %6889 = vst [vmem:[#allocation24_spill] sm:$0xff] %v5246_v56  ;;  %v3136_v43 = vsel %vm431_vm0, %v5246_v56, 0.0 }
 0x179   : > { %6890 = vst [vmem:[#allocation25_spill] sm:$0xff] %v5251_v52  ;;  %v4208_v44 = vpop.f32.mrb[70].mxu0  ;;  %3131 = vadd.xlane.f32.xlu1 %v3130_v1  ;;  %v3133_v62 = vsel %vm431_vm0, %v5251_v52, 0.0 }
 0x17a   : > { %v5256_v25 = vadd.f32 %v4208_v44, %v4905_v17  ;;  %v3060_v7 = vpop.f32.mrb[71].mxu0  ;;  %3134 = vadd.xlane.f32.xlu0 %v3133_v62 }
 0x17b   : > { %v5261_v22 = vadd.f32 %v4905_v17, %v3060_v7 }
 0x17c   : > { %6891 = vst [vmem:[#allocation26_spill] sm:$0xff] %v5256_v25  ;;  %v3142_v44 = vsel %vm431_vm0, %v5256_v25, 0.0 }
 0x17d   : > { %6892 = vst [vmem:[#allocation27_spill] sm:$0xff] %v5261_v22  ;;  %v4211_v12 = vpop.f32.mrb[72].mxu0  ;;  %3137 = vadd.xlane.f32.xlu1 %v3136_v43  ;;  %v3139_v35 = vsel %vm431_vm0, %v5261_v22, 0.0 }
 0x17e   : > { %v5266_v1 = vadd.f32 %v4211_v12, %v4905_v17  ;;  %v662_v52 = vpop.xlane.xlu0 %661  ;;  %v3070_v15 = vpop.f32.mrb[73].mxu0  ;;  %3140 = vadd.xlane.f32.xlu0 %v3139_v35 }
 0x17f   : > { %v5271_v62 = vadd.f32 %v4905_v17, %v3070_v15  ;;  %v720_v56 = vmul.f32 0.125, %v662_v52 }
 0x180   : > { %6893 = vst [vmem:[#allocation28_spill] sm:$0xff] %v5266_v1  ;;  %v3148_v35 = vsel %vm431_vm0, %v5266_v1, 0.0 }
 0x181   : > { %6894 = vst [vmem:[#allocation29_spill] sm:$0xff] %v5271_v62  ;;  %v4214_v7 = vpop.f32.mrb[74].mxu0  ;;  %3143 = vadd.xlane.f32.xlu1 %v3142_v44  ;;  %v3145_v43 = vsel %vm431_vm0, %v5271_v62, 0.0  ;;  %v5284_v52 = vsub.f32 %v4908_v19, %v720_v56 }
 0x182   : > { %v5276_v22 = vadd.f32 %v4214_v7, %v4905_v17  ;;  %v668_v12 = vpop.xlane.xlu1 %667  ;;  %v3080_v31 = vpop.f32.mrb[75].mxu0  ;;  %3146 = vadd.xlane.f32.xlu0 %v3145_v43 }
 0x183   : > { %v5281_v25 = vadd.f32 %v4905_v17, %v3080_v31  ;;  %v659_v15 = vpop.xlane.xlu0 %658  ;;  %6896 = vst [vmem:[#allocation31_spill] sm:$0xff] %v5284_v52  ;;  %v722_v49 = vmul.f32 0.125, %v668_v12 }
 0x184   : > { %6895 = vst [vmem:[#allocation30_spill] sm:$0xff] %v5276_v22  ;;  %v719_v44 = vmul.f32 0.125, %v659_v15  ;;  %v3154_v1 = vsel %vm431_vm0, %v5276_v22, 0.0 }
 0x185   : > { %3149 = vadd.xlane.f32.xlu1 %v3148_v35  ;;  %v3151_v62 = vsel %vm431_vm0, %v5281_v25, 0.0  ;;  %v4217_v7 = vpop.f32.mrb[76].mxu0  ;;  %v760_v35 = vmul.f32 %v5284_v52, %v5284_v52  ;;  %v5308_v22 = vsub.f32 %v4916_v24, %v722_v49 }
 0x186   : > { %v5289_v58 = vsub.f32 %v4911_v21, %v719_v44  ;;  %v665_v43 = vpop.xlane.xlu1 %664  ;;  %3152 = vadd.xlane.f32.xlu0 %v3151_v62  ;;  %v3090_v31 = vpop.f32.mrb[77].mxu0  ;;  %v5304_v15 = vadd.f32 %v4217_v7, %v4905_v17 }
 0x187   : > { %v721_v6 = vmul.f32 0.125, %v665_v43  ;;  %v671_v38 = vpop.xlane.xlu0 %670  ;;  %v5294_v19 = vadd.f32 %v4905_v17, %v3090_v31  ;;  %v762_v49 = vmul.f32 %v5308_v22, %v5308_v22 }
 0x188   : > { %6897 = vst [vmem:[#allocation32_spill] sm:$0xff] %v5289_v58  ;;  %v759_v56 = vmul.f32 %v5289_v58, %v5289_v58  ;;  %6900 = vst [vmem:[#allocation35_spill] sm:$0xff] %v5304_v15  ;;  %v782_v58 = vsel %vm431_vm0, %v760_v35, 0.0  ;;  %v3160_v7 = vsel %vm431_vm0, %v5304_v15, 0.0 }
 0x189   : > { %6898 = vst [vmem:[#allocation33_spill] sm:$0xff] %v5294_v19  ;;  %3155 = vadd.xlane.f32.xlu1 %v3154_v1  ;;  %v4220_v21 = vpop.f32.mrb[78].mxu0  ;;  %v5301_v62 = vsub.f32 %v4919_v26, %v721_v6  ;;  %v3157_v1 = vsel %vm431_vm0, %v5294_v19, 0.0  ;;  %v723_v26 = vmul.f32 0.125, %v671_v38  ;;  %v788_v19 = vsel %vm431_vm0, %v762_v49, 0.0 }
 0x18a   : > { %v674_v44 = vpop.xlane.xlu1 %673  ;;  %v779_v12 = vsel %vm431_vm0, %v759_v56, 0.0  ;;  %v3100_v43 = vpop.f32.mrb[79].mxu0  ;;  %v5326_v35 = vadd.f32 %v4220_v21, %v4905_v17 }
 0x18b   : > { %6899 = vst [vmem:[#allocation34_spill] sm:$0xff] %v5301_v62  ;;  %780 = vadd.xlane.f32.xlu0 %v779_v12  ;;  %v677_v31 = vpop.xlane.xlu0 %676  ;;  %v761_v56 = vmul.f32 %v5301_v62, %v5301_v62  ;;  %v724_v52 = vmul.f32 0.125, %v674_v44  ;;  %v5318_v24 = vadd.f32 %v4905_v17, %v3100_v43 }
 0x18c   : > { %v725_v38 = vmul.f32 0.125, %v677_v31  ;;  %v3166_v31 = vsel %vm714_vm1, %v5326_v35, 0.0 }
 0x18d   : > { %783 = vadd.xlane.f32.xlu1 %v782_v58  ;;  %v5323_v58 = vsub.f32 %v4929_v32, %v723_v26  ;;  %v785_v62 = vsel %vm431_vm0, %v761_v56, 0.0  ;;  %v5330_v44 = vsub.f32 %v4926_v30, %v724_v52 }
 0x18e   : > { %v680_v6 = vpop.xlane.xlu1 %679  ;;  %v5336_v32 = vsub.f32 %v4941_v39, %v725_v38 }
 0x18f   : > { %3158 = vadd.xlane.f32.xlu0 %v3157_v1  ;;  %v683_v12 = vpop.xlane.xlu0 %682  ;;  %v726_v43 = vmul.f32 0.125, %v680_v6 }
 0x190   : > { %v727_v17 = vmul.f32 0.125, %v683_v12  ;;  %v765_v49 = vmul.f32 %v5336_v32, %v5336_v32 }
 0x191   : > { %3161 = vadd.xlane.f32.xlu1 %v3160_v7  ;;  %v3163_v7 = vsel %vm431_vm0, %v5318_v24, 0.0  ;;  %v5343_v52 = vsub.f32 %v4936_v36, %v726_v43 }
 0x192   : > { %v686_v15 = vpop.xlane.xlu1 %685  ;;  %v5348_v39 = vsub.f32 %v4951_v45, %v727_v17 }
 0x193   : > { %786 = vadd.xlane.f32.xlu0 %v785_v62  ;;  %v689_v1 = vpop.xlane.xlu0 %688  ;;  %v763_v62 = vmul.f32 %v5323_v58, %v5323_v58  ;;  %v728_v26 = vmul.f32 0.125, %v686_v15 }
 0x194   : > { %v729_v6 = vmul.f32 0.125, %v689_v1 }
 0x195   : > { %789 = vadd.xlane.f32.xlu1 %v788_v19  ;;  %v764_v19 = vmul.f32 %v5330_v44, %v5330_v44  ;;  %v791_v12 = vsel %vm431_vm0, %v763_v62, 0.0  ;;  %v5354_v36 = vsub.f32 %v4946_v42, %v728_v26  ;;  %v767_v62 = vmul.f32 %v5348_v39, %v5348_v39 }
 0x196   : > { %v692_v21 = vpop.xlane.xlu1 %691  ;;  %v5360_v45 = vsub.f32 %v4961_v51, %v729_v6 }
 0x197   : > { %3164 = vadd.xlane.f32.xlu0 %v3163_v7  ;;  %v695_v30 = vpop.xlane.xlu0 %694  ;;  %v730_v15 = vmul.f32 0.125, %v692_v21  ;;  %v794_v43 = vsel %vm431_vm0, %v764_v19, 0.0  ;;  %v766_v7 = vmul.f32 %v5343_v52, %v5343_v52 }
 0x198   : > { %v731_v1 = vmul.f32 0.125, %v695_v30 }
 0x199   : > { %3167 = vadd.xlane.f32.xlu1 %v3166_v31  ;;  %v797_v31 = vsel %vm431_vm0, %v765_v49, 0.0  ;;  %v5366_v21 = vsub.f32 %v4956_v48, %v730_v15  ;;  %v800_v19 = vsel %vm431_vm0, %v766_v7, 0.0  ;;  %v803_v49 = vsel %vm431_vm0, %v767_v62, 0.0 }
 0x19a   : > { %v698_v56 = vpop.xlane.xlu1 %697  ;;  %v5372_v51 = vsub.f32 %v4971_v57, %v731_v1 }
 0x19b   : > { %792 = vadd.xlane.f32.xlu0 %v791_v12  ;;  %v701_v38 = vpop.xlane.xlu0 %700  ;;  %v732_v26 = vmul.f32 0.125, %v698_v56  ;;  %v768_v12 = vmul.f32 %v5354_v36, %v5354_v36 }
 0x19c   : > { %v733_v30 = vmul.f32 0.125, %v701_v38 }
 0x19d   : > { %795 = vadd.xlane.f32.xlu1 %v794_v43  ;;  %v769_v43 = vmul.f32 %v5360_v45, %v5360_v45  ;;  %v5378_v56 = vsub.f32 %v4966_v54, %v732_v26  ;;  %v806_v7 = vsel %vm431_vm0, %v768_v12, 0.0 }
 0x19e   : > { %v704_v17 = vpop.xlane.xlu1 %703  ;;  %v5384_v57 = vsub.f32 %v4981_v63, %v733_v30 }
 0x19f   : > { %798 = vadd.xlane.f32.xlu0 %v797_v31  ;;  %v707_v42 = vpop.xlane.xlu0 %706  ;;  %v734_v15 = vmul.f32 0.125, %v704_v17  ;;  %v770_v31 = vmul.f32 %v5366_v21, %v5366_v21  ;;  %v809_v62 = vsel %vm431_vm0, %v769_v43, 0.0 }
 0x1a0   : > { %v735_v38 = vmul.f32 0.125, %v707_v42 }
 0x1a1   : > { %801 = vadd.xlane.f32.xlu1 %v800_v19  ;;  %v771_v19 = vmul.f32 %v5372_v51, %v5372_v51  ;;  %v5390_v17 = vsub.f32 %v4976_v60, %v734_v15  ;;  %v812_v12 = vsel %vm431_vm0, %v770_v31, 0.0 }
 0x1a2   : > { %v710_v6 = vpop.xlane.xlu1 %709  ;;  %v5396_v63 = vsub.f32 %v4991_v5, %v735_v38 }
 0x1a3   : > { %804 = vadd.xlane.f32.xlu0 %v803_v49  ;;  %v713_v48 = vpop.xlane.xlu0 %712  ;;  %v736_v26 = vmul.f32 0.125, %v710_v6  ;;  %v772_v49 = vmul.f32 %v5378_v56, %v5378_v56  ;;  %v815_v43 = vsel %vm431_vm0, %v771_v19, 0.0 }
 0x1a4   : > { %v737_v42 = vmul.f32 0.125, %v713_v48 }
 0x1a5   : > { %807 = vadd.xlane.f32.xlu1 %v806_v7  ;;  %v773_v7 = vmul.f32 %v5384_v57, %v5384_v57  ;;  %v5402_v6 = vsub.f32 %v4986_v2, %v736_v26  ;;  %v818_v31 = vsel %vm431_vm0, %v772_v49, 0.0 }
 0x1a6   : > { %v717_v1 = vpop.xlane.xlu1 %716  ;;  %v5408_v5 = vsub.f32 %v5001_v11, %v737_v42 }
 0x1a7   : > { %810 = vadd.xlane.f32.xlu0 %v809_v62  ;;  %v1559_v54 = vpop.xlane.xlu0 %1558  ;;  %v738_v15 = vmul.f32 0.125, %v717_v1  ;;  %v774_v62 = vmul.f32 %v5390_v17, %v5390_v17  ;;  %v821_v19 = vsel %vm431_vm0, %v773_v7, 0.0 }
 0x1a8   : > { %v1617_v48 = vmul.f32 0.125, %v1559_v54 }
 0x1a9   : > { %813 = vadd.xlane.f32.xlu1 %v812_v12  ;;  %v775_v12 = vmul.f32 %v5396_v63, %v5396_v63  ;;  %v5414_v1 = vsub.f32 %v4996_v8, %v738_v15  ;;  %v824_v49 = vsel %vm431_vm0, %v774_v62, 0.0 }
 0x1aa   : > { %v1562_v30 = vpop.xlane.xlu1 %1561  ;;  %v5420_v11 = vsub.f32 %v5011_v18, %v1617_v48  ;;  %v6824_v18 = vmov 0.0|0.0  }
 0x1ab   : > { %816 = vadd.xlane.f32.xlu0 %v815_v43  ;;  %v1565_v60 = vpop.xlane.xlu0 %1564  ;;  %v1618_v26 = vmul.f32 0.125, %v1562_v30  ;;  %v776_v43 = vmul.f32 %v5402_v6, %v5402_v6  ;;  %v827_v7 = vsel %vm431_vm0, %v775_v12, 0.0  ;;  %4221 = vmatprep.subr.bf16.mxu1 %v6824_v18 }
 0x1ac   : > { %v1619_v54 = vmul.f32 0.125, %v1565_v60  ;;  %4314 = vmatprep.subr.bf16.mxu0 %v6824_v18 }
 0x1ad   : > { %819 = vadd.xlane.f32.xlu1 %v818_v31  ;;  %v777_v31 = vmul.f32 %v5408_v5, %v5408_v5  ;;  %v5426_v30 = vsub.f32 %v5006_v14, %v1618_v26  ;;  %v830_v62 = vsel %vm431_vm0, %v776_v43, 0.0 }
 0x1ae   : > { %v1568_v38 = vpop.xlane.xlu1 %1567  ;;  %v5434_v60 = vsub.f32 %v5021_v28, %v1619_v54 }
 0x1af   : > { %822 = vadd.xlane.f32.xlu0 %v821_v19  ;;  %v1571_v2 = vpop.xlane.xlu0 %1570  ;;  %v1620_v15 = vmul.f32 0.125, %v1568_v38  ;;  %v778_v19 = vmul.f32 %v5414_v1, %v5414_v1  ;;  %v833_v14 = vsel %vm431_vm0, %v777_v31, 0.0  ;;  %v1657_v38 = vmul.f32 %v5420_v11, %v5420_v11 }
 0x1b0   : > { %v1621_v48 = vmul.f32 0.125, %v1571_v2 }
 0x1b1   : > { %825 = vadd.xlane.f32.xlu1 %v824_v49  ;;  %v5440_v49 = vsub.f32 %v5016_v23, %v1620_v15  ;;  %v1677_v31 = vsel %vm431_vm0, %v1657_v38, 0.0 }
 0x1b2   : > { %v1574_v42 = vpop.xlane.xlu1 %1573  ;;  %v5446_v28 = vsub.f32 %v5031_v37, %v1621_v48 }
 0x1b3   : > { %828 = vadd.xlane.f32.xlu0 %v827_v7  ;;  %v1577_v8 = vpop.xlane.xlu0 %1576  ;;  %v1622_v43 = vmul.f32 0.125, %v1574_v42  ;;  %v836_v7 = vsel %vm714_vm1, %v778_v19, 0.0 }
 0x1b4   : > { %v1623_v2 = vmul.f32 0.125, %v1577_v8 }
 0x1b5   : > { %831 = vadd.xlane.f32.xlu1 %v830_v62  ;;  %v1658_v62 = vmul.f32 %v5426_v30, %v5426_v30  ;;  %v5452_v42 = vsub.f32 %v5026_v33, %v1622_v43 }
 0x1b6   : > { %v1580_v12 = vpop.xlane.xlu1 %1579  ;;  %v5458_v37 = vsub.f32 %v5041_v46, %v1623_v2 }
 0x1b7   : > { %834 = vadd.xlane.f32.xlu0 %v833_v14  ;;  %v1583_v26 = vpop.xlane.xlu0 %1582  ;;  %v1659_v14 = vmul.f32 %v5434_v60, %v5434_v60  ;;  %v1624_v15 = vmul.f32 0.125, %v1580_v12  ;;  %v1680_v19 = vsel %vm431_vm0, %v1658_v62, 0.0 }
 0x1b8   : > { %v1625_v8 = vmul.f32 0.125, %v1583_v26 }
 0x1b9   : > { %837 = vadd.xlane.f32.xlu1 %v836_v7  ;;  %v1660_v7 = vmul.f32 %v5440_v49, %v5440_v49  ;;  %v1683_v38 = vsel %vm431_vm0, %v1659_v14, 0.0  ;;  %v5464_v12 = vsub.f32 %v5036_v41, %v1624_v15 }
 0x1ba   : > { %v1586_v54 = vpop.xlane.xlu1 %1585  ;;  %v5470_v46 = vsub.f32 %v5051_v55, %v1625_v8 }
 0x1bb   : > { %1678 = vadd.xlane.f32.xlu0 %v1677_v31  ;;  %v1589_v23 = vpop.xlane.xlu0 %1588  ;;  %v1661_v31 = vmul.f32 %v5446_v28, %v5446_v28  ;;  %v1626_v43 = vmul.f32 0.125, %v1586_v54  ;;  %v1686_v62 = vsel %vm431_vm0, %v1660_v7, 0.0 }
 0x1bc   : > { %v1627_v26 = vmul.f32 0.125, %v1589_v23 }
 0x1bd   : > { %1681 = vadd.xlane.f32.xlu1 %v1680_v19  ;;  %v1662_v19 = vmul.f32 %v5452_v42, %v5452_v42  ;;  %v1689_v14 = vsel %vm431_vm0, %v1661_v31, 0.0  ;;  %v5476_v54 = vsub.f32 %v5046_v50, %v1626_v43 }
 0x1be   : > { %v1592_v48 = vpop.xlane.xlu1 %1591  ;;  %v5482_v55 = vsub.f32 %v5061_v0, %v1627_v26 }
 0x1bf   : > { %1684 = vadd.xlane.f32.xlu0 %v1683_v38  ;;  %v1595_v33 = vpop.xlane.xlu0 %1594  ;;  %v1663_v38 = vmul.f32 %v5458_v37, %v5458_v37  ;;  %v1628_v15 = vmul.f32 0.125, %v1592_v48  ;;  %v1692_v7 = vsel %vm431_vm0, %v1662_v19, 0.0 }
 0x1c0   : > { %v1629_v23 = vmul.f32 0.125, %v1595_v33 }
 0x1c1   : > { %1687 = vadd.xlane.f32.xlu1 %v1686_v62  ;;  %v1664_v62 = vmul.f32 %v5464_v12, %v5464_v12  ;;  %v1695_v31 = vsel %vm431_vm0, %v1663_v38, 0.0  ;;  %v5488_v48 = vsub.f32 %v5056_v59, %v1628_v15 }
 0x1c2   : > { %v1598_v2 = vpop.xlane.xlu1 %1597  ;;  %v5494_v0 = vsub.f32 %v5071_v9, %v1629_v23 }
 0x1c3   : > { %1690 = vadd.xlane.f32.xlu0 %v1689_v14  ;;  %v1601_v41 = vpop.xlane.xlu0 %1600  ;;  %v1665_v14 = vmul.f32 %v5470_v46, %v5470_v46  ;;  %v1630_v43 = vmul.f32 0.125, %v1598_v2  ;;  %v1698_v19 = vsel %vm431_vm0, %v1664_v62, 0.0 }
 0x1c4   : > { %v1631_v33 = vmul.f32 0.125, %v1601_v41 }
 0x1c5   : > { %1693 = vadd.xlane.f32.xlu1 %v1692_v7  ;;  %v1666_v7 = vmul.f32 %v5476_v54, %v5476_v54  ;;  %v1701_v38 = vsel %vm431_vm0, %v1665_v14, 0.0  ;;  %v5500_v2 = vsub.f32 %v5066_v4, %v1630_v43 }
 0x1c6   : > { %v1604_v8 = vpop.xlane.xlu1 %1603  ;;  %v5506_v9 = vsub.f32 %v5081_v20, %v1631_v33 }
 0x1c7   : > { %1696 = vadd.xlane.f32.xlu0 %v1695_v31  ;;  %v1607_v50 = vpop.xlane.xlu0 %1606  ;;  %v1667_v31 = vmul.f32 %v5482_v55, %v5482_v55  ;;  %v1632_v15 = vmul.f32 0.125, %v1604_v8  ;;  %v1704_v62 = vsel %vm431_vm0, %v1666_v7, 0.0 }
 0x1c8   : > { %v1633_v41 = vmul.f32 0.125, %v1607_v50 }
 0x1c9   : > { %1699 = vadd.xlane.f32.xlu1 %v1698_v19  ;;  %v1668_v19 = vmul.f32 %v5488_v48, %v5488_v48  ;;  %v1707_v14 = vsel %vm431_vm0, %v1667_v31, 0.0  ;;  %v5512_v8 = vsub.f32 %v5076_v13, %v1632_v15 }
 0x1ca   : > { %v1610_v26 = vpop.xlane.xlu1 %1609  ;;  %v5518_v20 = vsub.f32 %v5091_v34, %v1633_v41 }
 0x1cb   : > { %1702 = vadd.xlane.f32.xlu0 %v1701_v38  ;;  %v1613_v59 = vpop.xlane.xlu0 %1612  ;;  %v1669_v38 = vmul.f32 %v5494_v0, %v5494_v0  ;;  %v1634_v43 = vmul.f32 0.125, %v1610_v26  ;;  %v1710_v7 = vsel %vm431_vm0, %v1668_v19, 0.0 }
 0x1cc   : > { %v1635_v50 = vmul.f32 0.125, %v1613_v59 }
 0x1cd   : > { %1705 = vadd.xlane.f32.xlu1 %v1704_v62  ;;  %v1670_v62 = vmul.f32 %v5500_v2, %v5500_v2  ;;  %v1713_v31 = vsel %vm431_vm0, %v1669_v38, 0.0  ;;  %v5524_v26 = vsub.f32 %v5086_v27, %v1634_v43 }
 0x1ce   : > { %v1616_v23 = vpop.xlane.xlu1 %1615  ;;  %v5530_v34 = vsub.f32 %v5101_v47, %v1635_v50 }
 0x1cf   : > { %1708 = vadd.xlane.f32.xlu0 %v1707_v14  ;;  %v2335_v4 = vpop.xlane.xlu0 %2334  ;;  %v1671_v14 = vmul.f32 %v5506_v9, %v5506_v9  ;;  %v1636_v15 = vmul.f32 0.125, %v1616_v23  ;;  %v1716_v19 = vsel %vm431_vm0, %v1670_v62, 0.0  ;;  %v1674_v47 = vmul.f32 %v5524_v26, %v5524_v26 }
 0x1d0   : > { %v2393_v59 = vmul.f32 0.125, %v2335_v4 }
 0x1d1   : > { %1711 = vadd.xlane.f32.xlu1 %v1710_v7  ;;  %v1672_v7 = vmul.f32 %v5512_v8, %v5512_v8  ;;  %v1719_v38 = vsel %vm431_vm0, %v1671_v14, 0.0  ;;  %v5536_v23 = vsub.f32 %v5096_v40, %v1636_v15 }
 0x1d2   : > { %v2338_v33 = vpop.xlane.xlu1 %2337  ;;  %v5542_v4 = vsub.f32 %v5111_v61, %v2393_v59 }
 0x1d3   : > { %1714 = vadd.xlane.f32.xlu0 %v1713_v31  ;;  %v2341_v13 = vpop.xlane.xlu0 %2340  ;;  %v1673_v31 = vmul.f32 %v5518_v20, %v5518_v20  ;;  %v2394_v43 = vmul.f32 0.125, %v2338_v33  ;;  %v1722_v62 = vsel %vm431_vm0, %v1672_v7, 0.0  ;;  %v1728_v7 = vsel %vm431_vm0, %v1674_v47, 0.0 }
 0x1d4   : > { %v2395_v50 = vmul.f32 0.125, %v2341_v13  ;;  %v1676_v61 = vmul.f32 %v5536_v23, %v5536_v23 }
 0x1d5   : > { %1717 = vadd.xlane.f32.xlu1 %v1716_v19  ;;  %v1725_v19 = vsel %vm431_vm0, %v1673_v31, 0.0  ;;  %v5549_v33 = vsub.f32 %v5106_v53, %v2394_v43 }
 0x1d6   : > { %v2344_v41 = vpop.xlane.xlu1 %2343  ;;  %v5555_v13 = vsub.f32 %v5121_v10, %v2395_v50 }
 0x1d7   : > { %1720 = vadd.xlane.f32.xlu0 %v1719_v38  ;;  %v2347_v27 = vpop.xlane.xlu0 %2346  ;;  %v1675_v38 = vmul.f32 %v5530_v34, %v5530_v34  ;;  %6901 = vst [vmem:[#allocation36_spill] sm:$0xff] %v5549_v33  ;;  %v2396_v15 = vmul.f32 0.125, %v2344_v41  ;;  %v2434_v43 = vmul.f32 %v5549_v33, %v5549_v33 }
 0x1d8   : > { %6902 = vst [vmem:[#allocation37_spill] sm:$0xff] %v5555_v13  ;;  %v2397_v59 = vmul.f32 0.125, %v2347_v27  ;;  %v1734_v27 = vsel %vm714_vm1, %v1676_v61, 0.0 }
 0x1d9   : > { %1723 = vadd.xlane.f32.xlu1 %v1722_v62  ;;  %v1731_v62 = vsel %vm431_vm0, %v1675_v38, 0.0  ;;  %v5566_v41 = vsub.f32 %v5116_v3, %v2396_v15  ;;  %v387_v15 = vld [vmem:[%s5563_s21 + $0x8] sm:$0xff] }
 0x1da   : > { %v2350_v14 = vpop.xlane.xlu1 %2349  ;;  %v5572_v47 = vsub.f32 %v5131_v29, %v2397_v59  ;;  %3814 = vmatprep.mubr.msk.f32.mxu1 %vm1022_vm2, %v387_v15  ;;  %3986 = vmatprep.mubr.msk.f32.mxu0 %vm1022_vm2, %v387_v15 }
 0x1db   : > { %1726 = vadd.xlane.f32.xlu0 %v1725_v19  ;;  %v2353_v40 = vpop.xlane.xlu0 %2352  ;;  %v2433_v19 = vmul.f32 %v5542_v4, %v5542_v4  ;;  %6903 = vst [vmem:[#allocation38_spill] sm:$0xff] %v5566_v41  ;;  %v2398_v10 = vmul.f32 0.125, %v2350_v14  ;;  %v2436_v29 = vmul.f32 %v5566_v41, %v5566_v41 }
 0x1dc   : > { %6904 = vst [vmem:[#allocation39_spill] sm:$0xff] %v5572_v47  ;;  %v2399_v50 = vmul.f32 0.125, %v2353_v40  ;;  %v6906_v40 = vld [vmem:[#allocation3_spill] sm:$0xff] }
 0x1dd   : > { %1729 = vadd.xlane.f32.xlu1 %v1728_v7  ;;  %v2453_v7 = vsel %vm431_vm0, %v2433_v19, 0.0  ;;  %v5579_v14 = vsub.f32 %v5126_v16, %v2398_v10  ;;  %v2437_v16 = vmul.f32 %v5572_v47, %v5572_v47  ;;  %v6908_v10 = vld [vmem:[#allocation2_spill] sm:$0xff] }
 0x1de   : > { %v2356_v31 = vpop.xlane.xlu1 %2355  ;;  %v5587_v59 = vsub.f32 %v6906_v40, %v2399_v50  ;;  %v6910_v50 = vld [vmem:[#allocation5_spill] sm:$0xff] }
 0x1df   : > { %1732 = vadd.xlane.f32.xlu0 %v1731_v62  ;;  %v2359_v53 = vpop.xlane.xlu0 %2358  ;;  %v2435_v62 = vmul.f32 %v5555_v13, %v5555_v13  ;;  %6905 = vst [vmem:[#allocation40_spill] sm:$0xff] %v5579_v14  ;;  %v2400_v61 = vmul.f32 0.125, %v2356_v31  ;;  %v2462_v13 = vsel %vm431_vm0, %v2436_v29, 0.0  ;;  %v2438_v15 = vmul.f32 %v5579_v14, %v5579_v14 }
 0x1e0   : > { %6907 = vst [vmem:[#allocation3_spill] sm:$0xff] %v5587_v59  ;;  %v2401_v19 = vmul.f32 0.125, %v2359_v53  ;;  %v2465_v40 = vsel %vm431_vm0, %v2437_v16, 0.0 }
 0x1e1   : > { %1735 = vadd.xlane.f32.xlu1 %v1734_v27  ;;  %v2456_v27 = vsel %vm431_vm0, %v2434_v43, 0.0  ;;  %v2459_v18 = vsel %vm431_vm0, %v2435_v62, 0.0  ;;  %v5593_v43 = vsub.f32 %v6908_v10, %v2400_v61  ;;  %v6912_v10 = vld [vmem:[#allocation4_spill] sm:$0xff]  ;;  %v2468_v47 = vsel %vm431_vm0, %v2438_v15, 0.0 }
 0x1e2   : > { %v2362_v38 = vpop.xlane.xlu1 %2361  ;;  %v5599_v53 = vsub.f32 %v6910_v50, %v2401_v19  ;;  %v6914_v19 = vld [vmem:[#allocation7_spill] sm:$0xff] }
 0x1e3   : > { %2454 = vadd.xlane.f32.xlu0 %v2453_v7  ;;  %v2365_v3 = vpop.xlane.xlu0 %2364  ;;  %6909 = vst [vmem:[#allocation2_spill] sm:$0xff] %v5593_v43  ;;  %v2402_v41 = vmul.f32 0.125, %v2362_v38 }
 0x1e4   : > { %6911 = vst [vmem:[#allocation5_spill] sm:$0xff] %v5599_v53 }
 0x1e5   : > { %2457 = vadd.xlane.f32.xlu1 %v2456_v27  ;;  %v2403_v27 = vmul.f32 0.125, %v2365_v3  ;;  %v5605_v38 = vsub.f32 %v6912_v10, %v2402_v41  ;;  %v6916_v10 = vld [vmem:[#allocation6_spill] sm:$0xff] }
 0x1e6   : > { %v2368_v7 = vpop.xlane.xlu1 %2367 }
 0x1e7   : > { %2460 = vadd.xlane.f32.xlu0 %v2459_v18  ;;  %v2371_v31 = vpop.xlane.xlu0 %2370  ;;  %v2439_v18 = vmul.f32 %v5587_v59, %v5587_v59  ;;  %6913 = vst [vmem:[#allocation4_spill] sm:$0xff] %v5605_v38  ;;  %v2404_v29 = vmul.f32 0.125, %v2368_v7  ;;  %v5611_v3 = vsub.f32 %v6914_v19, %v2403_v27  ;;  %v6918_v27 = vld [vmem:[#allocation9_spill] sm:$0xff] }
 0x1e8   : > { %v2405_v50 = vmul.f32 0.125, %v2371_v31 }
 0x1e9   : > { %2463 = vadd.xlane.f32.xlu1 %v2462_v13  ;;  %v2440_v13 = vmul.f32 %v5593_v43, %v5593_v43  ;;  %6915 = vst [vmem:[#allocation7_spill] sm:$0xff] %v5611_v3  ;;  %v2471_v14 = vsel %vm431_vm0, %v2439_v18, 0.0  ;;  %v5617_v7 = vsub.f32 %v6916_v10, %v2404_v29  ;;  %v6920_v10 = vld [vmem:[#allocation8_spill] sm:$0xff] }
 0x1ea   : > { %v2374_v62 = vpop.xlane.xlu1 %2373  ;;  %v5623_v31 = vsub.f32 %v6918_v27, %v2405_v50  ;;  %v6922_v50 = vld [vmem:[#allocation11_spill] sm:$0xff] }
 0x1eb   : > { %2466 = vadd.xlane.f32.xlu0 %v2465_v40  ;;  %v2377_v61 = vpop.xlane.xlu0 %2376  ;;  %v2441_v40 = vmul.f32 %v5599_v53, %v5599_v53  ;;  %6917 = vst [vmem:[#allocation6_spill] sm:$0xff] %v5617_v7  ;;  %v2406_v15 = vmul.f32 0.125, %v2374_v62  ;;  %v2474_v59 = vsel %vm431_vm0, %v2440_v13, 0.0 }
 0x1ec   : > { %6919 = vst [vmem:[#allocation9_spill] sm:$0xff] %v5623_v31  ;;  %v2407_v19 = vmul.f32 0.125, %v2377_v61 }
 0x1ed   : > { %2469 = vadd.xlane.f32.xlu1 %v2468_v47  ;;  %v2442_v47 = vmul.f32 %v5605_v38, %v5605_v38  ;;  %v2477_v43 = vsel %vm431_vm0, %v2441_v40, 0.0  ;;  %v5629_v62 = vsub.f32 %v6920_v10, %v2406_v15  ;;  %v6924_v10 = vld [vmem:[#allocation10_spill] sm:$0xff] }
 0x1ee   : > { %v2380_v16 = vpop.xlane.xlu1 %2379  ;;  %v5635_v61 = vsub.f32 %v6922_v50, %v2407_v19  ;;  %v6926_v19 = vld [vmem:[#allocation13_spill] sm:$0xff] }
 0x1ef   : > { %2472 = vadd.xlane.f32.xlu0 %v2471_v14  ;;  %v2383_v41 = vpop.xlane.xlu0 %2382  ;;  %v2443_v14 = vmul.f32 %v5611_v3, %v5611_v3  ;;  %6921 = vst [vmem:[#allocation8_spill] sm:$0xff] %v5629_v62  ;;  %v2408_v13 = vmul.f32 0.125, %v2380_v16  ;;  %v2480_v53 = vsel %vm431_vm0, %v2442_v47, 0.0 }
 0x1f0   : > { %6923 = vst [vmem:[#allocation11_spill] sm:$0xff] %v5635_v61  ;;  %v2409_v27 = vmul.f32 0.125, %v2383_v41 }
 0x1f1   : > { %2475 = vadd.xlane.f32.xlu1 %v2474_v59  ;;  %v2444_v59 = vmul.f32 %v5617_v7, %v5617_v7  ;;  %v2483_v38 = vsel %vm431_vm0, %v2443_v14, 0.0  ;;  %v5641_v16 = vsub.f32 %v6924_v10, %v2408_v13  ;;  %v6928_v10 = vld [vmem:[#allocation12_spill] sm:$0xff] }
 0x1f2   : > { %v2386_v18 = vpop.xlane.xlu1 %2385  ;;  %v5647_v41 = vsub.f32 %v6926_v19, %v2409_v27  ;;  %v6930_v27 = vld [vmem:[#allocation15_spill] sm:$0xff] }
 0x1f3   : > { %2478 = vadd.xlane.f32.xlu0 %v2477_v43  ;;  %v2389_v29 = vpop.xlane.xlu0 %2388  ;;  %v2445_v43 = vmul.f32 %v5623_v31, %v5623_v31  ;;  %6925 = vst [vmem:[#allocation10_spill] sm:$0xff] %v5641_v16  ;;  %v2410_v47 = vmul.f32 0.125, %v2386_v18  ;;  %v2486_v3 = vsel %vm431_vm0, %v2444_v59, 0.0 }
 0x1f4   : > { %6927 = vst [vmem:[#allocation13_spill] sm:$0xff] %v5647_v41  ;;  %v2411_v50 = vmul.f32 0.125, %v2389_v29 }
 0x1f5   : > { %2481 = vadd.xlane.f32.xlu1 %v2480_v53  ;;  %v2446_v53 = vmul.f32 %v5629_v62, %v5629_v62  ;;  %v2489_v7 = vsel %vm431_vm0, %v2445_v43, 0.0  ;;  %v5653_v18 = vsub.f32 %v6928_v10, %v2410_v47  ;;  %v6932_v10 = vld [vmem:[#allocation14_spill] sm:$0xff] }
 0x1f6   : > { %v2392_v40 = vpop.xlane.xlu1 %2391  ;;  %v5659_v29 = vsub.f32 %v6930_v27, %v2411_v50  ;;  %v6934_v50 = vld [vmem:[#allocation17_spill] sm:$0xff] }
 0x1f7   : > { %2484 = vadd.xlane.f32.xlu0 %v2483_v38  ;;  %v3111_v15 = vpop.xlane.xlu0 %3110  ;;  %v2447_v38 = vmul.f32 %v5635_v61, %v5635_v61  ;;  %6929 = vst [vmem:[#allocation12_spill] sm:$0xff] %v5653_v18  ;;  %v2412_v59 = vmul.f32 0.125, %v2392_v40  ;;  %v2492_v31 = vsel %vm431_vm0, %v2446_v53, 0.0 }
 0x1f8   : > { %6931 = vst [vmem:[#allocation15_spill] sm:$0xff] %v5659_v29  ;;  %v3169_v19 = vmul.f32 0.125, %v3111_v15 }
 0x1f9   : > { %2487 = vadd.xlane.f32.xlu1 %v2486_v3  ;;  %v2448_v3 = vmul.f32 %v5641_v16, %v5641_v16  ;;  %v2495_v62 = vsel %vm431_vm0, %v2447_v38, 0.0  ;;  %v5665_v40 = vsub.f32 %v6932_v10, %v2412_v59  ;;  %v6936_v10 = vld [vmem:[#allocation16_spill] sm:$0xff] }
 0x1fa   : > { %v3114_v14 = vpop.xlane.xlu1 %3113  ;;  %v5671_v15 = vsub.f32 %v6934_v50, %v3169_v19  ;;  %v6938_v19 = vld [vmem:[#allocation19_spill] sm:$0xff] }
 0x1fb   : > { %2490 = vadd.xlane.f32.xlu0 %v2489_v7  ;;  %v3117_v13 = vpop.xlane.xlu0 %3116  ;;  %v2449_v7 = vmul.f32 %v5647_v41, %v5647_v41  ;;  %6933 = vst [vmem:[#allocation14_spill] sm:$0xff] %v5665_v40  ;;  %v3170_v53 = vmul.f32 0.125, %v3114_v14  ;;  %v2498_v61 = vsel %vm431_vm0, %v2448_v3, 0.0 }
 0x1fc   : > { %6935 = vst [vmem:[#allocation17_spill] sm:$0xff] %v5671_v15  ;;  %v3171_v27 = vmul.f32 0.125, %v3117_v13 }
 0x1fd   : > { %2493 = vadd.xlane.f32.xlu1 %v2492_v31  ;;  %v2450_v31 = vmul.f32 %v5653_v18, %v5653_v18  ;;  %v2501_v16 = vsel %vm431_vm0, %v2449_v7, 0.0  ;;  %v5677_v14 = vsub.f32 %v6936_v10, %v3170_v53  ;;  %v6940_v10 = vld [vmem:[#allocation18_spill] sm:$0xff] }
 0x1fe   : > { %v3120_v43 = vpop.xlane.xlu1 %3119  ;;  %v5683_v13 = vsub.f32 %v6938_v19, %v3171_v27  ;;  %v6942_v27 = vld [vmem:[#allocation21_spill] sm:$0xff] }
 0x1ff   : > { %2496 = vadd.xlane.f32.xlu0 %v2495_v62  ;;  %v3123_v47 = vpop.xlane.xlu0 %3122  ;;  %v2451_v62 = vmul.f32 %v5659_v29, %v5659_v29  ;;  %6937 = vst [vmem:[#allocation16_spill] sm:$0xff] %v5677_v14  ;;  %v3172_v3 = vmul.f32 0.125, %v3120_v43  ;;  %v2504_v41 = vsel %vm431_vm0, %v2450_v31, 0.0 }
 0x200   : > { %6939 = vst [vmem:[#allocation19_spill] sm:$0xff] %v5683_v13  ;;  %v3173_v50 = vmul.f32 0.125, %v3123_v47 }
 0x201   : > { %2499 = vadd.xlane.f32.xlu1 %v2498_v61  ;;  %v2452_v61 = vmul.f32 %v5665_v40, %v5665_v40  ;;  %v2507_v18 = vsel %vm431_vm0, %v2451_v62, 0.0  ;;  %v5689_v43 = vsub.f32 %v6940_v10, %v3172_v3  ;;  %v6944_v10 = vld [vmem:[#allocation20_spill] sm:$0xff] }
 0x202   : > { %v3126_v38 = vpop.xlane.xlu1 %3125  ;;  %v5695_v47 = vsub.f32 %v6942_v27, %v3173_v50  ;;  %v6946_v50 = vld [vmem:[#allocation23_spill] sm:$0xff] }
 0x203   : > { %2502 = vadd.xlane.f32.xlu0 %v2501_v16  ;;  %v3129_v59 = vpop.xlane.xlu0 %3128  ;;  %v3209_v16 = vmul.f32 %v5671_v15, %v5671_v15  ;;  %6941 = vst [vmem:[#allocation18_spill] sm:$0xff] %v5689_v43  ;;  %v3174_v31 = vmul.f32 0.125, %v3126_v38  ;;  %v2510_v29 = vsel %vm714_vm1, %v2452_v61, 0.0 }
 0x204   : > { %6943 = vst [vmem:[#allocation21_spill] sm:$0xff] %v5695_v47  ;;  %v3175_v19 = vmul.f32 0.125, %v3129_v59 }
 0x205   : > { %2505 = vadd.xlane.f32.xlu1 %v2504_v41  ;;  %v3210_v41 = vmul.f32 %v5677_v14, %v5677_v14  ;;  %v3229_v40 = vsel %vm431_vm0, %v3209_v16, 0.0  ;;  %v5701_v38 = vsub.f32 %v6944_v10, %v3174_v31  ;;  %v6948_v10 = vld [vmem:[#allocation22_spill] sm:$0xff] }
 0x206   : > { %v3132_v7 = vpop.xlane.xlu1 %3131  ;;  %v5707_v59 = vsub.f32 %v6946_v50, %v3175_v19  ;;  %v6950_v19 = vld [vmem:[#allocation25_spill] sm:$0xff] }
 0x207   : > { %2508 = vadd.xlane.f32.xlu0 %v2507_v18  ;;  %v3135_v53 = vpop.xlane.xlu0 %3134  ;;  %v3211_v18 = vmul.f32 %v5683_v13, %v5683_v13  ;;  %6945 = vst [vmem:[#allocation20_spill] sm:$0xff] %v5701_v38  ;;  %v3176_v61 = vmul.f32 0.125, %v3132_v7  ;;  %v3232_v15 = vsel %vm431_vm0, %v3210_v41, 0.0 }
 0x208   : > { %6947 = vst [vmem:[#allocation23_spill] sm:$0xff] %v5707_v59  ;;  %v3177_v27 = vmul.f32 0.125, %v3135_v53 }
 0x209   : > { %2511 = vadd.xlane.f32.xlu1 %v2510_v29  ;;  %v3212_v29 = vmul.f32 %v5689_v43, %v5689_v43  ;;  %v3235_v14 = vsel %vm431_vm0, %v3211_v18, 0.0  ;;  %v5713_v7 = vsub.f32 %v6948_v10, %v3176_v61  ;;  %v6952_v10 = vld [vmem:[#allocation24_spill] sm:$0xff] }
 0x20a   : > { %v3138_v62 = vpop.xlane.xlu1 %3137  ;;  %v5719_v53 = vsub.f32 %v6950_v19, %v3177_v27  ;;  %v6954_v27 = vld [vmem:[#allocation27_spill] sm:$0xff] }
 0x20b   : > { %3230 = vadd.xlane.f32.xlu0 %v3229_v40  ;;  %v3141_v3 = vpop.xlane.xlu0 %3140  ;;  %v3213_v40 = vmul.f32 %v5695_v47, %v5695_v47  ;;  %6949 = vst [vmem:[#allocation22_spill] sm:$0xff] %v5713_v7  ;;  %v3178_v41 = vmul.f32 0.125, %v3138_v62  ;;  %v3238_v13 = vsel %vm431_vm0, %v3212_v29, 0.0 }
 0x20c   : > { %6951 = vst [vmem:[#allocation25_spill] sm:$0xff] %v5719_v53  ;;  %v3179_v50 = vmul.f32 0.125, %v3141_v3 }
 0x20d   : > { %3233 = vadd.xlane.f32.xlu1 %v3232_v15  ;;  %v3214_v15 = vmul.f32 %v5701_v38, %v5701_v38  ;;  %v3241_v43 = vsel %vm431_vm0, %v3213_v40, 0.0  ;;  %v5725_v62 = vsub.f32 %v6952_v10, %v3178_v41  ;;  %v6955_v41 = vld [vmem:[#allocation26_spill] sm:$0xff] }
 0x20e   : > { %v3144_v16 = vpop.xlane.xlu1 %3143  ;;  %v5731_v3 = vsub.f32 %v6954_v27, %v3179_v50 }
 0x20f   : > { %3236 = vadd.xlane.f32.xlu0 %v3235_v14  ;;  %v3147_v31 = vpop.xlane.xlu0 %3146  ;;  %v3215_v14 = vmul.f32 %v5707_v59, %v5707_v59  ;;  %6953 = vst [vmem:[#allocation24_spill] sm:$0xff] %v5725_v62  ;;  %v3180_v29 = vmul.f32 0.125, %v3144_v16  ;;  %v3244_v47 = vsel %vm431_vm0, %v3214_v15, 0.0 }
 0x210   : > { %v3181_v19 = vmul.f32 0.125, %v3147_v31  ;;  %v6956_v31 = vld [vmem:[#allocation29_spill] sm:$0xff] }
 0x211   : > { %3239 = vadd.xlane.f32.xlu1 %v3238_v13  ;;  %v3216_v13 = vmul.f32 %v5713_v7, %v5713_v7  ;;  %v3247_v38 = vsel %vm431_vm0, %v3215_v14, 0.0  ;;  %v5737_v10 = vsub.f32 %v6955_v41, %v3180_v29  ;;  %v6958_v41 = vld [vmem:[#allocation28_spill] sm:$0xff] }
 0x212   : > { %v3150_v18 = vpop.xlane.xlu1 %3149  ;;  %v5743_v27 = vsub.f32 %v6956_v31, %v3181_v19 }
 0x213   : > { %3242 = vadd.xlane.f32.xlu0 %v3241_v43  ;;  %v3153_v61 = vpop.xlane.xlu0 %3152  ;;  %v3217_v43 = vmul.f32 %v5719_v53, %v5719_v53  ;;  %v3182_v16 = vmul.f32 0.125, %v3150_v18  ;;  %v3250_v59 = vsel %vm431_vm0, %v3216_v13, 0.0  ;;  %v3220_v19 = vmul.f32 %v5737_v10, %v5737_v10 }
 0x214   : > { %6957 = vst [vmem:[#allocation27_spill] sm:$0xff] %v5743_v27  ;;  %v3183_v14 = vmul.f32 0.125, %v3153_v61 }
 0x215   : > { %3245 = vadd.xlane.f32.xlu1 %v3244_v47  ;;  %v3218_v47 = vmul.f32 %v5725_v62, %v5725_v62  ;;  %v3253_v53 = vsel %vm431_vm0, %v3217_v43, 0.0  ;;  %v5749_v13 = vsub.f32 %v6958_v41, %v3182_v16 }
 0x216   : > { %v3156_v40 = vpop.xlane.xlu1 %3155  ;;  %v5755_v43 = vsub.f32 %v5281_v25, %v3183_v14 }
 0x217   : > { %3248 = vadd.xlane.f32.xlu0 %v3247_v38  ;;  %v3219_v38 = vmul.f32 %v5731_v3, %v5731_v3  ;;  %6959 = vst [vmem:[#allocation26_spill] sm:$0xff] %v5749_v13  ;;  %v3184_v33 = vmul.f32 0.125, %v3156_v40  ;;  %v6961_v40 = vld [vmem:[#allocation30_spill] sm:$0xff]  ;;  %v3222_v25 = vmul.f32 %v5749_v13, %v5749_v13 }
 0x218   : > { %v781_v15 = vpop.xlane.xlu0 %780  ;;  %6960 = vst [vmem:[#allocation29_spill] sm:$0xff] %v5755_v43 }
 0x219   : > { %v839_v50 = vmul.f32 0.125, %v781_v15  ;;  %3251 = vadd.xlane.f32.xlu1 %v3250_v59  ;;  %v3256_v59 = vsel %vm431_vm0, %v3218_v47, 0.0  ;;  %v5761_v16 = vsub.f32 %v6961_v40, %v3184_v33  ;;  %v3268_v40 = vsel %vm431_vm0, %v3222_v25, 0.0 }
 0x21a   : > { %v784_v7 = vpop.xlane.xlu1 %783 }
 0x21b   : > { %v859_v29 = vadd.f32 1e-05, %v839_v50  ;;  %v840_v18 = vmul.f32 0.125, %v784_v7  ;;  %3254 = vadd.xlane.f32.xlu0 %v3253_v53  ;;  %v3259_v7 = vsel %vm431_vm0, %v3219_v38, 0.0  ;;  %v3221_v53 = vmul.f32 %v5743_v27, %v5743_v27  ;;  %6962 = vst [vmem:[#allocation28_spill] sm:$0xff] %v5761_v16 }
 0x21c   : > { %v3159_v62 = vpop.xlane.xlu0 %3158 }
 0x21d   : > { %4421 = vrsqrt.f32 %v859_v29  ;;  %v860_v61 = vadd.f32 1e-05, %v840_v18  ;;  %3257 = vadd.xlane.f32.xlu1 %v3256_v59  ;;  %v3185_v15 = vmul.f32 0.125, %v3159_v62  ;;  %v3262_v29 = vsel %vm431_vm0, %v3220_v19, 0.0  ;;  %v6963_v62 = vld [vmem:[#allocation33_spill] sm:$0xff] }
 0x21e   : > { %v3162_v50 = vpop.xlane.xlu1 %3161  ;;  %v3265_v41 = vsel %vm431_vm0, %v3221_v53, 0.0  ;;  %v3223_v59 = vmul.f32 %v5755_v43, %v5755_v43 }
 0x21f   : > { %4423 = vrsqrt.f32 %v860_v61  ;;  %3260 = vadd.xlane.f32.xlu0 %v3259_v7  ;;  %v3186_v47 = vmul.f32 0.125, %v3162_v50  ;;  %v5767_v18 = vsub.f32 %v6963_v62, %v3185_v15  ;;  %v6965_v50 = vld [vmem:[#allocation35_spill] sm:$0xff]  ;;  %v3224_v15 = vmul.f32 %v5761_v16, %v5761_v16  ;;  %v5792_v16 = vld [vmem:[%s4902_s17 + $0x2] ss:$0 sm:$0xff] }
 0x220   : > { %v787_v31 = vpop.xlane.xlu0 %786  ;;  %v3271_v62 = vsel %vm431_vm0, %v3223_v59, 0.0 }
 0x221   : > { %v841_v14 = vmul.f32 0.125, %v787_v31  ;;  %3263 = vadd.xlane.f32.xlu1 %v3262_v29  ;;  %6964 = vst [vmem:[#allocation30_spill] sm:$0xff] %v5767_v18  ;;  %v5773_v19 = vsub.f32 %v6965_v50, %v3186_v47  ;;  %v5782_v47 = vld [vmem:[%s4902_s17 + $0x1] ss:$0 sm:$0xff] }
 0x222   : > { %v790_v38 = vpop.xlane.xlu1 %789 }
 0x223   : > { %v861_v33 = vadd.f32 1e-05, %v841_v14  ;;  %v842_v61 = vmul.f32 0.125, %v790_v38  ;;  %3266 = vadd.xlane.f32.xlu0 %v3265_v41  ;;  %6966 = vst [vmem:[#allocation33_spill] sm:$0xff] %v5773_v19  ;;  %v3225_v14 = vmul.f32 %v5767_v18, %v5767_v18  ;;  %v3226_v50 = vmul.f32 %v5773_v19, %v5773_v19 }
 0x224   : > { %v3165_v7 = vpop.xlane.xlu0 %3164 }
 0x225   : > { %4425 = vrsqrt.f32 %v861_v33  ;;  %v862_v31 = vadd.f32 1e-05, %v842_v61  ;;  %v3187_v29 = vmul.f32 0.125, %v3165_v7  ;;  %3269 = vadd.xlane.f32.xlu1 %v3268_v40  ;;  %v3274_v61 = vsel %vm431_vm0, %v3224_v15, 0.0  ;;  %v6968_v7 = vld [vmem:[#allocation32_spill] sm:$0xff]  ;;  %v6970_v15 = vld [vmem:[#allocation31_spill] sm:$0xff] }
 0x226   : > { %v3168_v53 = vpop.xlane.xlu1 %3167  ;;  %v3280_v13 = vsel %vm431_vm0, %v3226_v50, 0.0 }
 0x227   : > { %v4422_v38 = vpop.eup %4421  ;;  %4427 = vrsqrt.f32 %v862_v31  ;;  %v5785_v25 = vsub.f32 %v5318_v24, %v3187_v29  ;;  %v3188_v41 = vmul.f32 0.125, %v3168_v53  ;;  %3272 = vadd.xlane.f32.xlu0 %v3271_v62  ;;  %v3277_v29 = vsel %vm431_vm0, %v3225_v14, 0.0 }
 0x228   : > { %v793_v33 = vpop.xlane.xlu0 %792  ;;  %v899_v59 = vmul.f32 %v4422_v38, %v6968_v7 }
 0x229   : > { %6967 = vst [vmem:[#allocation35_spill] sm:$0xff] %v5785_v25  ;;  %v4424_v40 = vpop.eup %4423  ;;  %v5795_v18 = vsub.f32 %v5326_v35, %v3188_v41  ;;  %v843_v31 = vmul.f32 0.125, %v793_v33  ;;  %3275 = vadd.xlane.f32.xlu1 %v3274_v61  ;;  %v3227_v53 = vmul.f32 %v5785_v25, %v5785_v25 }
 0x22a   : > { %v796_v24 = vpop.xlane.xlu1 %795  ;;  %v900_v62 = vmul.f32 %v4424_v40, %v6970_v15  ;;  %v923_v19 = vmul.f32 %v5782_v47, %v899_v59 }
 0x22b   : > { %6969 = vst [vmem:[#allocation32_spill] sm:$0xff] %v5795_v18  ;;  %v863_v43 = vadd.f32 1e-05, %v843_v31  ;;  %v844_v38 = vmul.f32 0.125, %v796_v24  ;;  %3278 = vadd.xlane.f32.xlu0 %v3277_v29  ;;  %v3228_v35 = vmul.f32 %v5795_v18, %v5795_v18  ;;  %v3283_v59 = vsel %vm431_vm0, %v3227_v53, 0.0 }
 0x22c   : > { %v799_v7 = vpop.xlane.xlu0 %798  ;;  %v924_v41 = vmul.f32 %v5782_v47, %v900_v62  ;;  %v947_v14 = vadd.f32 %v5792_v16, %v923_v19  ;;  %v6971_v19 = vld [vmem:[#allocation34_spill] sm:$0xff] }
 0x22d   : > { %4429 = vrsqrt.f32 %v863_v43  ;;  %v864_v33 = vadd.f32 1e-05, %v844_v38  ;;  %v845_v61 = vmul.f32 0.125, %v799_v7  ;;  %3281 = vadd.xlane.f32.xlu1 %v3280_v13  ;;  %v3286_v18 = vsel %vm714_vm1, %v3228_v35, 0.0 }
 0x22e   : > { %v802_v40 = vpop.xlane.xlu1 %801  ;;  %v948_v31 = vadd.f32 %v5792_v16, %v924_v41  ;;  %v967_v62 = vmax.f32 %v947_v14, 0.0 }
 0x22f   : > { %v4426_v24 = vpop.eup %4425  ;;  %4431 = vrsqrt.f32 %v864_v33  ;;  %v865_v29 = vadd.f32 1e-05, %v845_v61  ;;  %v846_v50 = vmul.f32 0.125, %v802_v40  ;;  %3284 = vadd.xlane.f32.xlu0 %v3283_v59 }
 0x230   : > { %v805_v15 = vpop.xlane.xlu0 %804  ;;  %v968_v25 = vmax.f32 %v948_v31, 0.0  ;;  %v901_v43 = vmul.f32 %v4426_v24, %v6971_v19 }
 0x231   : > { %v4428_v38 = vpop.eup %4427  ;;  %4433 = vrsqrt.f32 %v865_v29  ;;  %v866_v13 = vadd.f32 1e-05, %v846_v50  ;;  %v847_v7 = vmul.f32 0.125, %v805_v15  ;;  %3287 = vadd.xlane.f32.xlu1 %v3286_v18  ;;  %v6972_v29 = vmov 0.0|0.0  }
 0x232   : > { %v808_v53 = vpop.xlane.xlu1 %807  ;;  %v4222_v27 = vpack.c.bf16 %v968_v25, %v967_v62  ;;  %v902_v41 = vmul.f32 %v4428_v38, %v5308_v22  ;;  %v925_v33 = vmul.f32 %v5782_v47, %v901_v43 }
 0x233   : > { %4435 = vrsqrt.f32 %v866_v13  ;;  %v867_v61 = vadd.f32 1e-05, %v847_v7  ;;  %v848_v40 = vmul.f32 0.125, %v808_v53 }
 0x234   : > { %v811_v59 = vpop.xlane.xlu0 %810  ;;  %4223 = vmatpush1.bf16.msra.mxu1 %v4222_v27  ;;  %v926_v35 = vmul.f32 %v5782_v47, %v902_v41  ;;  %v949_v14 = vadd.f32 %v5792_v16, %v925_v33 }
 0x235   : > { %4437 = vrsqrt.f32 %v867_v61  ;;  %v868_v31 = vadd.f32 1e-05, %v848_v40  ;;  %v849_v24 = vmul.f32 0.125, %v811_v59  ;;  %4224 = vmatprep.subr.bf16.mxu1 %v6972_v29 }
 0x236   : > { %v814_v18 = vpop.xlane.xlu1 %813  ;;  %v950_v22 = vadd.f32 %v5792_v16, %v926_v35  ;;  %v969_v19 = vmax.f32 %v949_v14, 0.0 }
 0x237   : > { %v4430_v25 = vpop.eup %4429  ;;  %4439 = vrsqrt.f32 %v868_v31  ;;  %v869_v50 = vadd.f32 1e-05, %v849_v24  ;;  %v850_v15 = vmul.f32 0.125, %v814_v18  ;;  %v4645_v18 = vmov 0  }
 0x238   : > { %v817_v62 = vpop.xlane.xlu0 %816  ;;  %v970_v27 = vmax.f32 %v950_v22, 0.0  ;;  %v903_v43 = vmul.f32 %v4430_v25, %v5323_v58  ;;  %4416 = vset.pattern.permute.xlu1 %v4645_v18  ;;  %4415 = vset.pattern.permute.xlu0 %v4645_v18 }
 0x239   : > { %v4432_v38 = vpop.eup %4431  ;;  %4441 = vrsqrt.f32 %v869_v50  ;;  %v870_v13 = vadd.f32 1e-05, %v850_v15  ;;  %v851_v7 = vmul.f32 0.125, %v817_v62 }
 0x23a   : > { %v820_v53 = vpop.xlane.xlu1 %819  ;;  %v4225_v41 = vpack.c.bf16 %v970_v27, %v969_v19  ;;  %v904_v33 = vmul.f32 %v4432_v38, %v5330_v44  ;;  %v927_v61 = vmul.f32 %v5782_v47, %v903_v43 }
 0x23b   : > { %v4434_v40 = vpop.eup %4433  ;;  %4443 = vrsqrt.f32 %v870_v13  ;;  %v871_v59 = vadd.f32 1e-05, %v851_v7  ;;  %v852_v35 = vmul.f32 0.125, %v820_v53  ;;  %v5834_v13 = vld [vmem:[%s5827_s8 + $0x8] sm:$0xff] }
 0x23c   : > { %v823_v31 = vpop.xlane.xlu0 %822  ;;  %4226 = vmatpush1.bf16.msra.mxu1 %v4225_v41  ;;  %v928_v14 = vmul.f32 %v5782_v47, %v904_v33  ;;  %v951_v58 = vadd.f32 %v5792_v16, %v927_v61  ;;  %v905_v24 = vmul.f32 %v4434_v40, %v5336_v32 }
 0x23d   : > { %v4436_v44 = vpop.eup %4435  ;;  %4445 = vrsqrt.f32 %v871_v59  ;;  %v872_v22 = vadd.f32 1e-05, %v852_v35  ;;  %v853_v25 = vmul.f32 0.125, %v823_v31  ;;  %4227 = vmatprep.subr.bf16.mxu1 %v6972_v29 }
 0x23e   : > { %v826_v50 = vpop.xlane.xlu1 %825  ;;  %v952_v15 = vadd.f32 %v5792_v16, %v928_v14  ;;  %v906_v32 = vmul.f32 %v4436_v44, %v5343_v52  ;;  %v929_v62 = vmul.f32 %v5782_v47, %v905_v24  ;;  %v971_v38 = vmax.f32 %v951_v58, 0.0  ;;  %v5843_v24 = vld [vmem:[%s5827_s8] sm:$0xff] }
 0x23f   : > { %v4438_v19 = vpop.eup %4437  ;;  %4447 = vrsqrt.f32 %v872_v22  ;;  %v873_v27 = vadd.f32 1e-05, %v853_v25  ;;  %v854_v43 = vmul.f32 0.125, %v826_v50  ;;  %v5847_v25 = vld [vmem:[%s5827_s8 + $0x10] sm:$0xff] }
 0x240   : > { %v829_v7 = vpop.xlane.xlu0 %828  ;;  %v972_v53 = vmax.f32 %v952_v15, 0.0  ;;  %v930_v41 = vmul.f32 %v5782_v47, %v906_v32  ;;  %v953_v33 = vadd.f32 %v5792_v16, %v929_v62  ;;  %v907_v61 = vmul.f32 %v4438_v19, %v5348_v39 }
 0x241   : > { %v4440_v52 = vpop.eup %4439  ;;  %4449 = vrsqrt.f32 %v873_v27  ;;  %v874_v40 = vadd.f32 1e-05, %v854_v43  ;;  %v855_v59 = vmul.f32 0.125, %v829_v7 }
 0x242   : > { %v832_v35 = vpop.xlane.xlu1 %831  ;;  %v4228_v31 = vpack.c.bf16 %v972_v53, %v971_v38  ;;  %v954_v14 = vadd.f32 %v5792_v16, %v930_v41  ;;  %v908_v58 = vmul.f32 %v4440_v52, %v5354_v36  ;;  %994 = vperm.xlu1 %4416, %v5834_v13   ;;  %v931_v39 = vmul.f32 %v5782_v47, %v907_v61 }
 0x243   : > { %v4442_v18 = vpop.eup %4441  ;;  %4451 = vrsqrt.f32 %v874_v40  ;;  %v875_v44 = vadd.f32 1e-05, %v855_v59  ;;  %v856_v22 = vmul.f32 0.125, %v832_v35  ;;  %v973_v15 = vmax.f32 %v953_v33, 0.0  ;;  %v5859_v35 = vld [vmem:[%s5827_s8 + $0x18] sm:$0xff] }
 0x244   : > { %v835_v50 = vpop.xlane.xlu0 %834  ;;  %4229 = vmatpush1.bf16.msra.mxu1 %v4228_v31  ;;  %v974_v32 = vmax.f32 %v954_v14, 0.0  ;;  %v932_v62 = vmul.f32 %v5782_v47, %v908_v58  ;;  %v909_v36 = vmul.f32 %v4442_v18, %v5360_v45  ;;  %v955_v38 = vadd.f32 %v5792_v16, %v931_v39 }
 0x245   : > { %v4444_v19 = vpop.eup %4443  ;;  %4453 = vrsqrt.f32 %v875_v44  ;;  %v876_v27 = vadd.f32 1e-05, %v856_v22  ;;  %v857_v43 = vmul.f32 0.125, %v835_v50  ;;  %4230 = vmatprep.subr.bf16.mxu1 %v6972_v29  ;;  %989 = vperm.xlu0 %4415, %v5843_v24  }
 0x246   : > { %v838_v7 = vpop.xlane.xlu1 %837  ;;  %v4231_v53 = vpack.c.bf16 %v974_v32, %v973_v15  ;;  %v956_v41 = vadd.f32 %v5792_v16, %v932_v62  ;;  %v910_v33 = vmul.f32 %v4444_v19, %v5366_v21  ;;  %v933_v61 = vmul.f32 %v5782_v47, %v909_v36  ;;  %999 = vperm.xlu1 %4416, %v5847_v25  }
 0x247   : > { %v4446_v45 = vpop.eup %4445  ;;  %4455 = vrsqrt.f32 %v876_v27  ;;  %v877_v52 = vadd.f32 1e-05, %v857_v43  ;;  %v858_v40 = vmul.f32 0.125, %v838_v7  ;;  %v975_v59 = vmax.f32 %v955_v38, 0.0  ;;  %v5870_v43 = vld [vmem:[%s5827_s8 + $0x20] sm:$0xff] }
 0x248   : > { %v1679_v31 = vpop.xlane.xlu0 %1678  ;;  %4232 = vmatpush1.bf16.msra.mxu1 %v4231_v53  ;;  %v976_v14 = vmax.f32 %v956_v41, 0.0  ;;  %v934_v58 = vmul.f32 %v5782_v47, %v910_v33  ;;  %v957_v18 = vadd.f32 %v5792_v16, %v933_v61  ;;  %v911_v21 = vmul.f32 %v4446_v45, %v5372_v51 }
 0x249   : > { %v4448_v44 = vpop.eup %4447  ;;  %4457 = vrsqrt.f32 %v877_v52  ;;  %v878_v22 = vadd.f32 1e-05, %v858_v40  ;;  %v1737_v39 = vmul.f32 0.125, %v1679_v31  ;;  %4233 = vmatprep.subr.bf16.mxu1 %v6972_v29 }
 0x24a   : > { %v1682_v50 = vpop.xlane.xlu1 %1681  ;;  %v4234_v15 = vpack.c.bf16 %v976_v14, %v975_v59  ;;  %v958_v32 = vadd.f32 %v5792_v16, %v934_v58  ;;  %v912_v62 = vmul.f32 %v4448_v44, %v5378_v56  ;;  %1004 = vperm.xlu1 %4416, %v5859_v35   ;;  %v935_v51 = vmul.f32 %v5782_v47, %v911_v21 }
 0x24b   : > { %v4450_v36 = vpop.eup %4449  ;;  %4459 = vrsqrt.f32 %v878_v22  ;;  %v1757_v19 = vadd.f32 1e-05, %v1737_v39  ;;  %v1738_v27 = vmul.f32 0.125, %v1682_v50  ;;  %v977_v7 = vmax.f32 %v957_v18, 0.0  ;;  %v5881_v22 = vld [vmem:[%s5827_s8 + $0x28] sm:$0xff] }
 0x24c   : > { %v1685_v38 = vpop.xlane.xlu0 %1684  ;;  %4235 = vmatpush1.bf16.msra.mxu1 %v4234_v15  ;;  %v978_v53 = vmax.f32 %v958_v32, 0.0  ;;  %v936_v41 = vmul.f32 %v5782_v47, %v912_v62  ;;  %v913_v33 = vmul.f32 %v4450_v36, %v5384_v57  ;;  %v959_v52 = vadd.f32 %v5792_v16, %v935_v51 }
 0x24d   : > { %v4452_v61 = vpop.eup %4451  ;;  %4461 = vrsqrt.f32 %v1757_v19  ;;  %v1758_v56 = vadd.f32 1e-05, %v1738_v27  ;;  %v1739_v45 = vmul.f32 0.125, %v1685_v38  ;;  %4236 = vmatprep.subr.bf16.mxu1 %v6972_v29 }
 0x24e   : > { %v1688_v40 = vpop.xlane.xlu1 %1687  ;;  %v4237_v59 = vpack.c.bf16 %v978_v53, %v977_v7  ;;  %v960_v31 = vadd.f32 %v5792_v16, %v936_v41  ;;  %v914_v14 = vmul.f32 %v4452_v61, %v5390_v17  ;;  %v937_v58 = vmul.f32 %v5782_v47, %v913_v33  ;;  %1009 = vperm.xlu1 %4416, %v5870_v43   ;;  %v5892_v61 = vld [vmem:[%s5827_s8 + $0x30] sm:$0x7] }
 0x24f   : > { %v4454_v57 = vpop.eup %4453  ;;  %4463 = vrsqrt.f32 %v1758_v56  ;;  %v1759_v18 = vadd.f32 1e-05, %v1739_v45  ;;  %v1740_v21 = vmul.f32 0.125, %v1688_v40  ;;  %v979_v44 = vmax.f32 %v959_v52, 0.0 }
 0x250   : > { %v1691_v39 = vpop.xlane.xlu0 %1690  ;;  %4238 = vmatpush1.bf16.msra.mxu1 %v4237_v59  ;;  %v980_v50 = vmax.f32 %v960_v31, 0.0  ;;  %v938_v15 = vmul.f32 %v5782_v47, %v914_v14  ;;  %v961_v32 = vadd.f32 %v5792_v16, %v937_v58  ;;  %v915_v17 = vmul.f32 %v4454_v57, %v5396_v63 }
 0x251   : > { %v4456_v62 = vpop.eup %4455  ;;  %4465 = vrsqrt.f32 %v1759_v18  ;;  %v1760_v36 = vadd.f32 1e-05, %v1740_v21  ;;  %v1741_v19 = vmul.f32 0.125, %v1691_v39  ;;  %4239 = vmatprep.subr.bf16.mxu1 %v6972_v29 }
 0x252   : > { %v1694_v27 = vpop.xlane.xlu1 %1693  ;;  %v4240_v51 = vpack.c.bf16 %v980_v50, %v979_v44  ;;  %v962_v38 = vadd.f32 %v5792_v16, %v938_v15  ;;  %v916_v7 = vmul.f32 %v4456_v62, %v5402_v6  ;;  %1014 = vperm.xlu1 %4416, %v5881_v22   ;;  %v939_v63 = vmul.f32 %v5782_v47, %v915_v17 }
 0x253   : > { %v4458_v53 = vpop.eup %4457  ;;  %4467 = vrsqrt.f32 %v1760_v36  ;;  %v1761_v41 = vadd.f32 1e-05, %v1741_v19  ;;  %v1742_v33 = vmul.f32 0.125, %v1694_v27  ;;  %v981_v52 = vmax.f32 %v961_v32, 0.0 }
 0x254   : > { %v917_v56 = vmul.f32 %v4458_v53, %v5408_v5  ;;  %v1697_v45 = vpop.xlane.xlu0 %1696  ;;  %4241 = vmatpush1.bf16.msra.mxu1 %v4240_v51  ;;  %v982_v40 = vmax.f32 %v962_v38, 0.0  ;;  %v940_v59 = vmul.f32 %v5782_v47, %v916_v7  ;;  %v963_v58 = vadd.f32 %v5792_v16, %v939_v63 }
 0x255   : > { %v4460_v31 = vpop.eup %4459  ;;  %4469 = vrsqrt.f32 %v1761_v41  ;;  %v1762_v6 = vadd.f32 1e-05, %v1742_v33  ;;  %v1743_v14 = vmul.f32 0.125, %v1697_v45  ;;  %4242 = vmatprep.subr.bf16.mxu1 %v6972_v29 }
 0x256   : > { %v918_v57 = vmul.f32 %v4460_v31, %v5414_v1  ;;  %v1700_v18 = vpop.xlane.xlu1 %1699  ;;  %v4243_v21 = vpack.c.bf16 %v982_v40, %v981_v52  ;;  %v964_v5 = vadd.f32 %v5792_v16, %v940_v59  ;;  %v941_v44 = vmul.f32 %v5782_v47, %v917_v56  ;;  %1019 = vperm.xlu1 %4416, %v5892_v61  }
 0x257   : > { %v4462_v39 = vpop.eup %4461  ;;  %4471 = vrsqrt.f32 %v1762_v6  ;;  %v1763_v50 = vadd.f32 1e-05, %v1743_v14  ;;  %v1744_v15 = vmul.f32 0.125, %v1700_v18  ;;  %v983_v32 = vmax.f32 %v963_v58, 0.0 }
 0x258   : > { %v1797_v17 = vmul.f32 %v4462_v39, %v5420_v11  ;;  %v1703_v62 = vpop.xlane.xlu0 %1702  ;;  %4244 = vmatpush1.bf16.msra.mxu1 %v4243_v21  ;;  %v984_v36 = vmax.f32 %v964_v5, 0.0  ;;  %v942_v1 = vmul.f32 %v5782_v47, %v918_v57  ;;  %v965_v19 = vadd.f32 %v5792_v16, %v941_v44  ;;  %v4599_v57 = vld [vmem:[%s5563_s21 + $0x28] sm:$0xff] }
 0x259   : > { %v4464_v27 = vpop.eup %4463  ;;  %4473 = vrsqrt.f32 %v1763_v50  ;;  %v1764_v51 = vadd.f32 1e-05, %v1744_v15  ;;  %v1745_v38 = vmul.f32 0.125, %v1703_v62  ;;  %4245 = vmatprep.subr.bf16.mxu1 %v6972_v29 }
 0x25a   : > { %v1798_v7 = vmul.f32 %v4464_v27, %v5426_v30  ;;  %v1706_v53 = vpop.xlane.xlu1 %1705  ;;  %v4246_v41 = vpack.c.bf16 %v984_v36, %v983_v32  ;;  %v966_v11 = vadd.f32 %v5792_v16, %v942_v1  ;;  %v1817_v45 = vmul.f32 %v5782_v47, %v1797_v17  ;;  %v5925_v1 = vld [vmem:[%s5563_s21] sm:$0xff] }
 0x25b   : > { %v4466_v33 = vpop.eup %4465  ;;  %4475 = vrsqrt.f32 %v1764_v51  ;;  %v1765_v63 = vadd.f32 1e-05, %v1745_v38  ;;  %v1746_v56 = vmul.f32 0.125, %v1706_v53  ;;  %v985_v59 = vmax.f32 %v965_v19, 0.0  ;;  %v5931_v53 = vld [vmem:[%s5563_s21 + $0x18] sm:$0xff] }
 0x25c   : > { %v1799_v52 = vmul.f32 %v4466_v33, %v5434_v60  ;;  %v1709_v40 = vpop.xlane.xlu0 %1708  ;;  %4247 = vmatpush1.bf16.msra.mxu1 %v4246_v41  ;;  %v986_v31 = vmax.f32 %v966_v11, 0.0  ;;  %v1818_v6 = vmul.f32 %v5782_v47, %v1798_v7  ;;  %v1837_v60 = vadd.f32 %v5792_v16, %v1817_v45 }
 0x25d   : > { %v4468_v14 = vpop.eup %4467  ;;  %4477 = vrsqrt.f32 %v1765_v63  ;;  %v1766_v30 = vadd.f32 1e-05, %v1746_v56  ;;  %v1747_v58 = vmul.f32 0.125, %v1709_v40  ;;  %4248 = vmatprep.subr.bf16.mxu1 %v6972_v29 }
 0x25e   : > { %v1800_v18 = vmul.f32 %v4468_v14, %v5440_v49  ;;  %v1712_v21 = vpop.xlane.xlu1 %1711  ;;  %v4249_v5 = vpack.c.bf16 %v986_v31, %v985_v59  ;;  %v1838_v44 = vadd.f32 %v5792_v16, %v1818_v6  ;;  %v1819_v39 = vmul.f32 %v5782_v47, %v1799_v52 }
 0x25f   : > { %v4470_v50 = vpop.eup %4469  ;;  %4479 = vrsqrt.f32 %v1766_v30  ;;  %v1767_v15 = vadd.f32 1e-05, %v1747_v58  ;;  %v1748_v32 = vmul.f32 0.125, %v1712_v21  ;;  %v1857_v17 = vmax.f32 %v1837_v60, 0.0 }
 0x260   : > { %v1801_v62 = vmul.f32 %v4470_v50, %v5446_v28  ;;  %v1715_v36 = vpop.xlane.xlu0 %1714  ;;  %4251 = vmatpush1.bf16.msk.msra.mxu1 %vm5913_vm5, %v4249_v5  ;;  %v1858_v49 = vmax.f32 %v1838_v44, 0.0  ;;  %v1820_v19 = vmul.f32 %v5782_v47, %v1800_v18  ;;  %v1839_v27 = vadd.f32 %v5792_v16, %v1819_v39  ;;  %v5946_v18 = vld [vmem:[%s5563_s21 + $0x28] sm:$0xff] }
 0x261   : > { %v4472_v51 = vpop.eup %4471  ;;  %4481 = vrsqrt.f32 %v1767_v15  ;;  %v1768_v38 = vadd.f32 1e-05, %v1748_v32  ;;  %v1749_v7 = vmul.f32 0.125, %v1715_v36  ;;  %4252 = vmatprep.subr.bf16.mxu1 %v6972_v29 }
 0x262   : > { %v1802_v28 = vmul.f32 %v4472_v51, %v5452_v42  ;;  %v1718_v41 = vpop.xlane.xlu1 %1717  ;;  %v4253_v11 = vpack.c.bf16 %v1858_v49, %v1857_v17  ;;  %v1840_v33 = vadd.f32 %v5792_v16, %v1820_v19  ;;  %v1821_v52 = vmul.f32 %v5782_v47, %v1801_v62  ;;  %v5941_v42 = vld [vmem:[%s5563_s21 + $0x10] sm:$0xff] }
 0x263   : > { %v4474_v63 = vpop.eup %4473  ;;  %4483 = vrsqrt.f32 %v1768_v38  ;;  %v1769_v56 = vadd.f32 1e-05, %v1749_v7  ;;  %v1750_v45 = vmul.f32 0.125, %v1718_v41  ;;  %1113 = vmatmul.mubr.f32.vlgmr.msra.gmra.mrb[0].mxu1 %v5925_v1  ;;  %v1859_v31 = vmax.f32 %v1839_v27, 0.0  ;;  %v5963_v41 = vld [vmem:[%s5563_s21 + $0x38] sm:$0xff] }
 0x264   : > { %v1803_v40 = vmul.f32 %v4474_v63, %v5458_v37  ;;  %v1721_v59 = vpop.xlane.xlu0 %1720  ;;  %4254 = vmatpush1.bf16.msra.mxu1 %v4253_v11  ;;  %3815 = vmatprep.mubr.msk.f32.mxu1 %vm1022_vm2, %v5931_v53  ;;  %v1860_v6 = vmax.f32 %v1840_v33, 0.0  ;;  %v1822_v14 = vmul.f32 %v5782_v47, %v1802_v28  ;;  %v1841_v37 = vadd.f32 %v5792_v16, %v1821_v52 }
 0x265   : > { %v4476_v30 = vpop.eup %4475  ;;  %4485 = vrsqrt.f32 %v1769_v56  ;;  %v1770_v58 = vadd.f32 1e-05, %v1750_v45  ;;  %v1751_v60 = vmul.f32 0.125, %v1721_v59  ;;  %4255 = vmatprep.subr.bf16.mxu1 %v6972_v29  ;;  %v4647_v56 = vmov 1  }
 0x266   : > { %v1804_v21 = vmul.f32 %v4476_v30, %v5464_v12  ;;  %v1724_v5 = vpop.xlane.xlu1 %1723  ;;  %v4256_v44 = vpack.c.bf16 %v1860_v6, %v1859_v31  ;;  %v1842_v39 = vadd.f32 %v5792_v16, %v1822_v14  ;;  %v1823_v50 = vmul.f32 %v5782_v47, %v1803_v40  ;;  %v5957_v12 = vld [vmem:[%s5563_s21 + $0x20] sm:$0xff]  ;;  %4417 = vset.pattern.permute.xlu1 %v4647_v56  ;;  %v5974_v6 = vld [vmem:[%s5563_s21 + $0x30] sm:$0xff] }
 0x267   : > { %v4478_v15 = vpop.eup %4477  ;;  %4487 = vrsqrt.f32 %v1770_v58  ;;  %v1771_v32 = vadd.f32 1e-05, %v1751_v60  ;;  %v1752_v17 = vmul.f32 0.125, %v1724_v5  ;;  %1118 = vmatmul.mubr.f32.gmra.mrb[2].mxu1 %v5941_v42  ;;  %v1861_v62 = vmax.f32 %v1841_v37, 0.0  ;;  %4418 = vset.pattern.permute.xlu0 %v4647_v56  ;;  %v5979_v5 = vld [vmem:[%s5563_s21 + $0x48] sm:$0xff] }
 0x268   : > { %v1805_v36 = vmul.f32 %v4478_v15, %v5470_v46  ;;  %v1727_v49 = vpop.xlane.xlu0 %1726  ;;  %4257 = vmatpush1.bf16.msra.mxu1 %v4256_v44  ;;  %3816 = vmatprep.mubr.msk.f32.mxu1 %vm1022_vm2, %v5946_v18  ;;  %v1862_v19 = vmax.f32 %v1842_v39, 0.0  ;;  %v1824_v27 = vmul.f32 %v5782_v47, %v1804_v21  ;;  %v1843_v51 = vadd.f32 %v5792_v16, %v1823_v50 }
 0x269   : > { %v4480_v38 = vpop.eup %4479  ;;  %4489 = vrsqrt.f32 %v1771_v32  ;;  %v1772_v7 = vadd.f32 1e-05, %v1752_v17  ;;  %v1753_v28 = vmul.f32 0.125, %v1727_v49  ;;  %4258 = vmatprep.subr.bf16.mxu1 %v6972_v29  ;;  %1214 = vperm.xlu1 %4417, %v5843_v24  }
 0x26a   : > { %v1806_v46 = vmul.f32 %v4480_v38, %v5476_v54  ;;  %v1730_v11 = vpop.xlane.xlu1 %1729  ;;  %v4259_v33 = vpack.c.bf16 %v1862_v19, %v1861_v62  ;;  %v1844_v63 = vadd.f32 %v5792_v16, %v1824_v27  ;;  %v1825_v59 = vmul.f32 %v5782_v47, %v1805_v36  ;;  %1222 = vperm.xlu0 %4418, %v5847_v25   ;;  %v5992_v27 = vld [vmem:[%s5563_s21 + $0x40] sm:$0xff] }
 0x26b   : > { %v4482_v45 = vpop.eup %4481  ;;  %4491 = vrsqrt.f32 %v1772_v7  ;;  %v1773_v52 = vadd.f32 1e-05, %v1753_v28  ;;  %v1754_v40 = vmul.f32 0.125, %v1730_v11  ;;  %1123 = vmatmul.mubr.f32.gmra.mrb[4].mxu1 %v5957_v12  ;;  %v1863_v14 = vmax.f32 %v1843_v51, 0.0 }
 0x26c   : > { %v1807_v54 = vmul.f32 %v4482_v45, %v5482_v55  ;;  %v1733_v31 = vpop.xlane.xlu0 %1732  ;;  %4260 = vmatpush1.bf16.msra.mxu1 %v4259_v33  ;;  %3817 = vmatprep.mubr.msk.f32.mxu1 %vm1022_vm2, %v5963_v41  ;;  %v1864_v30 = vmax.f32 %v1844_v63, 0.0  ;;  %v1826_v58 = vmul.f32 %v5782_v47, %v1806_v46  ;;  %v1845_v55 = vadd.f32 %v5792_v16, %v1825_v59  ;;  %v5998_v33 = vld [vmem:[%s5563_s21 + $0x58] sm:$0xff] }
 0x26d   : > { %v4484_v60 = vpop.eup %4483  ;;  %4493 = vrsqrt.f32 %v1773_v52  ;;  %v1774_v37 = vadd.f32 1e-05, %v1754_v40  ;;  %v1755_v21 = vmul.f32 0.125, %v1733_v31  ;;  %4261 = vmatprep.subr.bf16.mxu1 %v6972_v29  ;;  %1218 = vperm.xlu1 %4417, %v5834_v13  }
 0x26e   : > { %v1808_v44 = vmul.f32 %v4484_v60, %v5488_v48  ;;  %v1736_v39 = vpop.xlane.xlu1 %1735  ;;  %v4262_v50 = vpack.c.bf16 %v1864_v30, %v1863_v14  ;;  %v1846_v15 = vadd.f32 %v5792_v16, %v1826_v58  ;;  %v1827_v32 = vmul.f32 %v5782_v47, %v1807_v54  ;;  %1234 = vperm.xlu0 %4418, %v5881_v22  }
 0x26f   : > { %v4486_v17 = vpop.eup %4485  ;;  %4495 = vrsqrt.f32 %v1774_v37  ;;  %v1775_v62 = vadd.f32 1e-05, %v1755_v21  ;;  %v1756_v36 = vmul.f32 0.125, %v1736_v39  ;;  %1128 = vmatmul.mubr.f32.gmra.mrb[6].mxu1 %v5974_v6  ;;  %v1865_v49 = vmax.f32 %v1845_v55, 0.0 }
 0x270   : > { %v1809_v19 = vmul.f32 %v4486_v17, %v5494_v0  ;;  %v2455_v48 = vpop.xlane.xlu0 %2454  ;;  %4263 = vmatpush1.bf16.msra.mxu1 %v4262_v50  ;;  %3818 = vmatprep.mubr.msk.f32.mxu1 %vm1022_vm2, %v5979_v5  ;;  %v1866_v51 = vmax.f32 %v1846_v15, 0.0  ;;  %v1828_v38 = vmul.f32 %v5782_v47, %v1808_v44  ;;  %v1847_v7 = vadd.f32 %v5792_v16, %v1827_v32  ;;  %v6015_v44 = vld [vmem:[%s5563_s21 + $0x68] sm:$0x7] }
 0x271   : > { %v4488_v28 = vpop.eup %4487  ;;  %4497 = vrsqrt.f32 %v1775_v62  ;;  %v1776_v46 = vadd.f32 1e-05, %v1756_v36  ;;  %v2513_v11 = vmul.f32 0.125, %v2455_v48  ;;  %4264 = vmatprep.subr.bf16.mxu1 %v6972_v29  ;;  %1226 = vperm.xlu1 %4417, %v5859_v35   ;;  %v4648_v39 = vmov 2  }
 0x272   : > { %v1810_v0 = vmul.f32 %v4488_v28, %v5500_v2  ;;  %v2458_v63 = vpop.xlane.xlu1 %2457  ;;  %v4265_v56 = vpack.c.bf16 %v1866_v51, %v1865_v49  ;;  %v1848_v45 = vadd.f32 %v5792_v16, %v1828_v38  ;;  %v1829_v54 = vmul.f32 %v5782_v47, %v1809_v19  ;;  %v6010_v2 = vld [vmem:[%s5563_s21 + $0x50] sm:$0xff]  ;;  %4419 = vset.pattern.permute.xlu0 %v4648_v39  ;;  %v6029_v38 = vld [vmem:[%s5563_s21 + $0x60] sm:$0x7] }
 0x273   : > { %v4490_v52 = vpop.eup %4489  ;;  %4499 = vrsqrt.f32 %v1776_v46  ;;  %v2533_v40 = vadd.f32 1e-05, %v2513_v11  ;;  %v2514_v59 = vmul.f32 0.125, %v2458_v63  ;;  %1133 = vmatmul.mubr.f32.gmra.mrb[8].mxu1 %v5992_v27  ;;  %v1867_v30 = vmax.f32 %v1847_v7, 0.0  ;;  %1249 = vperm.xlu0 %4419, %v5843_v24  }
 0x274   : > { %v1811_v31 = vmul.f32 %v4490_v52, %v5506_v9  ;;  %v2461_v14 = vpop.xlane.xlu0 %2460  ;;  %4266 = vmatpush1.bf16.msra.mxu1 %v4265_v56  ;;  %3819 = vmatprep.mubr.msk.f32.mxu1 %vm1022_vm2, %v5998_v33  ;;  %v1868_v58 = vmax.f32 %v1848_v45, 0.0  ;;  %v1830_v60 = vmul.f32 %v5782_v47, %v1810_v0  ;;  %v1849_v9 = vadd.f32 %v5792_v16, %v1829_v54 }
 0x275   : > { %v4492_v37 = vpop.eup %4491  ;;  %4501 = vrsqrt.f32 %v2533_v40  ;;  %v2534_v21 = vadd.f32 1e-05, %v2514_v59  ;;  %v2515_v55 = vmul.f32 0.125, %v2461_v14  ;;  %4267 = vmatprep.subr.bf16.mxu1 %v6972_v29  ;;  %1230 = vperm.xlu1 %4417, %v5870_v43  }
 0x276   : > { %v1812_v50 = vmul.f32 %v4492_v37, %v5512_v8  ;;  %v2464_v15 = vpop.xlane.xlu1 %2463  ;;  %v4268_v32 = vpack.c.bf16 %v1868_v58, %v1867_v30  ;;  %v1850_v17 = vadd.f32 %v5792_v16, %v1830_v60  ;;  %v1831_v62 = vmul.f32 %v5782_v47, %v1811_v31  ;;  %v6043_v60 = vld [vmem:[%s5563_s21 + $0x8] sm:$0xff] }
 0x277   : > { %v4494_v36 = vpop.eup %4493  ;;  %4503 = vrsqrt.f32 %v2534_v21  ;;  %v2535_v49 = vadd.f32 1e-05, %v2515_v55  ;;  %v2516_v19 = vmul.f32 0.125, %v2464_v15  ;;  %1138 = vmatmul.mubr.f32.gmra.mrb[10].mxu1 %v6010_v2  ;;  %v1869_v48 = vmax.f32 %v1849_v9, 0.0  ;;  %1261 = vperm.xlu0 %4419, %v5859_v35  }
 0x278   : > { %v1813_v8 = vmul.f32 %v4494_v36, %v5518_v20  ;;  %v2467_v51 = vpop.xlane.xlu0 %2466  ;;  %4269 = vmatpush1.bf16.msra.mxu1 %v4268_v32  ;;  %3820 = vmatprep.mubr.msk.f32.mxu1 %vm1022_vm2, %v6015_v44  ;;  %v1870_v7 = vmax.f32 %v1850_v17, 0.0  ;;  %v1832_v24 = vmul.f32 %v5782_v47, %v1812_v50  ;;  %v1851_v28 = vadd.f32 %v5792_v16, %v1831_v62 }
 0x279   : > { %v4496_v46 = vpop.eup %4495  ;;  %4505 = vrsqrt.f32 %v2535_v49  ;;  %v2536_v11 = vadd.f32 1e-05, %v2516_v19  ;;  %v2517_v0 = vmul.f32 0.125, %v2467_v51  ;;  %4270 = vmatprep.subr.bf16.mxu1 %v6972_v29  ;;  %1238 = vperm.xlu1 %4417, %v5892_v61  }
 0x27a   : > { %v1814_v20 = vmul.f32 %v4496_v46, %v5524_v26  ;;  %v2470_v63 = vpop.xlane.xlu1 %2469  ;;  %v4271_v56 = vpack.c.bf16 %v1870_v7, %v1869_v48  ;;  %v1852_v45 = vadd.f32 %v5792_v16, %v1832_v24  ;;  %v1833_v54 = vmul.f32 %v5782_v47, %v1813_v8 }
 0x27b   : > { %v4498_v52 = vpop.eup %4497  ;;  %4507 = vrsqrt.f32 %v2536_v11  ;;  %v2537_v40 = vadd.f32 1e-05, %v2517_v0  ;;  %v2518_v59 = vmul.f32 0.125, %v2470_v63  ;;  %1143 = vmatmul.mubr.f32.gmra.mrb[12].mxu1 %v6029_v38  ;;  %v1871_v14 = vmax.f32 %v1851_v28, 0.0  ;;  %1269 = vperm.xlu0 %4419, %v5881_v22   ;;  %v6975_v28 = vld [vmem:[#allocation36_spill] sm:$0xff] }
 0x27c   : > { %v1815_v31 = vmul.f32 %v4498_v52, %v5530_v34  ;;  %v2473_v26 = vpop.xlane.xlu0 %2472  ;;  %4272 = vmatpush1.bf16.msra.mxu1 %v4271_v56  ;;  %v1872_v30 = vmax.f32 %v1852_v45, 0.0  ;;  %v1834_v58 = vmul.f32 %v5782_v47, %v1814_v20  ;;  %3862 = vmatprep.mubr.msk.f32.mxu1 %vm1022_vm2, %v6043_v60  ;;  %v1853_v55 = vadd.f32 %v5792_v16, %v1833_v54  ;;  %v6062_v63 = vld [vmem:[%s4902_s17 + $0x1] ss:$0 sm:$0xff]  ;;  %v6976_v56 = vld [vmem:[#allocation37_spill] sm:$0xff] }
 0x27d   : > { %v4500_v35 = vpop.eup %4499  ;;  %4509 = vrsqrt.f32 %v2537_v40  ;;  %v2538_v37 = vadd.f32 1e-05, %v2518_v59  ;;  %v2519_v21 = vmul.f32 0.125, %v2473_v26  ;;  %4273 = vmatprep.subr.bf16.mxu1 %v6972_v29  ;;  %4420 = vset.pattern.permute.xlu1 %v4648_v39 }
 0x27e   : > { %v1835_v34 = vmul.f32 %v5782_v47, %v1815_v31  ;;  %v1816_v9 = vmul.f32 %v4500_v35, %v5536_v23  ;;  %v2476_v50 = vpop.xlane.xlu1 %2475  ;;  %v4274_v15 = vpack.c.bf16 %v1872_v30, %v1871_v14  ;;  %v1854_v32 = vadd.f32 %v5792_v16, %v1834_v58  ;;  %1253 = vperm.xlu1 %4420, %v5834_v13   ;;  %v6070_v14 = vld [vmem:[%s4902_s17 + $0x2] ss:$0 sm:$0xff] }
 0x27f   : > { %v4502_v17 = vpop.eup %4501  ;;  %4511 = vrsqrt.f32 %v2538_v37  ;;  %v2539_v62 = vadd.f32 1e-05, %v2519_v21  ;;  %v2520_v36 = vmul.f32 0.125, %v2476_v50  ;;  %v1873_v49 = vmax.f32 %v1853_v55, 0.0  ;;  %v6977_v58 = vld [vmem:[#allocation38_spill] sm:$0xff] }
 0x280   : > { %v1836_v19 = vmul.f32 %v5782_v47, %v1816_v9  ;;  %v2573_v48 = vmul.f32 %v4502_v17, %v5542_v4  ;;  %v2479_v8 = vpop.xlane.xlu0 %2478  ;;  %4275 = vmatpush1.bf16.msra.mxu1 %v4274_v15  ;;  %v1874_v23 = vmax.f32 %v1854_v32, 0.0  ;;  %v1855_v51 = vadd.f32 %v5792_v16, %v1835_v34  ;;  %v6978_v32 = vld [vmem:[#allocation39_spill] sm:$0xff] }
 0x281   : > { %v4504_v22 = vpop.eup %4503  ;;  %4513 = vrsqrt.f32 %v2539_v62  ;;  %v2540_v7 = vadd.f32 1e-05, %v2520_v36  ;;  %v2521_v24 = vmul.f32 0.125, %v2479_v8  ;;  %4276 = vmatprep.subr.bf16.mxu1 %v6972_v29 }
 0x282   : > { %v2574_v39 = vmul.f32 %v4504_v22, %v6975_v28  ;;  %v2482_v46 = vpop.xlane.xlu1 %2481  ;;  %v4277_v47 = vpack.c.bf16 %v1874_v23, %v1873_v49  ;;  %v1856_v4 = vadd.f32 %v5792_v16, %v1836_v19  ;;  %v2593_v13 = vmul.f32 %v6062_v63, %v2573_v48  ;;  %1257 = vperm.xlu1 %4420, %v5847_v25  }
 0x283   : > { %v4506_v11 = vpop.eup %4505  ;;  %4515 = vrsqrt.f32 %v2540_v7  ;;  %v2541_v0 = vadd.f32 1e-05, %v2521_v24  ;;  %v2522_v20 = vmul.f32 0.125, %v2482_v46  ;;  %v1875_v40 = vmax.f32 %v1855_v51, 0.0  ;;  %v6979_v51 = vld [vmem:[#allocation40_spill] sm:$0xff] }
 0x284   : > { %v2575_v45 = vmul.f32 %v4506_v11, %v6976_v56  ;;  %v2485_v52 = vpop.xlane.xlu0 %2484  ;;  %4278 = vmatpush1.bf16.msra.mxu1 %v4277_v47  ;;  %v1876_v59 = vmax.f32 %v1856_v4, 0.0  ;;  %v2594_v54 = vmul.f32 %v6062_v63, %v2574_v39  ;;  %v2613_v30 = vadd.f32 %v6070_v14, %v2593_v13  ;;  %v6980_v4 = vld [vmem:[#allocation3_spill] sm:$0xff] }
 0x285   : > { %v4508_v16 = vpop.eup %4507  ;;  %4517 = vrsqrt.f32 %v2541_v0  ;;  %v2542_v31 = vadd.f32 1e-05, %v2522_v20  ;;  %v2523_v26 = vmul.f32 0.125, %v2485_v52  ;;  %4279 = vmatprep.subr.bf16.mxu1 %v6972_v29 }
 0x286   : > { %v2576_v35 = vmul.f32 %v4508_v16, %v6977_v58  ;;  %v2488_v37 = vpop.xlane.xlu1 %2487  ;;  %v4280_v21 = vpack.c.bf16 %v1876_v59, %v1875_v40  ;;  %v2614_v55 = vadd.f32 %v6070_v14, %v2594_v54  ;;  %v2595_v34 = vmul.f32 %v6062_v63, %v2575_v45  ;;  %1265 = vperm.xlu1 %4420, %v5870_v43   ;;  %v6981_v54 = vld [vmem:[#allocation2_spill] sm:$0xff] }
 0x287   : > { %v4510_v9 = vpop.eup %4509  ;;  %4519 = vrsqrt.f32 %v2542_v31  ;;  %v2543_v25 = vadd.f32 1e-05, %v2523_v26  ;;  %v2524_v50 = vmul.f32 0.125, %v2488_v37  ;;  %v2633_v15 = vmax.f32 %v2613_v30, 0.0 }
 0x288   : > { %v2577_v17 = vmul.f32 %v4510_v9, %v6978_v32  ;;  %v2491_v62 = vpop.xlane.xlu0 %2490  ;;  %4282 = vmatpush1.bf16.msk.msra.mxu1 %vm5913_vm5, %v4280_v21  ;;  %v2634_v36 = vmax.f32 %v2614_v55, 0.0  ;;  %v2596_v49 = vmul.f32 %v6062_v63, %v2576_v35  ;;  %v2615_v19 = vadd.f32 %v6070_v14, %v2595_v34  ;;  %v6982_v34 = vld [vmem:[#allocation5_spill] sm:$0xff] }
 0x289   : > { %v4512_v48 = vpop.eup %4511  ;;  %4521 = vrsqrt.f32 %v2543_v25  ;;  %v2544_v8 = vadd.f32 1e-05, %v2524_v50  ;;  %v2525_v23 = vmul.f32 0.125, %v2491_v62  ;;  %4283 = vmatprep.subr.bf16.mxu1 %v6972_v29 }
 0x28a   : > { %v2578_v22 = vmul.f32 %v4512_v48, %v6979_v51  ;;  %v2494_v7 = vpop.xlane.xlu1 %2493  ;;  %v4284_v24 = vpack.c.bf16 %v2634_v36, %v2633_v15  ;;  %v2616_v28 = vadd.f32 %v6070_v14, %v2596_v49  ;;  %v2597_v43 = vmul.f32 %v6062_v63, %v2577_v17  ;;  %1273 = vperm.xlu1 %4420, %v5892_v61   ;;  %v6983_v36 = vld [vmem:[#allocation4_spill] sm:$0xff] }
 0x28b   : > { %v4514_v39 = vpop.eup %4513  ;;  %4523 = vrsqrt.f32 %v2544_v8  ;;  %v2545_v46 = vadd.f32 1e-05, %v2525_v23  ;;  %v2526_v47 = vmul.f32 0.125, %v2494_v7  ;;  %1945 = vmatmul.mubr.f32.vlgmr.msra.gmra.mrb[14].mxu1 %v5925_v1  ;;  %v2635_v20 = vmax.f32 %v2615_v19, 0.0 }
 0x28c   : > { %v2579_v11 = vmul.f32 %v4514_v39, %v6980_v4  ;;  %v2497_v0 = vpop.xlane.xlu0 %2496  ;;  %4285 = vmatpush1.bf16.msra.mxu1 %v4284_v24  ;;  %3863 = vmatprep.mubr.msk.f32.mxu1 %vm1022_vm2, %v5931_v53  ;;  %v2636_v13 = vmax.f32 %v2616_v28, 0.0  ;;  %v2598_v56 = vmul.f32 %v6062_v63, %v2578_v22  ;;  %v2617_v59 = vadd.f32 %v6070_v14, %v2597_v43  ;;  %v6984_v24 = vld [vmem:[#allocation7_spill] sm:$0xff] }
 0x28d   : > { %v4516_v45 = vpop.eup %4515  ;;  %4525 = vrsqrt.f32 %v2545_v46  ;;  %v2546_v52 = vadd.f32 1e-05, %v2526_v47  ;;  %v2527_v40 = vmul.f32 0.125, %v2497_v0  ;;  %4286 = vmatprep.subr.bf16.mxu1 %v6972_v29 }
 0x28e   : > { %v2580_v16 = vmul.f32 %v4516_v45, %v6981_v54  ;;  %v2500_v31 = vpop.xlane.xlu1 %2499  ;;  %v4287_v26 = vpack.c.bf16 %v2636_v13, %v2635_v20  ;;  %v2618_v30 = vadd.f32 %v6070_v14, %v2598_v56  ;;  %v2599_v58 = vmul.f32 %v6062_v63, %v2579_v11  ;;  %v6985_v13 = vld [vmem:[#allocation6_spill] sm:$0xff] }
 0x28f   : > { %v4518_v35 = vpop.eup %4517  ;;  %4527 = vrsqrt.f32 %v2546_v52  ;;  %v2547_v37 = vadd.f32 1e-05, %v2527_v40  ;;  %v2528_v21 = vmul.f32 0.125, %v2500_v31  ;;  %1950 = vmatmul.mubr.f32.gmra.mrb[16].mxu1 %v5941_v42  ;;  %v2637_v55 = vmax.f32 %v2617_v59, 0.0 }
 0x290   : > { %v2581_v9 = vmul.f32 %v4518_v35, %v6982_v34  ;;  %v2503_v25 = vpop.xlane.xlu0 %2502  ;;  %4288 = vmatpush1.bf16.msra.mxu1 %v4287_v26  ;;  %3864 = vmatprep.mubr.msk.f32.mxu1 %vm1022_vm2, %v5946_v18  ;;  %v2638_v61 = vmax.f32 %v2618_v30, 0.0  ;;  %v2600_v50 = vmul.f32 %v6062_v63, %v2580_v16  ;;  %v2619_v15 = vadd.f32 %v6070_v14, %v2599_v58  ;;  %v6986_v30 = vld [vmem:[#allocation9_spill] sm:$0xff] }
 0x291   : > { %v4520_v32 = vpop.eup %4519  ;;  %4529 = vrsqrt.f32 %v2547_v37  ;;  %v2548_v17 = vadd.f32 1e-05, %v2528_v21  ;;  %v2529_v62 = vmul.f32 0.125, %v2503_v25  ;;  %4289 = vmatprep.subr.bf16.mxu1 %v6972_v29 }
 0x292   : > { %v2582_v49 = vmul.f32 %v4520_v32, %v6983_v36  ;;  %v2506_v19 = vpop.xlane.xlu1 %2505  ;;  %v4290_v48 = vpack.c.bf16 %v2638_v61, %v2637_v55  ;;  %v2620_v8 = vadd.f32 %v6070_v14, %v2600_v50  ;;  %v2601_v7 = vmul.f32 %v6062_v63, %v2581_v9  ;;  %v6987_v61 = vld [vmem:[#allocation8_spill] sm:$0xff] }
 0x293   : > { %v4522_v23 = vpop.eup %4521  ;;  %4531 = vrsqrt.f32 %v2548_v17  ;;  %v2549_v51 = vadd.f32 1e-05, %v2529_v62  ;;  %v2530_v22 = vmul.f32 0.125, %v2506_v19  ;;  %1955 = vmatmul.mubr.f32.gmra.mrb[18].mxu1 %v5957_v12  ;;  %v2639_v46 = vmax.f32 %v2619_v15, 0.0 }
 0x294   : > { %v2583_v28 = vmul.f32 %v4522_v23, %v6984_v24  ;;  %v2509_v39 = vpop.xlane.xlu0 %2508  ;;  %4291 = vmatpush1.bf16.msra.mxu1 %v4290_v48  ;;  %3865 = vmatprep.mubr.msk.f32.mxu1 %vm1022_vm2, %v5963_v41  ;;  %v2640_v47 = vmax.f32 %v2620_v8, 0.0  ;;  %v2602_v43 = vmul.f32 %v6062_v63, %v2582_v49  ;;  %v2621_v20 = vadd.f32 %v6070_v14, %v2601_v7  ;;  %v6988_v48 = vld [vmem:[#allocation11_spill] sm:$0xff] }
 0x295   : > { %v4524_v4 = vpop.eup %4523  ;;  %4533 = vrsqrt.f32 %v2549_v51  ;;  %v2550_v11 = vadd.f32 1e-05, %v2530_v22  ;;  %v2531_v0 = vmul.f32 0.125, %v2509_v39  ;;  %4292 = vmatprep.subr.bf16.mxu1 %v6972_v29 }
 0x296   : > { %v2584_v56 = vmul.f32 %v4524_v4, %v6985_v13  ;;  %v2512_v45 = vpop.xlane.xlu1 %2511  ;;  %v4293_v52 = vpack.c.bf16 %v2640_v47, %v2639_v46  ;;  %v2622_v40 = vadd.f32 %v6070_v14, %v2602_v43  ;;  %v2603_v59 = vmul.f32 %v6062_v63, %v2583_v28  ;;  %v6989_v47 = vld [vmem:[#allocation10_spill] sm:$0xff] }
 0x297   : > { %v4526_v54 = vpop.eup %4525  ;;  %4535 = vrsqrt.f32 %v2550_v11  ;;  %v2551_v16 = vadd.f32 1e-05, %v2531_v0  ;;  %v2532_v31 = vmul.f32 0.125, %v2512_v45  ;;  %1960 = vmatmul.mubr.f32.gmra.mrb[20].mxu1 %v5974_v6  ;;  %v2641_v26 = vmax.f32 %v2621_v20, 0.0 }
 0x298   : > { %v2585_v58 = vmul.f32 %v4526_v54, %v6986_v30  ;;  %v3231_v35 = vpop.xlane.xlu0 %3230  ;;  %4294 = vmatpush1.bf16.msra.mxu1 %v4293_v52  ;;  %3866 = vmatprep.mubr.msk.f32.mxu1 %vm1022_vm2, %v5979_v5  ;;  %v2642_v37 = vmax.f32 %v2622_v40, 0.0  ;;  %v2604_v21 = vmul.f32 %v6062_v63, %v2584_v56  ;;  %v2623_v55 = vadd.f32 %v6070_v14, %v2603_v59  ;;  %v6990_v40 = vld [vmem:[#allocation13_spill] sm:$0xff] }
 0x299   : > { %v4528_v34 = vpop.eup %4527  ;;  %4537 = vrsqrt.f32 %v2551_v16  ;;  %v2552_v9 = vadd.f32 1e-05, %v2532_v31  ;;  %v3289_v25 = vmul.f32 0.125, %v3231_v35  ;;  %4295 = vmatprep.subr.bf16.mxu1 %v6972_v29 }
 0x29a   : > { %v2586_v50 = vmul.f32 %v4528_v34, %v6987_v61  ;;  %v3234_v15 = vpop.xlane.xlu1 %3233  ;;  %v4296_v32 = vpack.c.bf16 %v2642_v37, %v2641_v26  ;;  %v2624_v17 = vadd.f32 %v6070_v14, %v2604_v21  ;;  %v2605_v19 = vmul.f32 %v6062_v63, %v2585_v58  ;;  %v6991_v37 = vld [vmem:[#allocation12_spill] sm:$0xff] }
 0x29b   : > { %v4530_v62 = vpop.eup %4529  ;;  %4539 = vrsqrt.f32 %v2552_v9  ;;  %v3309_v36 = vadd.f32 1e-05, %v3289_v25  ;;  %v3290_v49 = vmul.f32 0.125, %v3234_v15  ;;  %1965 = vmatmul.mubr.f32.gmra.mrb[22].mxu1 %v5992_v27  ;;  %v2643_v51 = vmax.f32 %v2623_v55, 0.0 }
 0x29c   : > { %v2587_v8 = vmul.f32 %v4530_v62, %v6988_v48  ;;  %v3237_v23 = vpop.xlane.xlu0 %3236  ;;  %4297 = vmatpush1.bf16.msra.mxu1 %v4296_v32  ;;  %3867 = vmatprep.mubr.msk.f32.mxu1 %vm1022_vm2, %v5998_v33  ;;  %v2644_v22 = vmax.f32 %v2624_v17, 0.0  ;;  %v2606_v7 = vmul.f32 %v6062_v63, %v2586_v50  ;;  %v2625_v46 = vadd.f32 %v6070_v14, %v2605_v19  ;;  %v6992_v32 = vld [vmem:[#allocation15_spill] sm:$0xff] }
 0x29d   : > { %v4532_v24 = vpop.eup %4531  ;;  %4541 = vrsqrt.f32 %v3309_v36  ;;  %v3310_v28 = vadd.f32 1e-05, %v3290_v49  ;;  %v3291_v39 = vmul.f32 0.125, %v3237_v23  ;;  %4298 = vmatprep.subr.bf16.mxu1 %v6972_v29 }
 0x29e   : > { %v2588_v43 = vmul.f32 %v4532_v24, %v6989_v47  ;;  %v3240_v4 = vpop.xlane.xlu1 %3239  ;;  %v4299_v11 = vpack.c.bf16 %v2644_v22, %v2643_v51  ;;  %v2626_v0 = vadd.f32 %v6070_v14, %v2606_v7  ;;  %v2607_v20 = vmul.f32 %v6062_v63, %v2587_v8  ;;  %v6993_v7 = vld [vmem:[#allocation14_spill] sm:$0xff] }
 0x29f   : > { %v4534_v13 = vpop.eup %4533  ;;  %4543 = vrsqrt.f32 %v3310_v28  ;;  %v3311_v56 = vadd.f32 1e-05, %v3291_v39  ;;  %v3292_v45 = vmul.f32 0.125, %v3240_v4  ;;  %1970 = vmatmul.mubr.f32.gmra.mrb[24].mxu1 %v6010_v2  ;;  %v2645_v52 = vmax.f32 %v2625_v46, 0.0 }
 0x2a0   : > { %v2589_v59 = vmul.f32 %v4534_v13, %v6990_v40  ;;  %v3243_v54 = vpop.xlane.xlu0 %3242  ;;  %4300 = vmatpush1.bf16.msra.mxu1 %v4299_v11  ;;  %3868 = vmatprep.mubr.msk.f32.mxu1 %vm1022_vm2, %v6015_v44  ;;  %v2646_v16 = vmax.f32 %v2626_v0, 0.0  ;;  %v2608_v31 = vmul.f32 %v6062_v63, %v2588_v43  ;;  %v2627_v26 = vadd.f32 %v6070_v14, %v2607_v20  ;;  %v6994_v0 = vld [vmem:[#allocation17_spill] sm:$0xff] }
 0x2a1   : > { %v4536_v30 = vpop.eup %4535  ;;  %4545 = vrsqrt.f32 %v3311_v56  ;;  %v3312_v58 = vadd.f32 1e-05, %v3292_v45  ;;  %v3293_v35 = vmul.f32 0.125, %v3243_v54  ;;  %4301 = vmatprep.subr.bf16.mxu1 %v6972_v29  ;;  %v6995_v54 = vld [vmem:[#allocation16_spill] sm:$0xff] }
 0x2a2   : > { %v2590_v21 = vmul.f32 %v4536_v30, %v6991_v37  ;;  %v3246_v55 = vpop.xlane.xlu1 %3245  ;;  %v4302_v34 = vpack.c.bf16 %v2646_v16, %v2645_v52  ;;  %v2628_v9 = vadd.f32 %v6070_v14, %v2608_v31  ;;  %v2609_v15 = vmul.f32 %v6062_v63, %v2589_v59 }
 0x2a3   : > { %v4538_v25 = vpop.eup %4537  ;;  %4547 = vrsqrt.f32 %v3312_v58  ;;  %v3313_v61 = vadd.f32 1e-05, %v3293_v35  ;;  %v3294_v50 = vmul.f32 0.125, %v3246_v55  ;;  %1975 = vmatmul.mubr.f32.gmra.mrb[26].mxu1 %v6029_v38  ;;  %v2647_v36 = vmax.f32 %v2627_v26, 0.0  ;;  %v6996_v55 = vld [vmem:[#allocation19_spill] sm:$0xff] }
 0x2a4   : > { %v2591_v17 = vmul.f32 %v4538_v25, %v6992_v32  ;;  %v3249_v62 = vpop.xlane.xlu0 %3248  ;;  %4303 = vmatpush1.bf16.msra.mxu1 %v4302_v34  ;;  %v2648_v49 = vmax.f32 %v2628_v9, 0.0  ;;  %v2610_v19 = vmul.f32 %v6062_v63, %v2590_v21  ;;  %3924 = vmatprep.mubr.msk.f32.mxu1 %vm1022_vm2, %v6043_v60  ;;  %v2629_v51 = vadd.f32 %v6070_v14, %v2609_v15 }
 0x2a5   : > { %v4540_v48 = vpop.eup %4539  ;;  %4549 = vrsqrt.f32 %v3313_v61  ;;  %v3314_v8 = vadd.f32 1e-05, %v3294_v50  ;;  %v3295_v23 = vmul.f32 0.125, %v3249_v62  ;;  %4304 = vmatprep.subr.bf16.mxu1 %v6972_v29 }
 0x2a6   : > { %v2611_v22 = vmul.f32 %v6062_v63, %v2591_v17  ;;  %v2592_v24 = vmul.f32 %v4540_v48, %v6993_v7  ;;  %v3252_v28 = vpop.xlane.xlu1 %3251  ;;  %v4305_v39 = vpack.c.bf16 %v2648_v49, %v2647_v36  ;;  %v2630_v46 = vadd.f32 %v6070_v14, %v2610_v19  ;;  %v6997_v36 = vld [vmem:[#allocation18_spill] sm:$0xff] }
 0x2a7   : > { %v4542_v47 = vpop.eup %4541  ;;  %4551 = vrsqrt.f32 %v3314_v8  ;;  %v3315_v43 = vadd.f32 1e-05, %v3295_v23  ;;  %v3296_v60 = vmul.f32 0.125, %v3252_v28  ;;  %v2649_v4 = vmax.f32 %v2629_v51, 0.0  ;;  %v6998_v28 = vld [vmem:[#allocation21_spill] sm:$0xff] }
 0x2a8   : > { %v2612_v11 = vmul.f32 %v6062_v63, %v2592_v24  ;;  %v3349_v20 = vmul.f32 %v4542_v47, %v6994_v0  ;;  %v3255_v13 = vpop.xlane.xlu0 %3254  ;;  %4306 = vmatpush1.bf16.msra.mxu1 %v4305_v39  ;;  %v2650_v56 = vmax.f32 %v2630_v46, 0.0  ;;  %v2631_v45 = vadd.f32 %v6070_v14, %v2611_v22 }
 0x2a9   : > { %v4544_v52 = vpop.eup %4543  ;;  %4553 = vrsqrt.f32 %v3315_v43  ;;  %v3316_v40 = vadd.f32 1e-05, %v3296_v60  ;;  %v3297_v59 = vmul.f32 0.125, %v3255_v13  ;;  %4307 = vmatprep.subr.bf16.mxu1 %v6972_v29 }
 0x2aa   : > { %v3350_v16 = vmul.f32 %v4544_v52, %v6995_v54  ;;  %v3258_v31 = vpop.xlane.xlu1 %3257  ;;  %v4308_v26 = vpack.c.bf16 %v2650_v56, %v2649_v4  ;;  %v2632_v30 = vadd.f32 %v6070_v14, %v2612_v11  ;;  %v3369_v21 = vmul.f32 %v6062_v63, %v3349_v20  ;;  %v6999_v20 = vld [vmem:[#allocation20_spill] sm:$0xff] }
 0x2ab   : > { %v4546_v58 = vpop.eup %4545  ;;  %4555 = vrsqrt.f32 %v3316_v40  ;;  %v3317_v35 = vadd.f32 1e-05, %v3297_v59  ;;  %v3298_v37 = vmul.f32 0.125, %v3258_v31  ;;  %v2651_v25 = vmax.f32 %v2631_v45, 0.0  ;;  %v7000_v31 = vld [vmem:[#allocation23_spill] sm:$0xff] }
 0x2ac   : > { %v3351_v34 = vmul.f32 %v4546_v58, %v6996_v55  ;;  %v3261_v9 = vpop.xlane.xlu0 %3260  ;;  %4309 = vmatpush1.bf16.msra.mxu1 %v4308_v26  ;;  %v2652_v61 = vmax.f32 %v2632_v30, 0.0  ;;  %v3370_v50 = vmul.f32 %v6062_v63, %v3350_v16  ;;  %v3389_v62 = vadd.f32 %v6070_v14, %v3369_v21 }
 0x2ad   : > { %v4548_v15 = vpop.eup %4547  ;;  %4557 = vrsqrt.f32 %v3317_v35  ;;  %v3318_v32 = vadd.f32 1e-05, %v3298_v37  ;;  %v3299_v17 = vmul.f32 0.125, %v3261_v9  ;;  %4310 = vmatprep.subr.bf16.mxu1 %v6972_v29  ;;  %v7001_v9 = vld [vmem:[#allocation22_spill] sm:$0xff] }
 0x2ae   : > { %v3352_v49 = vmul.f32 %v4548_v15, %v6997_v36  ;;  %v3264_v19 = vpop.xlane.xlu1 %3263  ;;  %v4311_v48 = vpack.c.bf16 %v2652_v61, %v2651_v25  ;;  %v3390_v8 = vadd.f32 %v6070_v14, %v3370_v50  ;;  %v3371_v23 = vmul.f32 %v6062_v63, %v3351_v34 }
 0x2af   : > { %v4550_v51 = vpop.eup %4549  ;;  %4559 = vrsqrt.f32 %v3318_v32  ;;  %v3319_v22 = vadd.f32 1e-05, %v3299_v17  ;;  %v3300_v7 = vmul.f32 0.125, %v3264_v19  ;;  %v3409_v24 = vmax.f32 %v3389_v62, 0.0 }
 0x2b0   : > { %v3353_v39 = vmul.f32 %v4550_v51, %v6998_v28  ;;  %v3267_v46 = vpop.xlane.xlu0 %3266  ;;  %4313 = vmatpush1.bf16.msk.msra.mxu1 %vm5913_vm5, %v4311_v48  ;;  %v3410_v47 = vmax.f32 %v3390_v8, 0.0  ;;  %v3372_v43 = vmul.f32 %v6062_v63, %v3352_v49  ;;  %v3391_v60 = vadd.f32 %v6070_v14, %v3371_v23  ;;  %v7002_v49 = vld [vmem:[#allocation25_spill] sm:$0xff] }
 0x2b1   : > { %v4552_v4 = vpop.eup %4551  ;;  %4561 = vrsqrt.f32 %v3319_v22  ;;  %v3320_v11 = vadd.f32 1e-05, %v3300_v7  ;;  %v3301_v0 = vmul.f32 0.125, %v3267_v46  ;;  %4345 = vmatprep.subr.bf16.mxu1 %v6972_v29 }
 0x2b2   : > { %v3354_v13 = vmul.f32 %v4552_v4, %v6999_v20  ;;  %v3270_v56 = vpop.xlane.xlu1 %3269  ;;  %v4315_v45 = vpack.c.bf16 %v3410_v47, %v3409_v24  ;;  %v3392_v52 = vadd.f32 %v6070_v14, %v3372_v43  ;;  %v3373_v16 = vmul.f32 %v6062_v63, %v3353_v39 }
 0x2b3   : > { %v4554_v40 = vpop.eup %4553  ;;  %4563 = vrsqrt.f32 %v3320_v11  ;;  %v3321_v59 = vadd.f32 1e-05, %v3301_v0  ;;  %v3302_v54 = vmul.f32 0.125, %v3270_v56  ;;  %2721 = vmatmul.mubr.f32.vlgmr.msra.gmra.mrb[28].mxu1 %v5925_v1  ;;  %v3411_v58 = vmax.f32 %v3391_v60, 0.0 }
 0x2b4   : > { %v3355_v26 = vmul.f32 %v4554_v40, %v7000_v31  ;;  %v3273_v30 = vpop.xlane.xlu0 %3272  ;;  %4316 = vmatpush1.bf16.msra.mxu0 %v4315_v45  ;;  %4355 = vmatpush1.bf16.msra.mxu1 %v4315_v45  ;;  %v3412_v35 = vmax.f32 %v3392_v52, 0.0  ;;  %v3374_v37 = vmul.f32 %v6062_v63, %v3354_v13  ;;  %v3393_v1 = vadd.f32 %v6070_v14, %v3373_v16 }
 0x2b5   : > { %v4556_v21 = vpop.eup %4555  ;;  %4565 = vrsqrt.f32 %v3321_v59  ;;  %v3322_v55 = vadd.f32 1e-05, %v3302_v54  ;;  %v3303_v34 = vmul.f32 0.125, %v3273_v30  ;;  %3925 = vmatprep.mubr.msk.f32.mxu1 %vm1022_vm2, %v5931_v53  ;;  %4317 = vmatprep.subr.bf16.mxu0 %v6972_v29 }
 0x2b6   : > { %v3356_v25 = vmul.f32 %v4556_v21, %v7001_v9  ;;  %v3276_v61 = vpop.xlane.xlu1 %3275  ;;  %4346 = vmatprep.subr.bf16.mxu1 %v6972_v29  ;;  %v4318_v50 = vpack.c.bf16 %v3412_v35, %v3411_v58  ;;  %v3394_v15 = vadd.f32 %v6070_v14, %v3374_v37  ;;  %v3375_v32 = vmul.f32 %v6062_v63, %v3355_v26  ;;  %v7004_v35 = vld [vmem:[#allocation27_spill] sm:$0xff]  ;;  %v7005_v9 = vld [vmem:[#allocation26_spill] sm:$0xff] }
 0x2b7   : > { %v4558_v17 = vpop.eup %4557  ;;  %4567 = vrsqrt.f32 %v3322_v55  ;;  %v3323_v62 = vadd.f32 1e-05, %v3303_v34  ;;  %v3304_v36 = vmul.f32 0.125, %v3276_v61  ;;  %2726 = vmatmul.mubr.f32.gmra.mrb[30].mxu1 %v5941_v42  ;;  %v3413_v53 = vmax.f32 %v3393_v1, 0.0  ;;  %v7003_v42 = vld [vmem:[#allocation24_spill] sm:$0xff] }
 0x2b8   : > { %v3357_v19 = vmul.f32 %v4558_v17, %v7002_v49  ;;  %v3279_v48 = vpop.xlane.xlu0 %3278  ;;  %4319 = vmatpush1.bf16.msra.mxu0 %v4318_v50  ;;  %4356 = vmatpush1.bf16.msra.mxu1 %v4318_v50  ;;  %v3414_v8 = vmax.f32 %v3394_v15, 0.0  ;;  %v3376_v23 = vmul.f32 %v6062_v63, %v3356_v25  ;;  %v3395_v51 = vadd.f32 %v6070_v14, %v3375_v32  ;;  %v7006_v32 = vld [vmem:[#allocation29_spill] sm:$0xff] }
 0x2b9   : > { %v4560_v22 = vpop.eup %4559  ;;  %4569 = vrsqrt.f32 %v3323_v62  ;;  %v3324_v7 = vadd.f32 1e-05, %v3304_v36  ;;  %v3305_v24 = vmul.f32 0.125, %v3279_v48  ;;  %3926 = vmatprep.mubr.msk.f32.mxu1 %vm1022_vm2, %v5946_v18  ;;  %4320 = vmatprep.subr.bf16.mxu0 %v6972_v29 }
 0x2ba   : > { %v3358_v28 = vmul.f32 %v4560_v22, %v7003_v42  ;;  %v3282_v39 = vpop.xlane.xlu1 %3281  ;;  %4347 = vmatprep.subr.bf16.mxu1 %v6972_v29  ;;  %v4321_v46 = vpack.c.bf16 %v3414_v8, %v3413_v53  ;;  %v3396_v47 = vadd.f32 %v6070_v14, %v3376_v23  ;;  %v3377_v11 = vmul.f32 %v6062_v63, %v3357_v19  ;;  %v7007_v19 = vld [vmem:[#allocation28_spill] sm:$0xff] }
 0x2bb   : > { %v4562_v43 = vpop.eup %4561  ;;  %4571 = vrsqrt.f32 %v3324_v7  ;;  %v3325_v60 = vadd.f32 1e-05, %v3305_v24  ;;  %v3306_v4 = vmul.f32 0.125, %v3282_v39  ;;  %2731 = vmatmul.mubr.f32.gmra.mrb[32].mxu1 %v5957_v12  ;;  %v3415_v20 = vmax.f32 %v3395_v51, 0.0  ;;  %v7008_v7 = vld [vmem:[#allocation30_spill] sm:$0xff] }
 0x2bc   : > { %v3359_v18 = vmul.f32 %v4562_v43, %v5731_v3  ;;  %v3285_v0 = vpop.xlane.xlu0 %3284  ;;  %4322 = vmatpush1.bf16.msra.mxu0 %v4321_v46  ;;  %4357 = vmatpush1.bf16.msra.mxu1 %v4321_v46  ;;  %v3416_v13 = vmax.f32 %v3396_v47, 0.0  ;;  %v3378_v56 = vmul.f32 %v6062_v63, %v3358_v28  ;;  %v3397_v12 = vadd.f32 %v6070_v14, %v3377_v11  ;;  %v7009_v46 = vld [vmem:[#allocation33_spill] sm:$0xff]  ;;  %v7010_v11 = vld [vmem:[#allocation35_spill] sm:$0xff] }
 0x2bd   : > { %v4564_v45 = vpop.eup %4563  ;;  %4573 = vrsqrt.f32 %v3325_v60  ;;  %v3326_v52 = vadd.f32 1e-05, %v3306_v4  ;;  %v3307_v40 = vmul.f32 0.125, %v3285_v0  ;;  %3927 = vmatprep.mubr.msk.f32.mxu1 %vm1022_vm2, %v5963_v41  ;;  %4323 = vmatprep.subr.bf16.mxu0 %v6972_v29 }
 0x2be   : > { %v3360_v3 = vmul.f32 %v4564_v45, %v5737_v10  ;;  %v3288_v59 = vpop.xlane.xlu1 %3287  ;;  %4348 = vmatprep.subr.bf16.mxu1 %v6972_v29  ;;  %v4324_v54 = vpack.c.bf16 %v3416_v13, %v3415_v20  ;;  %v3398_v16 = vadd.f32 %v6070_v14, %v3378_v56  ;;  %v3379_v31 = vmul.f32 %v6062_v63, %v3359_v18 }
 0x2bf   : > { %v4566_v26 = vpop.eup %4565  ;;  %4575 = vrsqrt.f32 %v3326_v52  ;;  %v3327_v30 = vadd.f32 1e-05, %v3307_v40  ;;  %v3308_v58 = vmul.f32 0.125, %v3288_v59  ;;  %2736 = vmatmul.mubr.f32.gmra.mrb[34].mxu1 %v5974_v6  ;;  %v3417_v41 = vmax.f32 %v3397_v12, 0.0  ;;  %v7011_v52 = vld [vmem:[#allocation32_spill] sm:$0xff]  ;;  %v4592_v59 = vld [vmem:[%s5563_s21 + $0x38] sm:$0xff] }
 0x2c0   : > { %v3361_v37 = vmul.f32 %v4566_v26, %v7004_v35  ;;  %4325 = vmatpush1.bf16.msra.mxu0 %v4324_v54  ;;  %4358 = vmatpush1.bf16.msra.mxu1 %v4324_v54  ;;  %v3418_v10 = vmax.f32 %v3398_v16, 0.0  ;;  %v3380_v21 = vmul.f32 %v6062_v63, %v3360_v3  ;;  %v3399_v55 = vadd.f32 %v6070_v14, %v3379_v31 }
 0x2c1   : > { %v4568_v34 = vpop.eup %4567  ;;  %4577 = vrsqrt.f32 %v3327_v30  ;;  %v3328_v1 = vadd.f32 1e-05, %v3308_v58  ;;  %3928 = vmatprep.mubr.msk.f32.mxu1 %vm1022_vm2, %v5979_v5  ;;  %4326 = vmatprep.subr.bf16.mxu0 %v6972_v29 }
 0x2c2   : > { %v3362_v6 = vmul.f32 %v4568_v34, %v7005_v9  ;;  %4349 = vmatprep.subr.bf16.mxu1 %v6972_v29  ;;  %v4327_v25 = vpack.c.bf16 %v3418_v10, %v3417_v41  ;;  %v3400_v61 = vadd.f32 %v6070_v14, %v3380_v21  ;;  %v3381_v15 = vmul.f32 %v6062_v63, %v3361_v37  ;;  %v4594_v37 = vld [vmem:[%s5563_s21 + $0x30] sm:$0xff]  ;;  %v4595_v10 = vld [vmem:[%s5563_s21 + $0x18] sm:$0xff] }
 0x2c3   : > { %v4570_v50 = vpop.eup %4569  ;;  %4579 = vrsqrt.f32 %v3328_v1  ;;  %2741 = vmatmul.mubr.f32.gmra.mrb[36].mxu1 %v5992_v27  ;;  %v3419_v5 = vmax.f32 %v3399_v55, 0.0  ;;  %v4597_v21 = vld [vmem:[%s5563_s21 + $0x10] sm:$0xff]  ;;  %v4598_v55 = vld [vmem:[%s5563_s21 + $0x40] sm:$0xff]  ;;  %v4600_v34 = vld [vmem:[%s5563_s21 + $0x58] sm:$0xff] }
 0x2c4   : > { %v3363_v17 = vmul.f32 %v4570_v50, %v7006_v32  ;;  %4328 = vmatpush1.bf16.msra.mxu0 %v4327_v25  ;;  %4359 = vmatpush1.bf16.msra.mxu1 %v4327_v25  ;;  %v3420_v62 = vmax.f32 %v3400_v61, 0.0  ;;  %v3382_v36 = vmul.f32 %v6062_v63, %v3362_v6  ;;  %v3401_v49 = vadd.f32 %v6070_v14, %v3381_v15  ;;  %v4601_v1 = vld [vmem:[%s5563_s21 + $0x20] sm:$0xff]  ;;  %v4602_v9 = vld [vmem:[%s5563_s21 + $0x50] sm:$0xff]  ;;  %v4603_v6 = vld [vmem:[%s5563_s21 + $0x68] sm:$0x7]  ;;  %v6285_v25 = vpop.permute.xlu1 %994  ;;  %v6287_v61 = vpop.permute.xlu0 %989 }
 0x2c5   : > { %v4572_v53 = vpop.eup %4571  ;;  %3929 = vmatprep.mubr.msk.f32.mxu1 %vm1022_vm2, %v5998_v33  ;;  %4329 = vmatprep.subr.bf16.mxu0 %v6972_v29 }
 0x2c6   : > { %v3364_v27 = vmul.f32 %v4572_v53, %v7007_v19  ;;  %4350 = vmatprep.subr.bf16.mxu1 %v6972_v29  ;;  %v4330_v48 = vpack.c.bf16 %v3420_v62, %v3419_v5  ;;  %v3402_v8 = vadd.f32 %v6070_v14, %v3382_v36  ;;  %v3383_v23 = vmul.f32 %v6062_v63, %v3363_v17 }
 0x2c7   : > { %v4574_v51 = vpop.eup %4573  ;;  %2746 = vmatmul.mubr.f32.gmra.mrb[38].mxu1 %v6010_v2  ;;  %v3421_v22 = vmax.f32 %v3401_v49, 0.0 }
 0x2c8   : > { %v3365_v24 = vmul.f32 %v4574_v51, %v7008_v7  ;;  %4331 = vmatpush1.bf16.msra.mxu0 %v4330_v48  ;;  %4360 = vmatpush1.bf16.msra.mxu1 %v4330_v48  ;;  %v3422_v33 = vmax.f32 %v3402_v8, 0.0  ;;  %v3384_v42 = vmul.f32 %v6062_v63, %v3364_v27  ;;  %v3403_v28 = vadd.f32 %v6070_v14, %v3383_v23  ;;  %v6289_v50 = vpop.permute.xlu1 %999 }
 0x2c9   : > { %v4576_v39 = vpop.eup %4575  ;;  %3930 = vmatprep.mubr.msk.f32.mxu1 %vm1022_vm2, %v6015_v44  ;;  %4332 = vmatprep.subr.bf16.mxu0 %v6972_v29 }
 0x2ca   : > { %v3366_v47 = vmul.f32 %v4576_v39, %v7009_v46  ;;  %4351 = vmatprep.subr.bf16.mxu1 %v6972_v29  ;;  %v4333_v2 = vpack.c.bf16 %v3422_v33, %v3421_v22  ;;  %v3404_v43 = vadd.f32 %v6070_v14, %v3384_v42  ;;  %v3385_v4 = vmul.f32 %v6062_v63, %v3365_v24 }
 0x2cb   : > { %v4578_v60 = vpop.eup %4577  ;;  %2751 = vmatmul.mubr.f32.gmra.mrb[40].mxu1 %v6029_v38  ;;  %v3423_v44 = vmax.f32 %v3403_v28, 0.0 }
 0x2cc   : > { %v3367_v18 = vmul.f32 %v4578_v60, %v7010_v11  ;;  %4334 = vmatpush1.bf16.msra.mxu0 %v4333_v2  ;;  %4361 = vmatpush1.bf16.msra.mxu1 %v4333_v2  ;;  %v3424_v0 = vmax.f32 %v3404_v43, 0.0  ;;  %v3386_v20 = vmul.f32 %v6062_v63, %v3366_v47  ;;  %v3405_v56 = vadd.f32 %v6070_v14, %v3385_v4  ;;  %v6292_v62 = vpop.permute.xlu1 %1004 }
 0x2cd   : > { %v4580_v13 = vpop.eup %4579  ;;  %4335 = vmatprep.subr.bf16.mxu0 %v6972_v29  ;;  %4352 = vmatprep.subr.bf16.mxu1 %v6972_v29 }
 0x2ce   : > { %v3387_v45 = vmul.f32 %v6062_v63, %v3367_v18  ;;  %v3368_v40 = vmul.f32 %v4580_v13, %v7011_v52  ;;  %v4336_v12 = vpack.c.bf16 %v3424_v0, %v3423_v44  ;;  %v3406_v3 = vadd.f32 %v6070_v14, %v3386_v20  ;;  %3989 = vmatprep.mubr.msk.f32.mxu1 %vm1022_vm2, %v4592_v59 }
 0x2cf   : > { %v3425_v16 = vmax.f32 %v3405_v56, 0.0 }
 0x2d0   : > { %v3388_v54 = vmul.f32 %v6062_v63, %v3368_v40  ;;  %4337 = vmatpush1.bf16.msra.mxu0 %v4336_v12  ;;  %4362 = vmatpush1.bf16.msra.mxu1 %v4336_v12  ;;  %v3426_v31 = vmax.f32 %v3406_v3, 0.0  ;;  %v3407_v26 = vadd.f32 %v6070_v14, %v3387_v45  ;;  %v6298_v23 = vpop.permute.xlu1 %1009 }
 0x2d1   : > { %4338 = vmatprep.subr.bf16.mxu0 %v6972_v29  ;;  %4353 = vmatprep.subr.bf16.mxu1 %v6972_v29 }
 0x2d2   : > { %v4339_v30 = vpack.c.bf16 %v3426_v31, %v3425_v16  ;;  %v3408_v58 = vadd.f32 %v6070_v14, %v3388_v54  ;;  %v3427_v63 = vmax.f32 %v3407_v26, 0.0  ;;  %v4593_v14 = vld [vmem:[%s5563_s21] sm:$0xff] }
 0x2d4   : > { %4340 = vmatpush1.bf16.msra.mxu0 %v4339_v30  ;;  %4363 = vmatpush1.bf16.msra.mxu1 %v4339_v30  ;;  %v3428_v41 = vmax.f32 %v3408_v58, 0.0  ;;  %v6303_v46 = vpop.permute.xlu1 %1014 }
 0x2d5   : > { %4341 = vmatprep.subr.bf16.mxu0 %v6972_v29  ;;  %4354 = vmatprep.subr.bf16.mxu1 %v6972_v29  ;;  %v4596_v29 = vld [vmem:[%s5563_s21 + $0x48] sm:$0xff] }
 0x2d6   : > { %v4342_v35 = vpack.c.bf16 %v3428_v41, %v3427_v63 }
 0x2d8   : > { %4344 = vmatpush1.bf16.msk.msra.mxu0 %vm5913_vm5, %v4342_v35  ;;  %4364 = vmatpush1.bf16.msk.msra.mxu1 %vm5913_vm5, %v4342_v35  ;;  %v6308_v44 = vpop.permute.xlu1 %1019 }
 0x2db   : > { %3497 = vmatmul.mubr.f32.vlgmr.msra.gmra.mrb[80].mxu0 %v4593_v14  ;;  %3512 = vmatmul.mubr.f32.vlgmr.msra.gmra.mrb[42].mxu1 %v4594_v37 }
 0x2dc   : > { %3987 = vmatprep.mubr.msk.f32.mxu0 %vm1022_vm2, %v4595_v10  ;;  %3990 = vmatprep.mubr.msk.f32.mxu1 %vm1022_vm2, %v4596_v29 }
 0x2df   : > { %3502 = vmatmul.mubr.f32.gmra.mrb[82].mxu0 %v4597_v21  ;;  %3517 = vmatmul.mubr.f32.gmra.mrb[44].mxu1 %v4598_v55 }
 0x2e0   : > { %3988 = vmatprep.mubr.msk.f32.mxu0 %vm1022_vm2, %v4599_v57  ;;  %3991 = vmatprep.mubr.msk.f32.mxu1 %vm1022_vm2, %v4600_v34 }
 0x2e3   : > { %3507 = vmatmul.mubr.f32.gmra.mrb[84].mxu0 %v4601_v1  ;;  %3522 = vmatmul.mubr.f32.gmra.mrb[46].mxu1 %v4602_v9 }
 0x2e4   : > { %3992 = vmatprep.mubr.msk.f32.mxu1 %vm1022_vm2, %v4603_v6 }
 0x2e7   : > { %3527 = vmatmul.mubr.f32.gmra.mrb[48].mxu1 %v6029_v38 }
 0x336   : > { %v1114_v15 = vpop.f32.mrb[0].mxu1 }
 0x337   : > { %v1116_v32 = vpop.f32.mrb[1].mxu1  ;;  %v1115_v17 = vadd.f32 %v1114_v15, %v6287_v61  ;;  %v6339_v15 = vpop.permute.xlu1 %1214 }
 0x339   : > { %v1148_v49 = vsel %vm431_vm0, %v1115_v17, 0.0 }
 0x33a   : > { %v1119_v5 = vpop.f32.mrb[2].mxu1 }
 0x33b   : > { %v1120_v36 = vadd.f32 %v1119_v5, %v6285_v25  ;;  %v1121_v53 = vpop.f32.mrb[3].mxu1 }
 0x33d   : > { %v1149_v38 = vsel %vm431_vm0, %v1120_v36, 0.0 }
 0x33e   : > { %v1124_v19 = vpop.f32.mrb[4].mxu1  ;;  %v1150_v27 = vadd.f32 %v1149_v38, %v1148_v49 }
 0x33f   : > { %v1125_v48 = vadd.f32 %v1124_v19, %v6289_v50  ;;  %v1126_v8 = vpop.f32.mrb[5].mxu1 }
 0x341   : > { %v1151_v51 = vsel %vm431_vm0, %v1125_v48, 0.0 }
 0x342   : > { %v1152_v22 = vadd.f32 %v1151_v51, %v1150_v27  ;;  %v1129_v7 = vpop.f32.mrb[6].mxu1 }
 0x343   : > { %v1130_v24 = vadd.f32 %v1129_v7, %v6292_v62  ;;  %v1131_v33 = vpop.f32.mrb[7].mxu1 }
 0x345   : > { %v1153_v42 = vsel %vm431_vm0, %v1130_v24, 0.0 }
 0x346   : > { %v1154_v28 = vadd.f32 %v1153_v42, %v1152_v22  ;;  %v1134_v39 = vpop.f32.mrb[8].mxu1 }
 0x347   : > { %v1135_v47 = vadd.f32 %v1134_v39, %v6298_v23  ;;  %v1136_v2 = vpop.f32.mrb[9].mxu1 }
 0x349   : > { %v1155_v43 = vsel %vm431_vm0, %v1135_v47, 0.0 }
 0x34a   : > { %v1156_v60 = vadd.f32 %v1155_v43, %v1154_v28  ;;  %v1139_v4 = vpop.f32.mrb[10].mxu1  ;;  %v6360_v28 = vpop.permute.xlu1 %1218 }
 0x34b   : > { %v1140_v11 = vadd.f32 %v1139_v4, %v6303_v46  ;;  %v1141_v18 = vpop.f32.mrb[11].mxu1 }
 0x34d   : > { %v1157_v0 = vsel %vm431_vm0, %v1140_v11, 0.0 }
 0x34e   : > { %v1158_v20 = vadd.f32 %v1157_v0, %v1156_v60  ;;  %v1144_v13 = vpop.f32.mrb[12].mxu1 }
 0x34f   : > { %v1145_v56 = vadd.f32 %v1144_v13, %v6308_v44  ;;  %v1146_v45 = vpop.f32.mrb[13].mxu1 }
 0x351   : > { %v1160_v52 = vsel %vm1159_vm6, %v1145_v56, 0.0 }
 0x352   : > { %v1161_v40 = vadd.f32 %v1160_v52, %v1158_v20 }
 0x354   : > { %v1162_v12 = vrot.slane %v1161_v40, 4 }
 0x356   : > { %v1163_v3 = vadd.f32 %v1162_v12, %v1161_v40  ;;  %v6370_v12 = vpop.permute.xlu1 %1226 }
 0x358   : > { %v1164_v59 = vrot.slane %v1163_v3, 2 }
 0x35a   : > { %v1165_v54 = vadd.f32 %v1164_v59, %v1163_v3 }
 0x35c   : > { %v1166_v16 = vrot.slane %v1165_v54, 1 }
 0x35e   : > { %v1167_v31 = vadd.f32 %v1166_v16, %v1165_v54  ;;  %v1946_v26 = vpop.f32.mrb[14].mxu1 }
 0x35f   : > { %v1948_v30 = vpop.f32.mrb[15].mxu1  ;;  %v6314_v63 = vadd.f32 %v1946_v26, %v6287_v61 }
 0x360   : > { %v1169_v58 = vmul.f32 0.019607844, %v1167_v31 }
 0x361   : > { %v1980_v32 = vsel %vm431_vm0, %v6314_v63, 0.0 }
 0x362   : > { %v6316_v41 = vsub.f32 %v1115_v17, %v1169_v58  ;;  %v6318_v35 = vsub.f32 %v1120_v36, %v1169_v58  ;;  %v6320_v14 = vsub.f32 %v1125_v48, %v1169_v58  ;;  %v6322_v37 = vsub.f32 %v1130_v24, %v1169_v58  ;;  %v1951_v10 = vpop.f32.mrb[16].mxu1 }
 0x363   : > { %v6324_v29 = vsub.f32 %v1135_v47, %v1169_v58  ;;  %v6326_v21 = vsub.f32 %v1140_v11, %v1169_v58  ;;  %v6328_v55 = vsub.f32 %v1145_v56, %v1169_v58  ;;  %v6331_v57 = vadd.f32 %v1951_v10, %v6285_v25  ;;  %v1953_v34 = vpop.f32.mrb[17].mxu1 }
 0x364   : > { %v1177_v1 = vmul.f32 %v6316_v41, %v6316_v41  ;;  %v1178_v9 = vmul.f32 %v6318_v35, %v6318_v35  ;;  %v1179_v6 = vmul.f32 %v6320_v14, %v6320_v14  ;;  %v1180_v5 = vmul.f32 %v6322_v37, %v6322_v37 }
 0x365   : > { %v1981_v17 = vsel %vm431_vm0, %v6331_v57, 0.0  ;;  %v1181_v27 = vmul.f32 %v6324_v29, %v6324_v29  ;;  %v1182_v7 = vmul.f32 %v6326_v21, %v6326_v21  ;;  %v1183_v60 = vmul.f32 %v6328_v55, %v6328_v55 }
 0x366   : > { %v1184_v36 = vsel %vm431_vm0, %v1177_v1, 0.0  ;;  %v1185_v53 = vsel %vm431_vm0, %v1178_v9, 0.0  ;;  %v1956_v49 = vpop.f32.mrb[18].mxu1  ;;  %v1187_v48 = vsel %vm431_vm0, %v1179_v6, 0.0  ;;  %v1982_v8 = vadd.f32 %v1981_v17, %v1980_v32  ;;  %v6375_v9 = vpop.permute.xlu1 %1230 }
 0x367   : > { %v1186_v38 = vadd.f32 %v1185_v53, %v1184_v36  ;;  %v1958_v19 = vpop.f32.mrb[19].mxu1  ;;  %v6353_v51 = vadd.f32 %v1956_v49, %v6289_v50  ;;  %v1189_v24 = vsel %vm431_vm0, %v1180_v5, 0.0  ;;  %v1191_v4 = vsel %vm431_vm0, %v1181_v27, 0.0 }
 0x368   : > { %v1193_v0 = vsel %vm431_vm0, %v1182_v7, 0.0  ;;  %v1195_v40 = vsel %vm1159_vm6, %v1183_v60, 0.0 }
 0x369   : > { %v1188_v22 = vadd.f32 %v1187_v48, %v1186_v38  ;;  %v1983_v33 = vsel %vm431_vm0, %v6353_v51, 0.0 }
 0x36a   : > { %v1961_v42 = vpop.f32.mrb[20].mxu1  ;;  %v1984_v47 = vadd.f32 %v1983_v33, %v1982_v8  ;;  %v6379_v19 = vpop.permute.xlu1 %1238 }
 0x36b   : > { %v1190_v39 = vadd.f32 %v1189_v24, %v1188_v22  ;;  %v1962_v2 = vadd.f32 %v1961_v42, %v6292_v62  ;;  %v1963_v43 = vpop.f32.mrb[21].mxu1  ;;  %v6381_v24 = vpop.permute.xlu0 %1222 }
 0x36d   : > { %v1192_v11 = vadd.f32 %v1191_v4, %v1190_v39  ;;  %v1985_v18 = vsel %vm431_vm0, %v1962_v2, 0.0 }
 0x36e   : > { %v1986_v20 = vadd.f32 %v1985_v18, %v1984_v47  ;;  %v1966_v13 = vpop.f32.mrb[22].mxu1  ;;  %v6383_v42 = vpop.permute.xlu1 %1253 }
 0x36f   : > { %v1194_v56 = vadd.f32 %v1193_v0, %v1192_v11  ;;  %v1967_v45 = vadd.f32 %v1966_v13, %v6298_v23  ;;  %v1968_v52 = vpop.f32.mrb[23].mxu1  ;;  %v6385_v60 = vpop.permute.xlu0 %1234 }
 0x371   : > { %v1196_v3 = vadd.f32 %v1195_v40, %v1194_v56  ;;  %v1987_v59 = vsel %vm431_vm0, %v1967_v45, 0.0 }
 0x372   : > { %v1988_v54 = vadd.f32 %v1987_v59, %v1986_v20  ;;  %v1971_v16 = vpop.f32.mrb[24].mxu1  ;;  %v6390_v0 = vpop.permute.xlu1 %1257 }
 0x373   : > { %v1197_v31 = vrot.slane %v1196_v3, 4  ;;  %v1972_v26 = vadd.f32 %v1971_v16, %v6303_v46  ;;  %v1973_v30 = vpop.f32.mrb[25].mxu1 }
 0x375   : > { %v1198_v58 = vadd.f32 %v1197_v31, %v1196_v3  ;;  %v1989_v10 = vsel %vm431_vm0, %v1972_v26, 0.0 }
 0x376   : > { %v1990_v34 = vadd.f32 %v1989_v10, %v1988_v54  ;;  %v1976_v1 = vpop.f32.mrb[26].mxu1 }
 0x377   : > { %v1199_v6 = vrot.slane %v1198_v58, 2  ;;  %v1977_v32 = vadd.f32 %v1976_v1, %v6308_v44  ;;  %v1978_v17 = vpop.f32.mrb[27].mxu1 }
 0x379   : > { %v1200_v5 = vadd.f32 %v1199_v6, %v1198_v58  ;;  %v1991_v36 = vsel %vm1159_vm6, %v1977_v32, 0.0 }
 0x37a   : > { %v1992_v53 = vadd.f32 %v1991_v36, %v1990_v34  ;;  %v6431_v34 = vpop.permute.xlu0 %1249  ;;  %v6442_v36 = vpop.permute.xlu1 %1265 }
 0x37b   : > { %v1201_v49 = vrot.slane %v1200_v5, 1 }
 0x37c   : > { %v1993_v38 = vrot.slane %v1992_v53, 4 }
 0x37d   : > { %v1202_v27 = vadd.f32 %v1201_v49, %v1200_v5 }
 0x37e   : > { %v1994_v48 = vadd.f32 %v1993_v38, %v1992_v53 }
 0x37f   : > { %v1203_v8 = vmul.f32 0.019607844, %v1202_v27 }
 0x380   : > { %v1995_v22 = vrot.slane %v1994_v48, 2 }
 0x381   : > { %v1204_v7 = vadd.f32 1e-05, %v1203_v8 }
 0x382   : > { %v1996_v33 = vadd.f32 %v1995_v22, %v1994_v48 }
 0x383   : > { %4581 = vrsqrt.f32 %v1204_v7 }
 0x384   : > { %v1997_v39 = vrot.slane %v1996_v33, 1 }
 0x386   : > { %v1998_v47 = vadd.f32 %v1997_v39, %v1996_v33  ;;  %v2722_v43 = vpop.f32.mrb[28].mxu1 }
 0x387   : > { %v6388_v4 = vadd.f32 %v2722_v43, %v6287_v61  ;;  %v2724_v11 = vpop.f32.mrb[29].mxu1 }
 0x388   : > { %v1999_v18 = vmul.f32 0.019607844, %v1998_v47 }
 0x389   : > { %v2756_v20 = vsel %vm431_vm0, %v6388_v4, 0.0 }
 0x38a   : > { %v6395_v13 = vsub.f32 %v6314_v63, %v1999_v18  ;;  %v6398_v56 = vsub.f32 %v6331_v57, %v1999_v18  ;;  %v6401_v52 = vsub.f32 %v6353_v51, %v1999_v18  ;;  %v6403_v40 = vsub.f32 %v1962_v2, %v1999_v18  ;;  %v2727_v3 = vpop.f32.mrb[30].mxu1 }
 0x38b   : > { %v6405_v59 = vsub.f32 %v1967_v45, %v1999_v18  ;;  %v6407_v54 = vsub.f32 %v1972_v26, %v1999_v18  ;;  %v6409_v16 = vsub.f32 %v1977_v32, %v1999_v18  ;;  %v6412_v31 = vadd.f32 %v2727_v3, %v6285_v25  ;;  %v2729_v63 = vpop.f32.mrb[31].mxu1 }
 0x38c   : > { %v2007_v57 = vmul.f32 %v6395_v13, %v6395_v13  ;;  %v2008_v51 = vmul.f32 %v6398_v56, %v6398_v56  ;;  %v2009_v2 = vmul.f32 %v6401_v52, %v6401_v52  ;;  %v2010_v45 = vmul.f32 %v6403_v40, %v6403_v40 }
 0x38d   : > { %v6423_v26 = vpop.eup %4581  ;;  %v2011_v30 = vmul.f32 %v6405_v59, %v6405_v59  ;;  %v2012_v58 = vmul.f32 %v6407_v54, %v6407_v54  ;;  %v2013_v10 = vmul.f32 %v6409_v16, %v6409_v16  ;;  %v2757_v1 = vsel %vm431_vm0, %v6412_v31, 0.0 }
 0x38e   : > { %v1212_v6 = vmul.f32 %v6423_v26, %v6328_v55  ;;  %v1206_v32 = vmul.f32 %v6423_v26, %v6316_v41  ;;  %v1207_v17 = vmul.f32 %v6423_v26, %v6318_v35  ;;  %v2014_v5 = vsel %vm431_vm0, %v2007_v57, 0.0  ;;  %v2732_v53 = vpop.f32.mrb[32].mxu1 }
 0x38f   : > { %v2015_v49 = vsel %vm431_vm0, %v2008_v51, 0.0  ;;  %v2017_v38 = vsel %vm431_vm0, %v2009_v2, 0.0  ;;  %v2019_v27 = vsel %vm431_vm0, %v2010_v45, 0.0  ;;  %v2021_v55 = vsel %vm431_vm0, %v2011_v30, 0.0  ;;  %v2734_v48 = vpop.f32.mrb[33].mxu1  ;;  %v1291_v2 = vld [vmem:[%s6451_s11 + $0x8] sm:$0xff] }
 0x390   : > { %v1241_v41 = vmul.f32 %v6339_v15, %v1206_v32  ;;  %v1242_v35 = vmul.f32 %v6360_v28, %v1207_v17  ;;  %v2016_v8 = vadd.f32 %v2015_v49, %v2014_v5  ;;  %v2023_v22 = vsel %vm431_vm0, %v2012_v58, 0.0  ;;  %v1290_v45 = vld [vmem:[%s6451_s11] sm:$0xff] }
 0x391   : > { %v2025_v7 = vsel %vm1159_vm6, %v2013_v10, 0.0  ;;  %v1209_v33 = vmul.f32 %v6423_v26, %v6322_v37  ;;  %v1210_v39 = vmul.f32 %v6423_v26, %v6324_v29  ;;  %v1208_v47 = vmul.f32 %v6423_v26, %v6320_v14  ;;  %v6471_v29 = vpop.permute.xlu0 %1261 }
 0x392   : > { %v2018_v43 = vadd.f32 %v2017_v38, %v2016_v8  ;;  %v1277_v11 = vadd.f32 %v6383_v42, %v1242_v35  ;;  %v1276_v18 = vadd.f32 %v6431_v34, %v1241_v41  ;;  %v2758_v3 = vadd.f32 %v2757_v1, %v2756_v20  ;;  %v2737_v63 = vpop.f32.mrb[34].mxu1  ;;  %v6476_v1 = vpop.permute.xlu1 %1273  ;;  %v1294_v41 = vld [vmem:[%s6451_s11 + $0x20] sm:$0xff]  ;;  %v1293_v35 = vld [vmem:[%s6451_s11 + $0x18] sm:$0xff] }
 0x393   : > { %v1244_v57 = vmul.f32 %v6370_v12, %v1209_v33  ;;  %v1245_v51 = vmul.f32 %v6375_v9, %v1210_v39  ;;  %v1243_v37 = vmul.f32 %v6381_v24, %v1208_v47  ;;  %v6474_v14 = vadd.f32 %v2732_v53, %v6289_v50  ;;  %v2739_v30 = vpop.f32.mrb[35].mxu1  ;;  %7012 = vst [vmem:[#allocation31_spill] sm:$0xff] %v6476_v1 }
 0x394   : > { %v2020_v58 = vadd.f32 %v2019_v27, %v2018_v43  ;;  %v1284_v20 = vmax.f32 %v1277_v11, 0.0  ;;  %v1283_v10 = vmax.f32 %v1276_v18, 0.0  ;;  %v1247_v32 = vmul.f32 %v6379_v19, %v1212_v6  ;;  %v1292_v6 = vld [vmem:[%s6451_s11 + $0x10] sm:$0xff] }
 0x395   : > { %v1278_v17 = vadd.f32 %v6390_v0, %v1243_v37  ;;  %v1280_v5 = vadd.f32 %v6442_v36, %v1245_v51  ;;  %v1279_v53 = vadd.f32 %v6471_v29, %v1244_v57  ;;  %v2759_v49 = vsel %vm431_vm0, %v6474_v14, 0.0 }
 0x396   : > { %v2022_v38 = vadd.f32 %v2021_v55, %v2020_v58  ;;  %v1298_v27 = vadd.f32 %v1291_v2, %v1284_v20  ;;  %v1297_v48 = vadd.f32 %v1290_v45, %v1283_v10  ;;  %v2760_v8 = vadd.f32 %v2759_v49, %v2758_v3  ;;  %v2742_v33 = vpop.f32.mrb[36].mxu1  ;;  %v1296_v55 = vld [vmem:[%s6451_s11 + $0x30] sm:$0x7] }
 0x397   : > { %v1285_v39 = vmax.f32 %v1278_v17, 0.0  ;;  %v1287_v47 = vmax.f32 %v1280_v5, 0.0  ;;  %v1286_v43 = vmax.f32 %v1279_v53, 0.0  ;;  %v1282_v11 = vadd.f32 %v6476_v1, %v1247_v32  ;;  %v2744_v18 = vpop.f32.mrb[37].mxu1 }
 0x398   : > { %v2024_v57 = vadd.f32 %v2023_v22, %v2022_v38  ;;  %1305 = vst.msk [vmem:[%s6482_s14 + $0x8] sm:$0xff] %vm431_vm0, %v1298_v27  ;;  %1304 = vst.msk [vmem:[%s6482_s14] sm:$0xff] %vm431_vm0, %v1297_v48  ;;  %v1211_v51 = vmul.f32 %v6423_v26, %v6326_v21  ;;  %v2738_v3 = vadd.f32 %v2737_v63, %v6292_v62  ;;  %v6502_v22 = vpop.permute.xlu0 %1269  ;;  %v1295_v38 = vld [vmem:[%s6451_s11 + $0x28] sm:$0xff] }
 0x399   : > { %v2743_v37 = vadd.f32 %v2742_v33, %v6298_v23  ;;  %v1299_v2 = vadd.f32 %v1292_v6, %v1285_v39  ;;  %v1301_v45 = vadd.f32 %v1294_v41, %v1287_v47  ;;  %v1300_v30 = vadd.f32 %v1293_v35, %v1286_v43  ;;  %7013 = vst [vmem:[#allocation34_spill] sm:$0xff] %v6502_v22 }
 0x39a   : > { %v1289_v58 = vmax.f32 %v1282_v11, 0.0  ;;  %v2026_v20 = vadd.f32 %v2025_v7, %v2024_v57  ;;  %v1246_v10 = vmul.f32 %v6385_v60, %v1211_v51  ;;  %v2761_v32 = vsel %vm431_vm0, %v2738_v3, 0.0  ;;  %v2747_v21 = vpop.f32.mrb[38].mxu1 }
 0x39b   : > { %v2763_v17 = vsel %vm431_vm0, %v2743_v37, 0.0  ;;  %1306 = vst.msk [vmem:[%s6482_s14 + $0x10] sm:$0xff] %vm431_vm0, %v1299_v2  ;;  %1308 = vst.msk [vmem:[%s6482_s14 + $0x20] sm:$0xff] %vm431_vm0, %v1301_v45  ;;  %v2762_v63 = vadd.f32 %v2761_v32, %v2760_v8  ;;  %v2748_v5 = vadd.f32 %v2747_v21, %v6303_v46  ;;  %v2749_v53 = vpop.f32.mrb[39].mxu1 }
 0x39c   : > { %1307 = vst.msk [vmem:[%s6482_s14 + $0x18] sm:$0xff] %vm431_vm0, %v1300_v30  ;;  %v1303_v26 = vadd.f32 %v1296_v55, %v1289_v58  ;;  %v2027_v49 = vrot.slane %v2026_v20, 4  ;;  %v1281_v7 = vadd.f32 %v6502_v22, %v1246_v10 }
 0x39d   : > { %v2764_v27 = vadd.f32 %v2763_v17, %v2762_v63  ;;  %v2765_v6 = vsel %vm431_vm0, %v2748_v5, 0.0 }
 0x39e   : > { %1310 = vst.msk [vmem:[%s6482_s14 + $0x30] sm:$0x7] %vm1159_vm6, %v1303_v26  ;;  %v2028_v48 = vadd.f32 %v2027_v49, %v2026_v20  ;;  %v1288_v41 = vmax.f32 %v1281_v7, 0.0  ;;  %v2752_v35 = vpop.f32.mrb[40].mxu1 }
 0x39f   : > { %v2766_v33 = vadd.f32 %v2765_v6, %v2764_v27  ;;  %v2753_v39 = vadd.f32 %v2752_v35, %v6308_v44  ;;  %v2754_v8 = vpop.f32.mrb[41].mxu1 }
 0x3a0   : > { %v2029_v47 = vrot.slane %v2028_v48, 2  ;;  %v1302_v43 = vadd.f32 %v1295_v38, %v1288_v41 }
 0x3a1   : > { %v2767_v11 = vsel %vm1159_vm6, %v2753_v39, 0.0 }
 0x3a2   : > { %v2030_v18 = vadd.f32 %v2029_v47, %v2028_v48  ;;  %1309 = vst.msk [vmem:[%s6482_s14 + $0x28] sm:$0xff] %vm431_vm0, %v1302_v43  ;;  %v2768_v57 = vadd.f32 %v2767_v11, %v2766_v33 }
 0x3a4   : > { %v2031_v55 = vrot.slane %v2030_v18, 1  ;;  %v2769_v51 = vrot.slane %v2768_v57, 4 }
 0x3a6   : > { %v2032_v2 = vadd.f32 %v2031_v55, %v2030_v18  ;;  %v2770_v45 = vadd.f32 %v2769_v51, %v2768_v57 }
 0x3a8   : > { %v2033_v30 = vmul.f32 0.019607844, %v2032_v2  ;;  %v2771_v58 = vrot.slane %v2770_v45, 2 }
 0x3aa   : > { %v2034_v20 = vadd.f32 1e-05, %v2033_v30  ;;  %v2772_v10 = vadd.f32 %v2771_v58, %v2770_v45 }
 0x3ac   : > { %4583 = vrsqrt.f32 %v2034_v20  ;;  %v2773_v32 = vrot.slane %v2772_v10, 1 }
 0x3ae   : > { %v2774_v17 = vadd.f32 %v2773_v32, %v2772_v10  ;;  %v3498_v21 = vpop.f32.mrb[80].mxu0  ;;  %v6523_v26 = vpop.f32.mrb[42].mxu1 }
 0x3af   : > { %v6526_v63 = vadd.f32 %v3498_v21, %v6287_v61  ;;  %v3500_v53 = vpop.f32.mrb[81].mxu0  ;;  %v3515_v49 = vpop.f32.mrb[43].mxu1 }
 0x3b0   : > { %v2775_v7 = vmul.f32 0.019607844, %v2774_v17 }
 0x3b1   : > { %v6530_v38 = vsel %vm431_vm0, %v6526_v63, 0.0 }
 0x3b2   : > { %v6533_v27 = vsub.f32 %v6388_v4, %v2775_v7  ;;  %v6536_v6 = vsub.f32 %v6412_v31, %v2775_v7  ;;  %v6539_v48 = vsub.f32 %v6474_v14, %v2775_v7  ;;  %v6541_v41 = vsub.f32 %v2738_v3, %v2775_v7  ;;  %v3503_v61 = vpop.f32.mrb[82].mxu0  ;;  %v6543_v35 = vpop.f32.mrb[44].mxu1 }
 0x3b3   : > { %v6545_v33 = vsub.f32 %v2743_v37, %v2775_v7  ;;  %v6547_v8 = vsub.f32 %v2748_v5, %v2775_v7  ;;  %v6549_v47 = vsub.f32 %v2753_v39, %v2775_v7  ;;  %v6552_v4 = vadd.f32 %v3503_v61, %v6285_v25  ;;  %v3505_v43 = vpop.f32.mrb[83].mxu0  ;;  %v3520_v31 = vpop.f32.mrb[45].mxu1 }
 0x3b4   : > { %v2783_v14 = vmul.f32 %v6533_v27, %v6533_v27  ;;  %v2784_v3 = vmul.f32 %v6536_v6, %v6536_v6  ;;  %v2785_v11 = vmul.f32 %v6539_v48, %v6539_v48  ;;  %v2786_v37 = vmul.f32 %v6541_v41, %v6541_v41 }
 0x3b5   : > { %v2787_v5 = vmul.f32 %v6545_v33, %v6545_v33  ;;  %v6566_v25 = vmul.f32 %v6547_v8, %v6547_v8  ;;  %v6570_v39 = vmul.f32 %v6549_v47, %v6549_v47  ;;  %v6574_v18 = vsel %vm431_vm0, %v6552_v4, 0.0 }
 0x3b6   : > { %v4584_v57 = vpop.eup %4583  ;;  %v2790_v55 = vsel %vm431_vm0, %v2783_v14, 0.0  ;;  %v2791_v51 = vsel %vm431_vm0, %v2784_v3, 0.0  ;;  %v2793_v2 = vsel %vm431_vm0, %v2785_v11, 0.0  ;;  %v2795_v45 = vsel %vm431_vm0, %v2786_v37, 0.0  ;;  %v6580_v30 = vpop.f32.mrb[84].mxu0  ;;  %v3870_v3 = vld [vmem:[%s6451_s11 + $0x40] sm:$0xff] }
 0x3b7   : > { %v6582_v58 = vpop.f32.mrb[46].mxu1  ;;  %v2042_v20 = vmul.f32 %v4584_v57, %v6409_v16  ;;  %v2039_v10 = vmul.f32 %v4584_v57, %v6403_v40  ;;  %v2040_v32 = vmul.f32 %v4584_v57, %v6405_v59  ;;  %v2038_v17 = vmul.f32 %v4584_v57, %v6401_v52  ;;  %v3510_v21 = vpop.f32.mrb[85].mxu0  ;;  %v3871_v11 = vld [vmem:[%s6451_s11 + $0x48] sm:$0xff] }
 0x3b8   : > { %v3525_v53 = vpop.f32.mrb[47].mxu1  ;;  %v2037_v49 = vmul.f32 %v4584_v57, %v6398_v56  ;;  %v2036_v7 = vmul.f32 %v4584_v57, %v6395_v13  ;;  %v2041_v61 = vmul.f32 %v4584_v57, %v6407_v54  ;;  %v2792_v43 = vadd.f32 %v2791_v51, %v2790_v55  ;;  %v3875_v21 = vld [vmem:[%s6451_s11 + $0x68] sm:$0x7] }
 0x3b9   : > { %v2046_v31 = vmul.f32 %v2039_v10, %v6370_v12  ;;  %v2047_v16 = vmul.f32 %v2040_v32, %v6375_v9  ;;  %v2045_v40 = vmul.f32 %v2038_v17, %v6381_v24  ;;  %v2049_v52 = vmul.f32 %v2042_v20, %v6379_v19  ;;  %v3873_v17 = vld [vmem:[%s6451_s11 + $0x58] sm:$0xff] }
 0x3ba   : > { %v2044_v59 = vmul.f32 %v2037_v49, %v6360_v28  ;;  %v2043_v56 = vmul.f32 %v2036_v7, %v6339_v15  ;;  %v2048_v13 = vmul.f32 %v2041_v61, %v6385_v60  ;;  %v2794_v14 = vadd.f32 %v2793_v2, %v2792_v43  ;;  %v3528_v54 = vpop.f32.mrb[48].mxu1  ;;  %v3872_v2 = vld [vmem:[%s6451_s11 + $0x50] sm:$0xff]  ;;  %v3869_v61 = vld [vmem:[%s6451_s11 + $0x38] sm:$0xff] }
 0x3bb   : > { %v2052_v37 = vadd.f32 %v2045_v40, %v6390_v0  ;;  %v2054_v57 = vadd.f32 %v2047_v16, %v6442_v36  ;;  %v2053_v55 = vadd.f32 %v2046_v31, %v6471_v29  ;;  %v2056_v51 = vadd.f32 %v2049_v52, %v6476_v1  ;;  %v3530_v20 = vpop.f32.mrb[49].mxu1  ;;  %v3874_v40 = vld [vmem:[%s6451_s11 + $0x60] sm:$0xff] }
 0x3bc   : > { %v2051_v10 = vadd.f32 %v2044_v59, %v6383_v42  ;;  %v2050_v32 = vadd.f32 %v2043_v56, %v6431_v34  ;;  %v2055_v53 = vadd.f32 %v2048_v13, %v6502_v22  ;;  %v2796_v49 = vadd.f32 %v2795_v45, %v2794_v14 }
 0x3bd   : > { %v2059_v7 = vmax.f32 %v2052_v37, 0.0  ;;  %v2061_v43 = vmax.f32 %v2054_v57, 0.0  ;;  %v2060_v16 = vmax.f32 %v2053_v55, 0.0  ;;  %v2063_v31 = vmax.f32 %v2056_v51, 0.0 }
 0x3be   : > { %v2058_v52 = vmax.f32 %v2051_v10, 0.0  ;;  %v2057_v59 = vmax.f32 %v2050_v32, 0.0  ;;  %v2062_v20 = vmax.f32 %v2055_v53, 0.0  ;;  %v2797_v56 = vsel %vm431_vm0, %v2787_v5, 0.0 }
 0x3bf   : > { %v2074_v1 = vadd.f32 %v3871_v11, %v2059_v7  ;;  %v2076_v45 = vadd.f32 %v3873_v17, %v2061_v43  ;;  %v2075_v13 = vadd.f32 %v3872_v2, %v2060_v16  ;;  %v2078_v14 = vadd.f32 %v3875_v21, %v2063_v31 }
 0x3c0   : > { %v2073_v37 = vadd.f32 %v3870_v3, %v2058_v52  ;;  %v2072_v57 = vadd.f32 %v3869_v61, %v2057_v59  ;;  %v2077_v55 = vadd.f32 %v3874_v40, %v2062_v20  ;;  %v2798_v22 = vadd.f32 %v2797_v56, %v2796_v49 }
 0x3c1   : > { %3878 = vst.msk [vmem:[%s6482_s14 + $0x48] sm:$0xff] %vm431_vm0, %v2074_v1  ;;  %3880 = vst.msk [vmem:[%s6482_s14 + $0x58] sm:$0xff] %vm431_vm0, %v2076_v45  ;;  %v2799_v5 = vsel %vm431_vm0, %v6566_v25, 0.0  ;;  %v3534_v11 = vadd.f32 %v6574_v18, %v6530_v38  ;;  %v3514_v1 = vadd.f32 %v6523_v26, %v6292_v62  ;;  %v3509_v51 = vadd.f32 %v6580_v30, %v6289_v50 }
 0x3c2   : > { %3879 = vst.msk [vmem:[%s6482_s14 + $0x50] sm:$0xff] %vm431_vm0, %v2075_v13  ;;  %3877 = vst.msk [vmem:[%s6482_s14 + $0x40] sm:$0xff] %vm431_vm0, %v2073_v37  ;;  %v2800_v3 = vadd.f32 %v2799_v5, %v2798_v22  ;;  %v2801_v10 = vsel %vm1159_vm6, %v6570_v39, 0.0  ;;  %v3519_v38 = vadd.f32 %v6543_v35, %v6298_v23  ;;  %v3524_v22 = vadd.f32 %v6582_v58, %v6303_v46 }
 0x3c3   : > { %3882 = vst.msk [vmem:[%s6482_s14 + $0x68] sm:$0x7] %vm1159_vm6, %v2078_v14  ;;  %v3535_v18 = vsel %vm431_vm0, %v3509_v51, 0.0  ;;  %v3537_v2 = vsel %vm431_vm0, %v3514_v1, 0.0  ;;  %v3529_v30 = vadd.f32 %v3528_v54, %v6308_v44 }
 0x3c4   : > { %3876 = vst.msk [vmem:[%s6482_s14 + $0x38] sm:$0xff] %vm431_vm0, %v2072_v57  ;;  %3881 = vst.msk [vmem:[%s6482_s14 + $0x60] sm:$0xff] %vm431_vm0, %v2077_v55  ;;  %v2802_v25 = vadd.f32 %v2801_v10, %v2800_v3  ;;  %v3536_v32 = vadd.f32 %v3535_v18, %v3534_v11  ;;  %v3539_v50 = vsel %vm431_vm0, %v3519_v38, 0.0  ;;  %v3541_v53 = vsel %vm431_vm0, %v3524_v22, 0.0 }
 0x3c5   : > { %v3543_v49 = vsel %vm1159_vm6, %v3529_v30, 0.0 }
 0x3c6   : > { %v2803_v17 = vrot.slane %v2802_v25, 4  ;;  %v3538_v62 = vadd.f32 %v3537_v2, %v3536_v32 }
 0x3c8   : > { %v2804_v26 = vadd.f32 %v2803_v17, %v2802_v25  ;;  %v3540_v39 = vadd.f32 %v3539_v50, %v3538_v62 }
 0x3ca   : > { %v2805_v21 = vrot.slane %v2804_v26, 2  ;;  %v3542_v23 = vadd.f32 %v3541_v53, %v3540_v39  ;;  %v3932_v39 = vld [vmem:[%s6451_s11 + $0x78] sm:$0xff] }
 0x3cc   : > { %v2806_v35 = vadd.f32 %v2805_v21, %v2804_v26  ;;  %v3544_v7 = vadd.f32 %v3543_v49, %v3542_v23  ;;  %v3933_v21 = vld [vmem:[%s6451_s11 + $0x80] sm:$0xff]  ;;  %v7015_v49 = vld [vmem:[#allocation31_spill] sm:$0xff] }
 0x3cd   : > { %v7014_v23 = vld [vmem:[#allocation34_spill] sm:$0xff] }
 0x3ce   : > { %v2807_v61 = vrot.slane %v2806_v35, 1  ;;  %v3545_v43 = vrot.slane %v3544_v7, 4 }
 0x3d0   : > { %v2808_v16 = vadd.f32 %v2807_v61, %v2806_v35  ;;  %v3546_v31 = vadd.f32 %v3545_v43, %v3544_v7  ;;  %v3934_v61 = vld [vmem:[%s6451_s11 + $0x88] sm:$0xff]  ;;  %v3935_v43 = vld [vmem:[%s6451_s11 + $0x90] sm:$0xff] }
 0x3d2   : > { %v2809_v46 = vmul.f32 0.019607844, %v2808_v16  ;;  %v3547_v58 = vrot.slane %v3546_v31, 2  ;;  %v3936_v16 = vld [vmem:[%s6451_s11 + $0x98] sm:$0xff] }
 0x3d4   : > { %v2810_v40 = vadd.f32 1e-05, %v2809_v46  ;;  %v3548_v52 = vadd.f32 %v3547_v58, %v3546_v31 }
 0x3d6   : > { %4585 = vrsqrt.f32 %v2810_v40  ;;  %v3549_v59 = vrot.slane %v3548_v52, 1 }
 0x3d8   : > { %v3550_v44 = vadd.f32 %v3549_v59, %v3548_v52  ;;  %v3937_v59 = vld [vmem:[%s6451_s11 + $0xa0] sm:$0x7] }
 0x3da   : > { %v3551_v54 = vmul.f32 0.019607844, %v3550_v44 }
 0x3dc   : > { %v6648_v20 = vsub.f32 %v6526_v63, %v3551_v54  ;;  %v6651_v56 = vsub.f32 %v6552_v4, %v3551_v54  ;;  %v6653_v45 = vsub.f32 %v3509_v51, %v3551_v54  ;;  %v6655_v13 = vsub.f32 %v3514_v1, %v3551_v54 }
 0x3dd   : > { %v6657_v14 = vsub.f32 %v3519_v38, %v3551_v54  ;;  %v6659_v37 = vsub.f32 %v3524_v22, %v3551_v54  ;;  %v6661_v57 = vsub.f32 %v3529_v30, %v3551_v54  ;;  %v3931_v30 = vld [vmem:[%s6451_s11 + $0x70] sm:$0xff] }
 0x3de   : > { %v3559_v55 = vmul.f32 %v6648_v20, %v6648_v20  ;;  %v3560_v63 = vmul.f32 %v6651_v56, %v6651_v56  ;;  %v3561_v4 = vmul.f32 %v6653_v45, %v6653_v45  ;;  %v3562_v11 = vmul.f32 %v6655_v13, %v6655_v13 }
 0x3df   : > { %v3563_v3 = vmul.f32 %v6657_v14, %v6657_v14 }
 0x3e0   : > { %v4586_v5 = vpop.eup %4585  ;;  %v3566_v17 = vsel %vm431_vm0, %v3559_v55, 0.0 }
 0x3e1   : > { %v2812_v1 = vmul.f32 %v4586_v5, %v6533_v27  ;;  %v2813_v51 = vmul.f32 %v4586_v5, %v6536_v6  ;;  %v2814_v10 = vmul.f32 %v4586_v5, %v6539_v48  ;;  %v2815_v25 = vmul.f32 %v4586_v5, %v6541_v41 }
 0x3e2   : > { %v2816_v38 = vmul.f32 %v4586_v5, %v6545_v33  ;;  %v2817_v18 = vmul.f32 %v4586_v5, %v6547_v8  ;;  %v2818_v32 = vmul.f32 %v4586_v5, %v6549_v47  ;;  %v3567_v47 = vsel %vm431_vm0, %v3560_v63, 0.0 }
 0x3e3   : > { %v2819_v2 = vmul.f32 %v2812_v1, %v6339_v15  ;;  %v2820_v27 = vmul.f32 %v2813_v51, %v6360_v28  ;;  %v2821_v6 = vmul.f32 %v2814_v10, %v6381_v24  ;;  %v2822_v48 = vmul.f32 %v2815_v25, %v6370_v12 }
 0x3e4   : > { %v2823_v41 = vmul.f32 %v2816_v38, %v6375_v9  ;;  %v2824_v33 = vmul.f32 %v2817_v18, %v6385_v60  ;;  %v2825_v8 = vmul.f32 %v2818_v32, %v6379_v19  ;;  %v3568_v31 = vadd.f32 %v3567_v47, %v3566_v17 }
 0x3e5   : > { %v2826_v22 = vadd.f32 %v2819_v2, %v6431_v34  ;;  %v2827_v62 = vadd.f32 %v2820_v27, %v6383_v42  ;;  %v2828_v26 = vadd.f32 %v2821_v6, %v6390_v0  ;;  %v2829_v50 = vadd.f32 %v2822_v48, %v6471_v29 }
 0x3e6   : > { %v2830_v53 = vadd.f32 %v2823_v41, %v6442_v36  ;;  %v2831_v35 = vadd.f32 %v2824_v33, %v7014_v23  ;;  %v2832_v7 = vadd.f32 %v2825_v8, %v7015_v49  ;;  %v3569_v5 = vsel %vm431_vm0, %v3561_v4, 0.0 }
 0x3e7   : > { %v2833_v46 = vmax.f32 %v2826_v22, 0.0  ;;  %v2834_v58 = vmax.f32 %v2827_v62, 0.0  ;;  %v2835_v40 = vmax.f32 %v2828_v26, 0.0  ;;  %v2836_v52 = vmax.f32 %v2829_v50, 0.0 }
 0x3e8   : > { %v2837_v44 = vmax.f32 %v2830_v53, 0.0  ;;  %v2838_v54 = vmax.f32 %v2831_v35, 0.0  ;;  %v2839_v55 = vmax.f32 %v2832_v7, 0.0  ;;  %v3570_v32 = vadd.f32 %v3569_v5, %v3568_v31 }
 0x3e9   : > { %v2848_v63 = vadd.f32 %v3931_v30, %v2833_v46  ;;  %v2849_v1 = vadd.f32 %v3932_v39, %v2834_v58  ;;  %v2850_v51 = vadd.f32 %v3933_v21, %v2835_v40  ;;  %v2851_v10 = vadd.f32 %v3934_v61, %v2836_v52  ;;  %v3994_v40 = vld [vmem:[%s6451_s11 + $0xb0] sm:$0xff]  ;;  %v3995_v52 = vld [vmem:[%s6451_s11 + $0xb8] sm:$0xff] }
 0x3ea   : > { %v2852_v25 = vadd.f32 %v3935_v43, %v2837_v44  ;;  %v2853_v38 = vadd.f32 %v3936_v16, %v2838_v54  ;;  %v2854_v18 = vadd.f32 %v3937_v59, %v2839_v55  ;;  %v3564_v4 = vmul.f32 %v6659_v37, %v6659_v37  ;;  %v3996_v59 = vld [vmem:[%s6451_s11 + $0xc0] sm:$0xff]  ;;  %v3998_v44 = vld [vmem:[%s6451_s11 + $0xd0] sm:$0xff]  ;;  %v3999_v54 = vld [vmem:[%s6451_s11 + $0xd8] sm:$0x7] }
 0x3eb   : > { %3938 = vst.msk [vmem:[%s6482_s14 + $0x70] sm:$0xff] %vm431_vm0, %v2848_v63  ;;  %3939 = vst.msk [vmem:[%s6482_s14 + $0x78] sm:$0xff] %vm431_vm0, %v2849_v1  ;;  %v3571_v17 = vsel %vm431_vm0, %v3562_v11, 0.0  ;;  %v3565_v27 = vmul.f32 %v6661_v57, %v6661_v57  ;;  %v3573_v6 = vsel %vm431_vm0, %v3563_v3, 0.0 }
 0x3ec   : > { %3940 = vst.msk [vmem:[%s6482_s14 + $0x80] sm:$0xff] %vm431_vm0, %v2850_v51  ;;  %3941 = vst.msk [vmem:[%s6482_s14 + $0x88] sm:$0xff] %vm431_vm0, %v2851_v10  ;;  %v3572_v2 = vadd.f32 %v3571_v17, %v3570_v32  ;;  %v3575_v41 = vsel %vm431_vm0, %v3564_v4, 0.0 }
 0x3ed   : > { %3942 = vst.msk [vmem:[%s6482_s14 + $0x90] sm:$0xff] %vm431_vm0, %v2852_v25  ;;  %3943 = vst.msk [vmem:[%s6482_s14 + $0x98] sm:$0xff] %vm431_vm0, %v2853_v38  ;;  %v3577_v8 = vsel %vm1159_vm6, %v3565_v27, 0.0 }
 0x3ee   : > { %3944 = vst.msk [vmem:[%s6482_s14 + $0xa0] sm:$0x7] %vm1159_vm6, %v2854_v18  ;;  %v3574_v48 = vadd.f32 %v3573_v6, %v3572_v2 }
 0x3f0   : > { %v3576_v33 = vadd.f32 %v3575_v41, %v3574_v48 }
 0x3f2   : > { %v3578_v47 = vadd.f32 %v3577_v8, %v3576_v33 }
 0x3f4   : > { %v3579_v11 = vrot.slane %v3578_v47, 4 }
 0x3f6   : > { %v3580_v22 = vadd.f32 %v3579_v11, %v3578_v47 }
 0x3f8   : > { %v3581_v62 = vrot.slane %v3580_v22, 2 }
 0x3fa   : > { %v3582_v26 = vadd.f32 %v3581_v62, %v3580_v22 }
 0x3fc   : > { %v3583_v50 = vrot.slane %v3582_v26, 1 }
 0x3fe   : > { %v3584_v30 = vadd.f32 %v3583_v50, %v3582_v26 }
 0x400   : > { %v3585_v39 = vmul.f32 0.019607844, %v3584_v30 }
 0x402   : > { %v3586_v21 = vadd.f32 1e-05, %v3585_v39 }
 0x404   : > { %4587 = vrsqrt.f32 %v3586_v21 }
 0x40e   : > { %v4588_v53 = vpop.eup %4587 }
 0x40f   : > { %v3588_v35 = vmul.f32 %v4588_v53, %v6648_v20  ;;  %v3589_v3 = vmul.f32 %v4588_v53, %v6651_v56  ;;  %v3590_v7 = vmul.f32 %v4588_v53, %v6653_v45  ;;  %v3591_v61 = vmul.f32 %v4588_v53, %v6655_v13 }
 0x410   : > { %v3592_v43 = vmul.f32 %v4588_v53, %v6657_v14  ;;  %v3593_v16 = vmul.f32 %v4588_v53, %v6659_v37  ;;  %v3594_v31 = vmul.f32 %v4588_v53, %v6661_v57 }
 0x411   : > { %v3595_v46 = vmul.f32 %v3588_v35, %v6339_v15  ;;  %v3596_v58 = vmul.f32 %v3589_v3, %v6360_v28  ;;  %v3597_v20 = vmul.f32 %v3590_v7, %v6381_v24  ;;  %v3598_v56 = vmul.f32 %v3591_v61, %v6370_v12  ;;  %v3993_v24 = vld [vmem:[%s6451_s11 + $0xa8] sm:$0xff] }
 0x412   : > { %v3599_v45 = vmul.f32 %v3592_v43, %v6375_v9  ;;  %v3600_v13 = vmul.f32 %v3593_v16, %v6385_v60  ;;  %v3601_v14 = vmul.f32 %v3594_v31, %v6379_v19  ;;  %v3997_v19 = vld [vmem:[%s6451_s11 + $0xc8] sm:$0xff] }
 0x413   : > { %v3602_v37 = vadd.f32 %v3595_v46, %v6431_v34  ;;  %v3603_v57 = vadd.f32 %v3596_v58, %v6383_v42  ;;  %v3604_v15 = vadd.f32 %v3597_v20, %v6390_v0  ;;  %v3605_v28 = vadd.f32 %v3598_v56, %v6471_v29 }
 0x414   : > { %v3606_v12 = vadd.f32 %v3599_v45, %v6442_v36  ;;  %v3607_v9 = vadd.f32 %v3600_v13, %v7014_v23  ;;  %v3608_v60 = vadd.f32 %v3601_v14, %v7015_v49 }
 0x415   : > { %v3609_v34 = vmax.f32 %v3602_v37, 0.0  ;;  %v3610_v42 = vmax.f32 %v3603_v57, 0.0  ;;  %v3611_v0 = vmax.f32 %v3604_v15, 0.0  ;;  %v3612_v29 = vmax.f32 %v3605_v28, 0.0 }
 0x416   : > { %v3613_v55 = vmax.f32 %v3606_v12, 0.0  ;;  %v3614_v36 = vmax.f32 %v3607_v9, 0.0  ;;  %v3615_v23 = vmax.f32 %v3608_v60, 0.0 }
 0x417   : > { %v3624_v5 = vadd.f32 %v3993_v24, %v3609_v34  ;;  %v3625_v49 = vadd.f32 %v3994_v40, %v3610_v42  ;;  %v3626_v63 = vadd.f32 %v3995_v52, %v3611_v0  ;;  %v3627_v1 = vadd.f32 %v3996_v59, %v3612_v29 }
 0x418   : > { %v3628_v51 = vadd.f32 %v3997_v19, %v3613_v55  ;;  %v3629_v10 = vadd.f32 %v3998_v44, %v3614_v36  ;;  %v3630_v25 = vadd.f32 %v3999_v54, %v3615_v23 }
 0x419   : > { %4000 = vst.msk [vmem:[%s6482_s14 + $0xa8] sm:$0xff] %vm431_vm0, %v3624_v5  ;;  %4001 = vst.msk [vmem:[%s6482_s14 + $0xb0] sm:$0xff] %vm431_vm0, %v3625_v49 }
 0x41a   : > { %4002 = vst.msk [vmem:[%s6482_s14 + $0xb8] sm:$0xff] %vm431_vm0, %v3626_v63  ;;  %4003 = vst.msk [vmem:[%s6482_s14 + $0xc0] sm:$0xff] %vm431_vm0, %v3627_v1 }
 0x41b   : > { %4004 = vst.msk [vmem:[%s6482_s14 + $0xc8] sm:$0xff] %vm431_vm0, %v3628_v51  ;;  %4005 = vst.msk [vmem:[%s6482_s14 + $0xd0] sm:$0xff] %vm431_vm0, %v3629_v10 }
 0x41c   : > { %4006 = vst.msk [vmem:[%s6482_s14 + $0xd8] sm:$0x7] %vm1159_vm6, %v3630_v25 }
 0x41d PF: > { %s16_s25 = sadd.s32 1, %s4642_s25   ;;  %s7016_s21 = smov %s4634_s23 }
 0x41e   : > { %p13_p7 = scmp.ge.s32.totalorder %s16_s25, 6   ;;  %s7017_s22 = smov %s4638_s24 }
 0x41f   : > { %s7018_s23 = smov %s7021_s26  ;;  %s7019_s24 = smov %s7025_s27 }
 0x420   :  { %15 = sbr.rel (!%p13_p7) target bundleno = 3 (0x3), region = 98 }

</bundles_post_ra>
